<compile_context>
chip_gen: v7x
topology: tpu7x:2x2x1
jax: 0.10.0
libtpu: 0.0.40
codegen_flags: <defaults>
</compile_context>

<pallas_src>
import jax
import jax.numpy as jnp
import numpy as np
from jax.experimental import pallas as pl
from jax.experimental.pallas import tpu as pltpu

VMEM_LIMIT = 32 * 1024 * 1024   # explicit cap, safe on v5e/v6e/v7x (usage ~3 MB)


# ----------------------------------------------------------------------------
# Fused Pallas kernel: layer 2 + layer 3 + Linear/Sigmoid head (one sample)
# ----------------------------------------------------------------------------
def fused_tail_kernel(xs2_ref, w2_ref, t2_ref, w3_ref, t3_ref,
                      pperm_ref, w4_ref, b4_ref, o_ref):
    """xs2_ref: [1, 8, 8, 256] bf16   space-to-depth of padded layer-1 output
       w2_ref : [2, 2, 256, 128] bf16 conv2 weights, BN scale folded in
       t2_ref : [1, 128] f32          folded conv2 bias + BN shift
       w3_ref : [2, 2, 512, 256] bf16 conv3 weights, BN scale folded in
       t3_ref : [1, 256] f32
       pperm_ref: [8, 7] bf16         0/1 pad + column-parity permute matrix
       w4_ref : [3, 3, 256] f32       Linear weight in NHWC order
       b4_ref : [1, 1] f32
       o_ref  : [1, 8, 128] f32       sigmoid output broadcast into the slab
    """
    f32 = jnp.float32
    bf16 = jnp.bfloat16

    # ---- layer 2: Conv(64->128, k4 s2 p1) as 2x2 conv on s2d input --------
    xrows = [xs2_ref[0, r] for r in range(8)]              # 8 x [8, 256]
    acc2 = [jnp.zeros((7, 128), f32) for _ in range(7)]
    for a in range(2):
        for b in range(2):                                  # same RHS reused
            for oh in range(7):
                lhs = xrows[oh + a][b:b + 7, :]             # [7, 256]
                acc2[oh] = acc2[oh] + jnp.dot(
                    lhs, w2_ref[a, b], preferred_element_type=f32)
    y2_rows = []
    for oh in range(7):
        y = acc2[oh] + t2_ref[...]                          # [7,128] + [1,128]
        y2_rows.append(jnp.where(y > 0.0, y, 0.2 * y).astype(bf16))

    # ---- in-VMEM pad(top/left 1) + space-to-depth for layer 3 -------------
    # pperm maps a y2 row [7,128] -> [pad+even cols (4) | odd cols (4)] x 128
    pperm = pperm_ref[...]
    pp = [jnp.zeros((8, 128), bf16)]                        # padded row 0
    for r in range(7):
        pp.append(jnp.dot(pperm, y2_rows[r],
                          preferred_element_type=f32).astype(bf16))
    xs3_rows = []
    for r in range(4):
        xs3_rows.append(jnp.concatenate(                    # [4, 512]
            [pp[2 * r][0:4, :], pp[2 * r][4:8, :],
             pp[2 * r + 1][0:4, :], pp[2 * r + 1][4:8, :]], axis=-1))

    # ---- layer 3: Conv(128->256, k4 s2 p1) --------------------------------
    acc3 = [jnp.zeros((3, 256), f32) for _ in range(3)]
    for a in range(2):
        for b in range(2):
            for oh in range(3):
                lhs = xs3_rows[oh + a][b:b + 3, :]          # [3, 512]
                acc3[oh] = acc3[oh] + jnp.dot(
                    lhs, w3_ref[a, b], preferred_element_type=f32)
    y3_rows = []
    for oh in range(3):
        y = acc3[oh] + t3_ref[...]                          # [3,256] + [1,256]
        y3_rows.append(jnp.where(y > 0.0, y, 0.2 * y))      # keep f32 for head

    # ---- head: Flatten + Linear(2304 -> 1) + Sigmoid (no big temporary) ---
    part = jnp.zeros((1, 256), f32)
    for oh in range(3):
        part = part + jnp.sum(y3_rows[oh] * w4_ref[oh], axis=0, keepdims=True)
    logit = jnp.sum(part, axis=1, keepdims=True) + b4_ref[...]        # [1,1]
    prob = 0.5 * (jnp.tanh(0.5 * logit) + 1.0)     # == sigmoid, stable (EUP)
    o_ref[0] = jnp.broadcast_to(prob, (8, 128))


# ----------------------------------------------------------------------------
# Parameters (deterministic) + host-side prep
# ----------------------------------------------------------------------------
def make_params(key):
    ks = jax.random.split(key, 16)
    p = {}
    p["w1"] = 0.05 * jax.random.normal(ks[0], (64, 1, 4, 4), jnp.float32)
    p["b1"] = 0.05 * jax.random.normal(ks[1], (64,), jnp.float32)

    p["w2"] = 0.05 * jax.random.normal(ks[2], (128, 64, 4, 4), jnp.float32)
    p["b2"] = 0.05 * jax.random.normal(ks[3], (128,), jnp.float32)
    p["bn2_gamma"] = 1.0 + 0.05 * jax.random.normal(ks[4], (128,), jnp.float32)
    p["bn2_beta"] = 0.05 * jax.random.normal(ks[5], (128,), jnp.float32)
    p["bn2_mean"] = 0.05 * jax.random.normal(ks[6], (128,), jnp.float32)
    p["bn2_var"] = 1.0 + jnp.abs(0.05 * jax.random.normal(ks[7], (128,), jnp.float32))

    p["w3"] = 0.05 * jax.random.normal(ks[8], (256, 128, 4, 4), jnp.float32)
    p["b3"] = 0.05 * jax.random.normal(ks[9], (256,), jnp.float32)
    p["bn3_gamma"] = 1.0 + 0.05 * jax.random.normal(ks[10], (256,), jnp.float32)
    p["bn3_beta"] = 0.05 * jax.random.normal(ks[11], (256,), jnp.float32)
    p["bn3_mean"] = 0.05 * jax.random.normal(ks[12], (256,), jnp.float32)
    p["bn3_var"] = 1.0 + jnp.abs(0.05 * jax.random.normal(ks[13], (256,), jnp.float32))

    p["w4"] = 0.02 * jax.random.normal(ks[14], (1, 256 * 3 * 3), jnp.float32)
    p["b4"] = 0.02 * jax.random.normal(ks[15], (1,), jnp.float32)
    return p


def fold_bn(gamma, beta, mean, var, eps=1e-5):
    s = gamma / jnp.sqrt(var + eps)
    return s, beta - mean * s


def conv_w_2x2(w_oihw, scale=None):
    """[OC,IC,4,4] torch weight -> [2,2,4*IC,OC] 2x2-conv weight for s2d input.

    W[a, b, (di*2+dj)*IC + ic, oc] = w[oc, ic, 2a+di, 2b+dj] (scale folded)."""
    oc, ic, kh, kw = w_oihw.shape
    w = w_oihw
    if scale is not None:
        w = w * scale[:, None, None, None]              # fold BN scale in f32
    w = jnp.transpose(w, (2, 3, 1, 0))                  # [i, j, ic, oc]
    w = w.reshape(2, 2, 2, 2, ic, oc)                   # [a, di, b, dj, ic, oc]
    w = jnp.transpose(w, (0, 2, 1, 3, 4, 5))            # [a, b, di, dj, ic, oc]
    return w.reshape(2, 2, 4 * ic, oc).astype(jnp.bfloat16)


def prepare_params(p):
    prep = {}
    prep["w1_hwio"] = jnp.transpose(p["w1"], (2, 3, 1, 0)).astype(jnp.float32)
    prep["b1"] = p["b1"].astype(jnp.float32)

    s2, t2 = fold_bn(p["bn2_gamma"], p["bn2_beta"], p["bn2_mean"], p["bn2_var"])
    prep["w2q"] = conv_w_2x2(p["w2"], scale=s2)
    prep["t2"] = (p["b2"] * s2 + t2).reshape(1, 128).astype(jnp.float32)

    s3, t3 = fold_bn(p["bn3_gamma"], p["bn3_beta"], p["bn3_mean"], p["bn3_var"])
    prep["w3q"] = conv_w_2x2(p["w3"], scale=s3)
    prep["t3"] = (p["b3"] * s3 + t3).reshape(1, 256).astype(jnp.float32)

    # Pad + column-parity permutation: row k<4 -> padded col 2k (k=0 is the
    # zero pad column), row k>=4 -> padded col 2(k-4)+1.
    P = np.zeros((8, 7), np.float32)
    for k in range(1, 4):
        P[k, 2 * k - 1] = 1.0
    for k in range(4, 8):
        P[k, 2 * (k - 4)] = 1.0
    prep["pperm"] = jnp.asarray(P, dtype=jnp.bfloat16)

    # Linear weight in NHWC order: [1, 2304] (c*9+h*3+w) -> [3, 3, 256] (h,w,c)
    prep["w4_hwc"] = jnp.transpose(p["w4"].reshape(256, 3, 3), (1, 2, 0)).astype(jnp.float32)
    prep["b4"] = p["b4"].reshape(1, 1).astype(jnp.float32)
    return prep


# ----------------------------------------------------------------------------
# Forward pass
# ----------------------------------------------------------------------------
@jax.jit
def discriminator_forward(x_nchw, prep):
    n = x_nchw.shape[0]
    x = jnp.transpose(x_nchw, (0, 2, 3, 1)).astype(jnp.float32)   # [N,28,28,1]

    # l1: Conv(1->64, k4 s2 p1) + bias + LeakyReLU(0.2) in XLA (tiny,
    # MXU/lane-degenerate as a matmul).  Dropout = identity at inference.
    y1 = jax.lax.conv_general_dilated(
        x, prep["w1_hwio"], window_strides=(2, 2), padding=((1, 1), (1, 1)),
        dimension_numbers=("NHWC", "HWIO", "NHWC"))
    y1 = y1 + prep["b1"]
    y1 = jnp.where(y1 > 0.0, y1, 0.2 * y1)                        # [N,14,14,64]

    # pad + space-to-depth so conv2 becomes a 2x2/stride-1 conv in the kernel
    y1p = jnp.pad(y1, ((0, 0), (1, 1), (1, 1), (0, 0)))           # [N,16,16,64]
    xs2 = (y1p.reshape(n, 8, 2, 8, 2, 64)
              .transpose(0, 1, 3, 2, 4, 5)
              .reshape(n, 8, 8, 256)
              .astype(jnp.bfloat16))

    out = pl.pallas_call(
        fused_tail_kernel,
        out_shape=jax.ShapeDtypeStruct((n, 8, 128), jnp.float32),
        grid=(n,),
        in_specs=[
            pl.BlockSpec((1, 8, 8, 256), lambda i: (i, 0, 0, 0)),    # per-sample act
            pl.BlockSpec((2, 2, 256, 128), lambda i: (0, 0, 0, 0)),  # w2 (resident)
            pl.BlockSpec((1, 128), lambda i: (0, 0)),                # shift2
            pl.BlockSpec((2, 2, 512, 256), lambda i: (0, 0, 0, 0)),  # w3 (resident)
            pl.BlockSpec((1, 256), lambda i: (0, 0)),                # shift3
            pl.BlockSpec((8, 7), lambda i: (0, 0)),                  # pad/parity perm
            pl.BlockSpec((3, 3, 256), lambda i: (0, 0, 0)),          # head weight
            pl.BlockSpec((1, 1), lambda i: (0, 0)),                  # head bias
        ],
        out_specs=pl.BlockSpec((1, 8, 128), lambda i: (i, 0, 0)),
        compiler_params=pltpu.CompilerParams(
            dimension_semantics=("parallel",),
            vmem_limit_bytes=VMEM_LIMIT,
        ),
        cost_estimate=pl.CostEstimate(
            flops=int(n * 2 * (7 * 7 * 4 * 4 * 64 * 128
                               + 3 * 3 * 4 * 4 * 128 * 256 + 2304)),
            transcendentals=int(n),
            bytes_accessed=int(n * (8 * 8 * 256 * 2 + 8 * 128 * 4)
                               + (2 * 2 * 256 * 128 + 2 * 2 * 512 * 256) * 2
                               + (128 + 256 + 3 * 3 * 256) * 4),
        ),
    )(xs2, prep["w2q"], prep["t2"], prep["w3q"], prep["t3"],
      prep["pperm"], prep["w4_hwc"], prep["b4"])

    return out[:, 0, :1]                                           # [N, 1]


# ----------------------------------------------------------------------------
# Pure-XLA f32 reference (inference semantics of the PyTorch module)
# ----------------------------------------------------------------------------
def reference_forward(x_nchw, p, eps=1e-5):
    x = jnp.transpose(x_nchw, (0, 2, 3, 1)).astype(jnp.float32)

    def conv(v, w_oihw, b):
        w = jnp.transpose(w_oihw, (2, 3, 1, 0))
        y = jax.lax.conv_general_dilated(
            v, w, window_strides=(2, 2), padding=((1, 1), (1, 1)),
            dimension_numbers=("NHWC", "HWIO", "NHWC"))
        return y + b

    def leaky(v):
        return jnp.where(v > 0.0, v, 0.2 * v)

    def bn(v, g, b, m, var):
        return (v - m) / jnp.sqrt(var + eps) * g + b

    y = leaky(conv(x, p["w1"], p["b1"]))
    y = leaky(bn(conv(y, p["w2"], p["b2"]),
                 p["bn2_gamma"], p["bn2_beta"], p["bn2_mean"], p["bn2_var"]))
    y = leaky(bn(conv(y, p["w3"], p["b3"]),
                 p["bn3_gamma"], p["bn3_beta"], p["bn3_mean"], p["bn3_var"]))
    y = jnp.transpose(y, (0, 3, 1, 2)).reshape(y.shape[0], -1)  # NCHW flatten
    logit = y @ p["w4"].T + p["b4"]
    return jax.nn.sigmoid(logit)


if __name__ == "__main__":
    key = jax.random.PRNGKey(0)
    k_x, k_p = jax.random.split(key)

    # Input shape forced by the module: 1 channel, 28x28 (28->14->7->3, 256*3*3).
    batch = 2
    x = jax.random.normal(k_x, (batch, 1, 28, 28), dtype=jnp.float32)
    params = make_params(k_p)
    prep = prepare_params(params)

    out = discriminator_forward(x, prep)
    out = jax.block_until_ready(out)
    ref = reference_forward(x, params)

    assert out.shape == (batch, 1), out.shape
    assert bool(jnp.all((out >= 0.0) & (out <= 1.0))), "sigmoid output out of range"
    err = float(jnp.max(jnp.abs(out - ref)))
    assert err < 5e-2, f"mismatch vs f32 reference: {err}"
    print("KERNEL_OK")
</pallas_src>

<mosaic_0001>
module attributes {stable_mosaic.version = 11 : i64} {
  func.func @fused_tail_kernel(%arg0: i32, %arg1: memref<1x8x8x256xbf16, #tpu.memory_space<vmem>>, %arg2: memref<2x2x256x128xbf16, #tpu.memory_space<vmem>>, %arg3: memref<1x128xf32, #tpu.memory_space<vmem>>, %arg4: memref<2x2x512x256xbf16, #tpu.memory_space<vmem>>, %arg5: memref<1x256xf32, #tpu.memory_space<vmem>>, %arg6: memref<8x7xbf16, #tpu.memory_space<vmem>>, %arg7: memref<3x3x256xf32, #tpu.memory_space<vmem>>, %arg8: memref<1x1xf32, #tpu.memory_space<vmem>>, %arg9: memref<1x8x128xf32, #tpu.memory_space<vmem>>) attributes {dimension_semantics = [#tpu.dimension_semantics<parallel>], iteration_bounds = array<i64: 2>, scalar_prefetch = 0 : i64, scratch_operands = 0 : i64, tpu.core_type = #tpu.core_type<tc>, window_params = [{transform_indices = @transform_0, window_bounds = array<i64: 1, 8, 8, 256>}, {pipeline_mode = #tpu.pipeline_mode<synchronous>, transform_indices = @transform_1, window_bounds = array<i64: 2, 2, 256, 128>}, {pipeline_mode = #tpu.pipeline_mode<synchronous>, transform_indices = @transform_2, window_bounds = array<i64: 1, 128>}, {pipeline_mode = #tpu.pipeline_mode<synchronous>, transform_indices = @transform_3, window_bounds = array<i64: 2, 2, 512, 256>}, {pipeline_mode = #tpu.pipeline_mode<synchronous>, transform_indices = @transform_4, window_bounds = array<i64: 1, 256>}, {pipeline_mode = #tpu.pipeline_mode<synchronous>, transform_indices = @transform_5, window_bounds = array<i64: 8, 7>}, {pipeline_mode = #tpu.pipeline_mode<synchronous>, transform_indices = @transform_6, window_bounds = array<i64: 3, 3, 256>}, {pipeline_mode = #tpu.pipeline_mode<synchronous>, transform_indices = @transform_7, window_bounds = array<i64: 1, 1>}, {transform_indices = @transform_8, window_bounds = array<i64: 1, 8, 128>}]} {
    %c0 = arith.constant 0 : index
    %c0_0 = arith.constant 0 : index
    %c0_1 = arith.constant 0 : index
    %c0_2 = arith.constant 0 : index
    %0 = vector.load %arg1[%c0, %c0_0, %c0_1, %c0_2] : memref<1x8x8x256xbf16, #tpu.memory_space<vmem>>, vector<1x1x8x256xbf16>
    %1 = vector.shape_cast %0 : vector<1x1x8x256xbf16> to vector<8x256xbf16>
    %c0_3 = arith.constant 0 : index
    %c1 = arith.constant 1 : index
    %c0_4 = arith.constant 0 : index
    %c0_5 = arith.constant 0 : index
    %2 = vector.load %arg1[%c0_3, %c1, %c0_4, %c0_5] : memref<1x8x8x256xbf16, #tpu.memory_space<vmem>>, vector<1x1x8x256xbf16>
    %3 = vector.shape_cast %2 : vector<1x1x8x256xbf16> to vector<8x256xbf16>
    %c0_6 = arith.constant 0 : index
    %c2 = arith.constant 2 : index
    %c0_7 = arith.constant 0 : index
    %c0_8 = arith.constant 0 : index
    %4 = vector.load %arg1[%c0_6, %c2, %c0_7, %c0_8] : memref<1x8x8x256xbf16, #tpu.memory_space<vmem>>, vector<1x1x8x256xbf16>
    %5 = vector.shape_cast %4 : vector<1x1x8x256xbf16> to vector<8x256xbf16>
    %c0_9 = arith.constant 0 : index
    %c3 = arith.constant 3 : index
    %c0_10 = arith.constant 0 : index
    %c0_11 = arith.constant 0 : index
    %6 = vector.load %arg1[%c0_9, %c3, %c0_10, %c0_11] : memref<1x8x8x256xbf16, #tpu.memory_space<vmem>>, vector<1x1x8x256xbf16>
    %7 = vector.shape_cast %6 : vector<1x1x8x256xbf16> to vector<8x256xbf16>
    %c0_12 = arith.constant 0 : index
    %c4 = arith.constant 4 : index
    %c0_13 = arith.constant 0 : index
    %c0_14 = arith.constant 0 : index
    %8 = vector.load %arg1[%c0_12, %c4, %c0_13, %c0_14] : memref<1x8x8x256xbf16, #tpu.memory_space<vmem>>, vector<1x1x8x256xbf16>
    %9 = vector.shape_cast %8 : vector<1x1x8x256xbf16> to vector<8x256xbf16>
    %c0_15 = arith.constant 0 : index
    %c5 = arith.constant 5 : index
    %c0_16 = arith.constant 0 : index
    %c0_17 = arith.constant 0 : index
    %10 = vector.load %arg1[%c0_15, %c5, %c0_16, %c0_17] : memref<1x8x8x256xbf16, #tpu.memory_space<vmem>>, vector<1x1x8x256xbf16>
    %11 = vector.shape_cast %10 : vector<1x1x8x256xbf16> to vector<8x256xbf16>
    %c0_18 = arith.constant 0 : index
    %c6 = arith.constant 6 : index
    %c0_19 = arith.constant 0 : index
    %c0_20 = arith.constant 0 : index
    %12 = vector.load %arg1[%c0_18, %c6, %c0_19, %c0_20] : memref<1x8x8x256xbf16, #tpu.memory_space<vmem>>, vector<1x1x8x256xbf16>
    %13 = vector.shape_cast %12 : vector<1x1x8x256xbf16> to vector<8x256xbf16>
    %c0_21 = arith.constant 0 : index
    %c7 = arith.constant 7 : index
    %c0_22 = arith.constant 0 : index
    %c0_23 = arith.constant 0 : index
    %14 = vector.load %arg1[%c0_21, %c7, %c0_22, %c0_23] : memref<1x8x8x256xbf16, #tpu.memory_space<vmem>>, vector<1x1x8x256xbf16>
    %15 = vector.shape_cast %14 : vector<1x1x8x256xbf16> to vector<8x256xbf16>
    %cst = arith.constant 0.000000e+00 : f32
    %16 = vector.broadcast %cst : f32 to vector<7x128xf32>
    %cst_24 = arith.constant 0.000000e+00 : f32
    %17 = vector.broadcast %cst_24 : f32 to vector<7x128xf32>
    %cst_25 = arith.constant 0.000000e+00 : f32
    %18 = vector.broadcast %cst_25 : f32 to vector<7x128xf32>
    %cst_26 = arith.constant 0.000000e+00 : f32
    %19 = vector.broadcast %cst_26 : f32 to vector<7x128xf32>
    %cst_27 = arith.constant 0.000000e+00 : f32
    %20 = vector.broadcast %cst_27 : f32 to vector<7x128xf32>
    %cst_28 = arith.constant 0.000000e+00 : f32
    %21 = vector.broadcast %cst_28 : f32 to vector<7x128xf32>
    %cst_29 = arith.constant 0.000000e+00 : f32
    %22 = vector.broadcast %cst_29 : f32 to vector<7x128xf32>
    %23 = vector.extract_strided_slice %1 {offsets = [0, 0], sizes = [7, 256], strides = [1, 1]} : vector<8x256xbf16> to vector<7x256xbf16>
    %c0_30 = arith.constant 0 : index
    %c0_31 = arith.constant 0 : index
    %c0_32 = arith.constant 0 : index
    %c0_33 = arith.constant 0 : index
    %24 = vector.load %arg2[%c0_30, %c0_31, %c0_32, %c0_33] : memref<2x2x256x128xbf16, #tpu.memory_space<vmem>>, vector<1x1x256x128xbf16>
    %25 = vector.shape_cast %24 : vector<1x1x256x128xbf16> to vector<256x128xbf16>
    %cst_34 = arith.constant dense<0.000000e+00> : vector<7x128xf32>
    %26 = tpu.matmul %23, %25, %cst_34 {dimension_numbers = #tpu.dot_dimension_numbers<[1], [0], [0], [1], [0, 0, 1, 1], [], []>} : vector<7x256xbf16>, vector<256x128xbf16>, vector<7x128xf32> -> vector<7x128xf32>
    %27 = arith.addf %16, %26 : vector<7x128xf32>
    %28 = vector.extract_strided_slice %3 {offsets = [0, 0], sizes = [7, 256], strides = [1, 1]} : vector<8x256xbf16> to vector<7x256xbf16>
    %c0_35 = arith.constant 0 : index
    %c0_36 = arith.constant 0 : index
    %c0_37 = arith.constant 0 : index
    %c0_38 = arith.constant 0 : index
    %29 = vector.load %arg2[%c0_35, %c0_36, %c0_37, %c0_38] : memref<2x2x256x128xbf16, #tpu.memory_space<vmem>>, vector<1x1x256x128xbf16>
    %30 = vector.shape_cast %29 : vector<1x1x256x128xbf16> to vector<256x128xbf16>
    %cst_39 = arith.constant dense<0.000000e+00> : vector<7x128xf32>
    %31 = tpu.matmul %28, %30, %cst_39 {dimension_numbers = #tpu.dot_dimension_numbers<[1], [0], [0], [1], [0, 0, 1, 1], [], []>} : vector<7x256xbf16>, vector<256x128xbf16>, vector<7x128xf32> -> vector<7x128xf32>
    %32 = arith.addf %17, %31 : vector<7x128xf32>
    %33 = vector.extract_strided_slice %5 {offsets = [0, 0], sizes = [7, 256], strides = [1, 1]} : vector<8x256xbf16> to vector<7x256xbf16>
    %c0_40 = arith.constant 0 : index
    %c0_41 = arith.constant 0 : index
    %c0_42 = arith.constant 0 : index
    %c0_43 = arith.constant 0 : index
    %34 = vector.load %arg2[%c0_40, %c0_41, %c0_42, %c0_43] : memref<2x2x256x128xbf16, #tpu.memory_space<vmem>>, vector<1x1x256x128xbf16>
    %35 = vector.shape_cast %34 : vector<1x1x256x128xbf16> to vector<256x128xbf16>
    %cst_44 = arith.constant dense<0.000000e+00> : vector<7x128xf32>
    %36 = tpu.matmul %33, %35, %cst_44 {dimension_numbers = #tpu.dot_dimension_numbers<[1], [0], [0], [1], [0, 0, 1, 1], [], []>} : vector<7x256xbf16>, vector<256x128xbf16>, vector<7x128xf32> -> vector<7x128xf32>
    %37 = arith.addf %18, %36 : vector<7x128xf32>
    %38 = vector.extract_strided_slice %7 {offsets = [0, 0], sizes = [7, 256], strides = [1, 1]} : vector<8x256xbf16> to vector<7x256xbf16>
    %c0_45 = arith.constant 0 : index
    %c0_46 = arith.constant 0 : index
    %c0_47 = arith.constant 0 : index
    %c0_48 = arith.constant 0 : index
    %39 = vector.load %arg2[%c0_45, %c0_46, %c0_47, %c0_48] : memref<2x2x256x128xbf16, #tpu.memory_space<vmem>>, vector<1x1x256x128xbf16>
    %40 = vector.shape_cast %39 : vector<1x1x256x128xbf16> to vector<256x128xbf16>
    %cst_49 = arith.constant dense<0.000000e+00> : vector<7x128xf32>
    %41 = tpu.matmul %38, %40, %cst_49 {dimension_numbers = #tpu.dot_dimension_numbers<[1], [0], [0], [1], [0, 0, 1, 1], [], []>} : vector<7x256xbf16>, vector<256x128xbf16>, vector<7x128xf32> -> vector<7x128xf32>
    %42 = arith.addf %19, %41 : vector<7x128xf32>
    %43 = vector.extract_strided_slice %9 {offsets = [0, 0], sizes = [7, 256], strides = [1, 1]} : vector<8x256xbf16> to vector<7x256xbf16>
    %c0_50 = arith.constant 0 : index
    %c0_51 = arith.constant 0 : index
    %c0_52 = arith.constant 0 : index
    %c0_53 = arith.constant 0 : index
    %44 = vector.load %arg2[%c0_50, %c0_51, %c0_52, %c0_53] : memref<2x2x256x128xbf16, #tpu.memory_space<vmem>>, vector<1x1x256x128xbf16>
    %45 = vector.shape_cast %44 : vector<1x1x256x128xbf16> to vector<256x128xbf16>
    %cst_54 = arith.constant dense<0.000000e+00> : vector<7x128xf32>
    %46 = tpu.matmul %43, %45, %cst_54 {dimension_numbers = #tpu.dot_dimension_numbers<[1], [0], [0], [1], [0, 0, 1, 1], [], []>} : vector<7x256xbf16>, vector<256x128xbf16>, vector<7x128xf32> -> vector<7x128xf32>
    %47 = arith.addf %20, %46 : vector<7x128xf32>
    %48 = vector.extract_strided_slice %11 {offsets = [0, 0], sizes = [7, 256], strides = [1, 1]} : vector<8x256xbf16> to vector<7x256xbf16>
    %c0_55 = arith.constant 0 : index
    %c0_56 = arith.constant 0 : index
    %c0_57 = arith.constant 0 : index
    %c0_58 = arith.constant 0 : index
    %49 = vector.load %arg2[%c0_55, %c0_56, %c0_57, %c0_58] : memref<2x2x256x128xbf16, #tpu.memory_space<vmem>>, vector<1x1x256x128xbf16>
    %50 = vector.shape_cast %49 : vector<1x1x256x128xbf16> to vector<256x128xbf16>
    %cst_59 = arith.constant dense<0.000000e+00> : vector<7x128xf32>
    %51 = tpu.matmul %48, %50, %cst_59 {dimension_numbers = #tpu.dot_dimension_numbers<[1], [0], [0], [1], [0, 0, 1, 1], [], []>} : vector<7x256xbf16>, vector<256x128xbf16>, vector<7x128xf32> -> vector<7x128xf32>
    %52 = arith.addf %21, %51 : vector<7x128xf32>
    %53 = vector.extract_strided_slice %13 {offsets = [0, 0], sizes = [7, 256], strides = [1, 1]} : vector<8x256xbf16> to vector<7x256xbf16>
    %c0_60 = arith.constant 0 : index
    %c0_61 = arith.constant 0 : index
    %c0_62 = arith.constant 0 : index
    %c0_63 = arith.constant 0 : index
    %54 = vector.load %arg2[%c0_60, %c0_61, %c0_62, %c0_63] : memref<2x2x256x128xbf16, #tpu.memory_space<vmem>>, vector<1x1x256x128xbf16>
    %55 = vector.shape_cast %54 : vector<1x1x256x128xbf16> to vector<256x128xbf16>
    %cst_64 = arith.constant dense<0.000000e+00> : vector<7x128xf32>
    %56 = tpu.matmul %53, %55, %cst_64 {dimension_numbers = #tpu.dot_dimension_numbers<[1], [0], [0], [1], [0, 0, 1, 1], [], []>} : vector<7x256xbf16>, vector<256x128xbf16>, vector<7x128xf32> -> vector<7x128xf32>
    %57 = arith.addf %22, %56 : vector<7x128xf32>
    %58 = vector.extract_strided_slice %1 {offsets = [1, 0], sizes = [7, 256], strides = [1, 1]} : vector<8x256xbf16> to vector<7x256xbf16>
    %c0_65 = arith.constant 0 : index
    %c1_66 = arith.constant 1 : index
    %c0_67 = arith.constant 0 : index
    %c0_68 = arith.constant 0 : index
    %59 = vector.load %arg2[%c0_65, %c1_66, %c0_67, %c0_68] : memref<2x2x256x128xbf16, #tpu.memory_space<vmem>>, vector<1x1x256x128xbf16>
    %60 = vector.shape_cast %59 : vector<1x1x256x128xbf16> to vector<256x128xbf16>
    %cst_69 = arith.constant dense<0.000000e+00> : vector<7x128xf32>
    %61 = tpu.matmul %58, %60, %cst_69 {dimension_numbers = #tpu.dot_dimension_numbers<[1], [0], [0], [1], [0, 0, 1, 1], [], []>} : vector<7x256xbf16>, vector<256x128xbf16>, vector<7x128xf32> -> vector<7x128xf32>
    %62 = arith.addf %27, %61 : vector<7x128xf32>
    %63 = vector.extract_strided_slice %3 {offsets = [1, 0], sizes = [7, 256], strides = [1, 1]} : vector<8x256xbf16> to vector<7x256xbf16>
    %c0_70 = arith.constant 0 : index
    %c1_71 = arith.constant 1 : index
    %c0_72 = arith.constant 0 : index
    %c0_73 = arith.constant 0 : index
    %64 = vector.load %arg2[%c0_70, %c1_71, %c0_72, %c0_73] : memref<2x2x256x128xbf16, #tpu.memory_space<vmem>>, vector<1x1x256x128xbf16>
    %65 = vector.shape_cast %64 : vector<1x1x256x128xbf16> to vector<256x128xbf16>
    %cst_74 = arith.constant dense<0.000000e+00> : vector<7x128xf32>
    %66 = tpu.matmul %63, %65, %cst_74 {dimension_numbers = #tpu.dot_dimension_numbers<[1], [0], [0], [1], [0, 0, 1, 1], [], []>} : vector<7x256xbf16>, vector<256x128xbf16>, vector<7x128xf32> -> vector<7x128xf32>
    %67 = arith.addf %32, %66 : vector<7x128xf32>
    %68 = vector.extract_strided_slice %5 {offsets = [1, 0], sizes = [7, 256], strides = [1, 1]} : vector<8x256xbf16> to vector<7x256xbf16>
    %c0_75 = arith.constant 0 : index
    %c1_76 = arith.constant 1 : index
    %c0_77 = arith.constant 0 : index
    %c0_78 = arith.constant 0 : index
    %69 = vector.load %arg2[%c0_75, %c1_76, %c0_77, %c0_78] : memref<2x2x256x128xbf16, #tpu.memory_space<vmem>>, vector<1x1x256x128xbf16>
    %70 = vector.shape_cast %69 : vector<1x1x256x128xbf16> to vector<256x128xbf16>
    %cst_79 = arith.constant dense<0.000000e+00> : vector<7x128xf32>
    %71 = tpu.matmul %68, %70, %cst_79 {dimension_numbers = #tpu.dot_dimension_numbers<[1], [0], [0], [1], [0, 0, 1, 1], [], []>} : vector<7x256xbf16>, vector<256x128xbf16>, vector<7x128xf32> -> vector<7x128xf32>
    %72 = arith.addf %37, %71 : vector<7x128xf32>
    %73 = vector.extract_strided_slice %7 {offsets = [1, 0], sizes = [7, 256], strides = [1, 1]} : vector<8x256xbf16> to vector<7x256xbf16>
    %c0_80 = arith.constant 0 : index
    %c1_81 = arith.constant 1 : index
    %c0_82 = arith.constant 0 : index
    %c0_83 = arith.constant 0 : index
    %74 = vector.load %arg2[%c0_80, %c1_81, %c0_82, %c0_83] : memref<2x2x256x128xbf16, #tpu.memory_space<vmem>>, vector<1x1x256x128xbf16>
    %75 = vector.shape_cast %74 : vector<1x1x256x128xbf16> to vector<256x128xbf16>
    %cst_84 = arith.constant dense<0.000000e+00> : vector<7x128xf32>
    %76 = tpu.matmul %73, %75, %cst_84 {dimension_numbers = #tpu.dot_dimension_numbers<[1], [0], [0], [1], [0, 0, 1, 1], [], []>} : vector<7x256xbf16>, vector<256x128xbf16>, vector<7x128xf32> -> vector<7x128xf32>
    %77 = arith.addf %42, %76 : vector<7x128xf32>
    %78 = vector.extract_strided_slice %9 {offsets = [1, 0], sizes = [7, 256], strides = [1, 1]} : vector<8x256xbf16> to vector<7x256xbf16>
    %c0_85 = arith.constant 0 : index
    %c1_86 = arith.constant 1 : index
    %c0_87 = arith.constant 0 : index
    %c0_88 = arith.constant 0 : index
    %79 = vector.load %arg2[%c0_85, %c1_86, %c0_87, %c0_88] : memref<2x2x256x128xbf16, #tpu.memory_space<vmem>>, vector<1x1x256x128xbf16>
    %80 = vector.shape_cast %79 : vector<1x1x256x128xbf16> to vector<256x128xbf16>
    %cst_89 = arith.constant dense<0.000000e+00> : vector<7x128xf32>
    %81 = tpu.matmul %78, %80, %cst_89 {dimension_numbers = #tpu.dot_dimension_numbers<[1], [0], [0], [1], [0, 0, 1, 1], [], []>} : vector<7x256xbf16>, vector<256x128xbf16>, vector<7x128xf32> -> vector<7x128xf32>
    %82 = arith.addf %47, %81 : vector<7x128xf32>
    %83 = vector.extract_strided_slice %11 {offsets = [1, 0], sizes = [7, 256], strides = [1, 1]} : vector<8x256xbf16> to vector<7x256xbf16>
    %c0_90 = arith.constant 0 : index
    %c1_91 = arith.constant 1 : index
    %c0_92 = arith.constant 0 : index
    %c0_93 = arith.constant 0 : index
    %84 = vector.load %arg2[%c0_90, %c1_91, %c0_92, %c0_93] : memref<2x2x256x128xbf16, #tpu.memory_space<vmem>>, vector<1x1x256x128xbf16>
    %85 = vector.shape_cast %84 : vector<1x1x256x128xbf16> to vector<256x128xbf16>
    %cst_94 = arith.constant dense<0.000000e+00> : vector<7x128xf32>
    %86 = tpu.matmul %83, %85, %cst_94 {dimension_numbers = #tpu.dot_dimension_numbers<[1], [0], [0], [1], [0, 0, 1, 1], [], []>} : vector<7x256xbf16>, vector<256x128xbf16>, vector<7x128xf32> -> vector<7x128xf32>
    %87 = arith.addf %52, %86 : vector<7x128xf32>
    %88 = vector.extract_strided_slice %13 {offsets = [1, 0], sizes = [7, 256], strides = [1, 1]} : vector<8x256xbf16> to vector<7x256xbf16>
    %c0_95 = arith.constant 0 : index
    %c1_96 = arith.constant 1 : index
    %c0_97 = arith.constant 0 : index
    %c0_98 = arith.constant 0 : index
    %89 = vector.load %arg2[%c0_95, %c1_96, %c0_97, %c0_98] : memref<2x2x256x128xbf16, #tpu.memory_space<vmem>>, vector<1x1x256x128xbf16>
    %90 = vector.shape_cast %89 : vector<1x1x256x128xbf16> to vector<256x128xbf16>
    %cst_99 = arith.constant dense<0.000000e+00> : vector<7x128xf32>
    %91 = tpu.matmul %88, %90, %cst_99 {dimension_numbers = #tpu.dot_dimension_numbers<[1], [0], [0], [1], [0, 0, 1, 1], [], []>} : vector<7x256xbf16>, vector<256x128xbf16>, vector<7x128xf32> -> vector<7x128xf32>
    %92 = arith.addf %57, %91 : vector<7x128xf32>
    %93 = vector.extract_strided_slice %3 {offsets = [0, 0], sizes = [7, 256], strides = [1, 1]} : vector<8x256xbf16> to vector<7x256xbf16>
    %c1_100 = arith.constant 1 : index
    %c0_101 = arith.constant 0 : index
    %c0_102 = arith.constant 0 : index
    %c0_103 = arith.constant 0 : index
    %94 = vector.load %arg2[%c1_100, %c0_101, %c0_102, %c0_103] : memref<2x2x256x128xbf16, #tpu.memory_space<vmem>>, vector<1x1x256x128xbf16>
    %95 = vector.shape_cast %94 : vector<1x1x256x128xbf16> to vector<256x128xbf16>
    %cst_104 = arith.constant dense<0.000000e+00> : vector<7x128xf32>
    %96 = tpu.matmul %93, %95, %cst_104 {dimension_numbers = #tpu.dot_dimension_numbers<[1], [0], [0], [1], [0, 0, 1, 1], [], []>} : vector<7x256xbf16>, vector<256x128xbf16>, vector<7x128xf32> -> vector<7x128xf32>
    %97 = arith.addf %62, %96 : vector<7x128xf32>
    %98 = vector.extract_strided_slice %5 {offsets = [0, 0], sizes = [7, 256], strides = [1, 1]} : vector<8x256xbf16> to vector<7x256xbf16>
    %c1_105 = arith.constant 1 : index
    %c0_106 = arith.constant 0 : index
    %c0_107 = arith.constant 0 : index
    %c0_108 = arith.constant 0 : index
    %99 = vector.load %arg2[%c1_105, %c0_106, %c0_107, %c0_108] : memref<2x2x256x128xbf16, #tpu.memory_space<vmem>>, vector<1x1x256x128xbf16>
    %100 = vector.shape_cast %99 : vector<1x1x256x128xbf16> to vector<256x128xbf16>
    %cst_109 = arith.constant dense<0.000000e+00> : vector<7x128xf32>
    %101 = tpu.matmul %98, %100, %cst_109 {dimension_numbers = #tpu.dot_dimension_numbers<[1], [0], [0], [1], [0, 0, 1, 1], [], []>} : vector<7x256xbf16>, vector<256x128xbf16>, vector<7x128xf32> -> vector<7x128xf32>
    %102 = arith.addf %67, %101 : vector<7x128xf32>
    %103 = vector.extract_strided_slice %7 {offsets = [0, 0], sizes = [7, 256], strides = [1, 1]} : vector<8x256xbf16> to vector<7x256xbf16>
    %c1_110 = arith.constant 1 : index
    %c0_111 = arith.constant 0 : index
    %c0_112 = arith.constant 0 : index
    %c0_113 = arith.constant 0 : index
    %104 = vector.load %arg2[%c1_110, %c0_111, %c0_112, %c0_113] : memref<2x2x256x128xbf16, #tpu.memory_space<vmem>>, vector<1x1x256x128xbf16>
    %105 = vector.shape_cast %104 : vector<1x1x256x128xbf16> to vector<256x128xbf16>
    %cst_114 = arith.constant dense<0.000000e+00> : vector<7x128xf32>
    %106 = tpu.matmul %103, %105, %cst_114 {dimension_numbers = #tpu.dot_dimension_numbers<[1], [0], [0], [1], [0, 0, 1, 1], [], []>} : vector<7x256xbf16>, vector<256x128xbf16>, vector<7x128xf32> -> vector<7x128xf32>
    %107 = arith.addf %72, %106 : vector<7x128xf32>
    %108 = vector.extract_strided_slice %9 {offsets = [0, 0], sizes = [7, 256], strides = [1, 1]} : vector<8x256xbf16> to vector<7x256xbf16>
    %c1_115 = arith.constant 1 : index
    %c0_116 = arith.constant 0 : index
    %c0_117 = arith.constant 0 : index
    %c0_118 = arith.constant 0 : index
    %109 = vector.load %arg2[%c1_115, %c0_116, %c0_117, %c0_118] : memref<2x2x256x128xbf16, #tpu.memory_space<vmem>>, vector<1x1x256x128xbf16>
    %110 = vector.shape_cast %109 : vector<1x1x256x128xbf16> to vector<256x128xbf16>
    %cst_119 = arith.constant dense<0.000000e+00> : vector<7x128xf32>
    %111 = tpu.matmul %108, %110, %cst_119 {dimension_numbers = #tpu.dot_dimension_numbers<[1], [0], [0], [1], [0, 0, 1, 1], [], []>} : vector<7x256xbf16>, vector<256x128xbf16>, vector<7x128xf32> -> vector<7x128xf32>
    %112 = arith.addf %77, %111 : vector<7x128xf32>
    %113 = vector.extract_strided_slice %11 {offsets = [0, 0], sizes = [7, 256], strides = [1, 1]} : vector<8x256xbf16> to vector<7x256xbf16>
    %c1_120 = arith.constant 1 : index
    %c0_121 = arith.constant 0 : index
    %c0_122 = arith.constant 0 : index
    %c0_123 = arith.constant 0 : index
    %114 = vector.load %arg2[%c1_120, %c0_121, %c0_122, %c0_123] : memref<2x2x256x128xbf16, #tpu.memory_space<vmem>>, vector<1x1x256x128xbf16>
    %115 = vector.shape_cast %114 : vector<1x1x256x128xbf16> to vector<256x128xbf16>
    %cst_124 = arith.constant dense<0.000000e+00> : vector<7x128xf32>
    %116 = tpu.matmul %113, %115, %cst_124 {dimension_numbers = #tpu.dot_dimension_numbers<[1], [0], [0], [1], [0, 0, 1, 1], [], []>} : vector<7x256xbf16>, vector<256x128xbf16>, vector<7x128xf32> -> vector<7x128xf32>
    %117 = arith.addf %82, %116 : vector<7x128xf32>
    %118 = vector.extract_strided_slice %13 {offsets = [0, 0], sizes = [7, 256], strides = [1, 1]} : vector<8x256xbf16> to vector<7x256xbf16>
    %c1_125 = arith.constant 1 : index
    %c0_126 = arith.constant 0 : index
    %c0_127 = arith.constant 0 : index
    %c0_128 = arith.constant 0 : index
    %119 = vector.load %arg2[%c1_125, %c0_126, %c0_127, %c0_128] : memref<2x2x256x128xbf16, #tpu.memory_space<vmem>>, vector<1x1x256x128xbf16>
    %120 = vector.shape_cast %119 : vector<1x1x256x128xbf16> to vector<256x128xbf16>
    %cst_129 = arith.constant dense<0.000000e+00> : vector<7x128xf32>
    %121 = tpu.matmul %118, %120, %cst_129 {dimension_numbers = #tpu.dot_dimension_numbers<[1], [0], [0], [1], [0, 0, 1, 1], [], []>} : vector<7x256xbf16>, vector<256x128xbf16>, vector<7x128xf32> -> vector<7x128xf32>
    %122 = arith.addf %87, %121 : vector<7x128xf32>
    %123 = vector.extract_strided_slice %15 {offsets = [0, 0], sizes = [7, 256], strides = [1, 1]} : vector<8x256xbf16> to vector<7x256xbf16>
    %c1_130 = arith.constant 1 : index
    %c0_131 = arith.constant 0 : index
    %c0_132 = arith.constant 0 : index
    %c0_133 = arith.constant 0 : index
    %124 = vector.load %arg2[%c1_130, %c0_131, %c0_132, %c0_133] : memref<2x2x256x128xbf16, #tpu.memory_space<vmem>>, vector<1x1x256x128xbf16>
    %125 = vector.shape_cast %124 : vector<1x1x256x128xbf16> to vector<256x128xbf16>
    %cst_134 = arith.constant dense<0.000000e+00> : vector<7x128xf32>
    %126 = tpu.matmul %123, %125, %cst_134 {dimension_numbers = #tpu.dot_dimension_numbers<[1], [0], [0], [1], [0, 0, 1, 1], [], []>} : vector<7x256xbf16>, vector<256x128xbf16>, vector<7x128xf32> -> vector<7x128xf32>
    %127 = arith.addf %92, %126 : vector<7x128xf32>
    %128 = vector.extract_strided_slice %3 {offsets = [1, 0], sizes = [7, 256], strides = [1, 1]} : vector<8x256xbf16> to vector<7x256xbf16>
    %c1_135 = arith.constant 1 : index
    %c1_136 = arith.constant 1 : index
    %c0_137 = arith.constant 0 : index
    %c0_138 = arith.constant 0 : index
    %129 = vector.load %arg2[%c1_135, %c1_136, %c0_137, %c0_138] : memref<2x2x256x128xbf16, #tpu.memory_space<vmem>>, vector<1x1x256x128xbf16>
    %130 = vector.shape_cast %129 : vector<1x1x256x128xbf16> to vector<256x128xbf16>
    %cst_139 = arith.constant dense<0.000000e+00> : vector<7x128xf32>
    %131 = tpu.matmul %128, %130, %cst_139 {dimension_numbers = #tpu.dot_dimension_numbers<[1], [0], [0], [1], [0, 0, 1, 1], [], []>} : vector<7x256xbf16>, vector<256x128xbf16>, vector<7x128xf32> -> vector<7x128xf32>
    %132 = arith.addf %97, %131 : vector<7x128xf32>
    %133 = vector.extract_strided_slice %5 {offsets = [1, 0], sizes = [7, 256], strides = [1, 1]} : vector<8x256xbf16> to vector<7x256xbf16>
    %c1_140 = arith.constant 1 : index
    %c1_141 = arith.constant 1 : index
    %c0_142 = arith.constant 0 : index
    %c0_143 = arith.constant 0 : index
    %134 = vector.load %arg2[%c1_140, %c1_141, %c0_142, %c0_143] : memref<2x2x256x128xbf16, #tpu.memory_space<vmem>>, vector<1x1x256x128xbf16>
    %135 = vector.shape_cast %134 : vector<1x1x256x128xbf16> to vector<256x128xbf16>
    %cst_144 = arith.constant dense<0.000000e+00> : vector<7x128xf32>
    %136 = tpu.matmul %133, %135, %cst_144 {dimension_numbers = #tpu.dot_dimension_numbers<[1], [0], [0], [1], [0, 0, 1, 1], [], []>} : vector<7x256xbf16>, vector<256x128xbf16>, vector<7x128xf32> -> vector<7x128xf32>
    %137 = arith.addf %102, %136 : vector<7x128xf32>
    %138 = vector.extract_strided_slice %7 {offsets = [1, 0], sizes = [7, 256], strides = [1, 1]} : vector<8x256xbf16> to vector<7x256xbf16>
    %c1_145 = arith.constant 1 : index
    %c1_146 = arith.constant 1 : index
    %c0_147 = arith.constant 0 : index
    %c0_148 = arith.constant 0 : index
    %139 = vector.load %arg2[%c1_145, %c1_146, %c0_147, %c0_148] : memref<2x2x256x128xbf16, #tpu.memory_space<vmem>>, vector<1x1x256x128xbf16>
    %140 = vector.shape_cast %139 : vector<1x1x256x128xbf16> to vector<256x128xbf16>
    %cst_149 = arith.constant dense<0.000000e+00> : vector<7x128xf32>
    %141 = tpu.matmul %138, %140, %cst_149 {dimension_numbers = #tpu.dot_dimension_numbers<[1], [0], [0], [1], [0, 0, 1, 1], [], []>} : vector<7x256xbf16>, vector<256x128xbf16>, vector<7x128xf32> -> vector<7x128xf32>
    %142 = arith.addf %107, %141 : vector<7x128xf32>
    %143 = vector.extract_strided_slice %9 {offsets = [1, 0], sizes = [7, 256], strides = [1, 1]} : vector<8x256xbf16> to vector<7x256xbf16>
    %c1_150 = arith.constant 1 : index
    %c1_151 = arith.constant 1 : index
    %c0_152 = arith.constant 0 : index
    %c0_153 = arith.constant 0 : index
    %144 = vector.load %arg2[%c1_150, %c1_151, %c0_152, %c0_153] : memref<2x2x256x128xbf16, #tpu.memory_space<vmem>>, vector<1x1x256x128xbf16>
    %145 = vector.shape_cast %144 : vector<1x1x256x128xbf16> to vector<256x128xbf16>
    %cst_154 = arith.constant dense<0.000000e+00> : vector<7x128xf32>
    %146 = tpu.matmul %143, %145, %cst_154 {dimension_numbers = #tpu.dot_dimension_numbers<[1], [0], [0], [1], [0, 0, 1, 1], [], []>} : vector<7x256xbf16>, vector<256x128xbf16>, vector<7x128xf32> -> vector<7x128xf32>
    %147 = arith.addf %112, %146 : vector<7x128xf32>
    %148 = vector.extract_strided_slice %11 {offsets = [1, 0], sizes = [7, 256], strides = [1, 1]} : vector<8x256xbf16> to vector<7x256xbf16>
    %c1_155 = arith.constant 1 : index
    %c1_156 = arith.constant 1 : index
    %c0_157 = arith.constant 0 : index
    %c0_158 = arith.constant 0 : index
    %149 = vector.load %arg2[%c1_155, %c1_156, %c0_157, %c0_158] : memref<2x2x256x128xbf16, #tpu.memory_space<vmem>>, vector<1x1x256x128xbf16>
    %150 = vector.shape_cast %149 : vector<1x1x256x128xbf16> to vector<256x128xbf16>
    %cst_159 = arith.constant dense<0.000000e+00> : vector<7x128xf32>
    %151 = tpu.matmul %148, %150, %cst_159 {dimension_numbers = #tpu.dot_dimension_numbers<[1], [0], [0], [1], [0, 0, 1, 1], [], []>} : vector<7x256xbf16>, vector<256x128xbf16>, vector<7x128xf32> -> vector<7x128xf32>
    %152 = arith.addf %117, %151 : vector<7x128xf32>
    %153 = vector.extract_strided_slice %13 {offsets = [1, 0], sizes = [7, 256], strides = [1, 1]} : vector<8x256xbf16> to vector<7x256xbf16>
    %c1_160 = arith.constant 1 : index
    %c1_161 = arith.constant 1 : index
    %c0_162 = arith.constant 0 : index
    %c0_163 = arith.constant 0 : index
    %154 = vector.load %arg2[%c1_160, %c1_161, %c0_162, %c0_163] : memref<2x2x256x128xbf16, #tpu.memory_space<vmem>>, vector<1x1x256x128xbf16>
    %155 = vector.shape_cast %154 : vector<1x1x256x128xbf16> to vector<256x128xbf16>
    %cst_164 = arith.constant dense<0.000000e+00> : vector<7x128xf32>
    %156 = tpu.matmul %153, %155, %cst_164 {dimension_numbers = #tpu.dot_dimension_numbers<[1], [0], [0], [1], [0, 0, 1, 1], [], []>} : vector<7x256xbf16>, vector<256x128xbf16>, vector<7x128xf32> -> vector<7x128xf32>
    %157 = arith.addf %122, %156 : vector<7x128xf32>
    %158 = vector.extract_strided_slice %15 {offsets = [1, 0], sizes = [7, 256], strides = [1, 1]} : vector<8x256xbf16> to vector<7x256xbf16>
    %c1_165 = arith.constant 1 : index
    %c1_166 = arith.constant 1 : index
    %c0_167 = arith.constant 0 : index
    %c0_168 = arith.constant 0 : index
    %159 = vector.load %arg2[%c1_165, %c1_166, %c0_167, %c0_168] : memref<2x2x256x128xbf16, #tpu.memory_space<vmem>>, vector<1x1x256x128xbf16>
    %160 = vector.shape_cast %159 : vector<1x1x256x128xbf16> to vector<256x128xbf16>
    %cst_169 = arith.constant dense<0.000000e+00> : vector<7x128xf32>
    %161 = tpu.matmul %158, %160, %cst_169 {dimension_numbers = #tpu.dot_dimension_numbers<[1], [0], [0], [1], [0, 0, 1, 1], [], []>} : vector<7x256xbf16>, vector<256x128xbf16>, vector<7x128xf32> -> vector<7x128xf32>
    %162 = arith.addf %127, %161 : vector<7x128xf32>
    %c0_170 = arith.constant 0 : index
    %c0_171 = arith.constant 0 : index
    %163 = vector.load %arg3[%c0_170, %c0_171] : memref<1x128xf32, #tpu.memory_space<vmem>>, vector<1x128xf32>
    %164 = vector.broadcast %163 : vector<1x128xf32> to vector<7x128xf32>
    %165 = arith.addf %132, %164 : vector<7x128xf32>
    %cst_172 = arith.constant 0.000000e+00 : f32
    %166 = vector.broadcast %cst_172 : f32 to vector<7x128xf32>
    %167 = arith.cmpf ogt, %165, %166 : vector<7x128xf32>
    %cst_173 = arith.constant 2.000000e-01 : f32
    %168 = vector.broadcast %cst_173 : f32 to vector<7x128xf32>
    %169 = arith.mulf %168, %165 : vector<7x128xf32>
    %170 = arith.select %167, %165, %169 : vector<7x128xi1>, vector<7x128xf32>
    %171 = arith.truncf %170 : vector<7x128xf32> to vector<7x128xbf16>
    %c0_174 = arith.constant 0 : index
    %c0_175 = arith.constant 0 : index
    %172 = vector.load %arg3[%c0_174, %c0_175] : memref<1x128xf32, #tpu.memory_space<vmem>>, vector<1x128xf32>
    %173 = vector.broadcast %172 : vector<1x128xf32> to vector<7x128xf32>
    %174 = arith.addf %137, %173 : vector<7x128xf32>
    %cst_176 = arith.constant 0.000000e+00 : f32
    %175 = vector.broadcast %cst_176 : f32 to vector<7x128xf32>
    %176 = arith.cmpf ogt, %174, %175 : vector<7x128xf32>
    %cst_177 = arith.constant 2.000000e-01 : f32
    %177 = vector.broadcast %cst_177 : f32 to vector<7x128xf32>
    %178 = arith.mulf %177, %174 : vector<7x128xf32>
    %179 = arith.select %176, %174, %178 : vector<7x128xi1>, vector<7x128xf32>
    %180 = arith.truncf %179 : vector<7x128xf32> to vector<7x128xbf16>
    %c0_178 = arith.constant 0 : index
    %c0_179 = arith.constant 0 : index
    %181 = vector.load %arg3[%c0_178, %c0_179] : memref<1x128xf32, #tpu.memory_space<vmem>>, vector<1x128xf32>
    %182 = vector.broadcast %181 : vector<1x128xf32> to vector<7x128xf32>
    %183 = arith.addf %142, %182 : vector<7x128xf32>
    %cst_180 = arith.constant 0.000000e+00 : f32
    %184 = vector.broadcast %cst_180 : f32 to vector<7x128xf32>
    %185 = arith.cmpf ogt, %183, %184 : vector<7x128xf32>
    %cst_181 = arith.constant 2.000000e-01 : f32
    %186 = vector.broadcast %cst_181 : f32 to vector<7x128xf32>
    %187 = arith.mulf %186, %183 : vector<7x128xf32>
    %188 = arith.select %185, %183, %187 : vector<7x128xi1>, vector<7x128xf32>
    %189 = arith.truncf %188 : vector<7x128xf32> to vector<7x128xbf16>
    %c0_182 = arith.constant 0 : index
    %c0_183 = arith.constant 0 : index
    %190 = vector.load %arg3[%c0_182, %c0_183] : memref<1x128xf32, #tpu.memory_space<vmem>>, vector<1x128xf32>
    %191 = vector.broadcast %190 : vector<1x128xf32> to vector<7x128xf32>
    %192 = arith.addf %147, %191 : vector<7x128xf32>
    %cst_184 = arith.constant 0.000000e+00 : f32
    %193 = vector.broadcast %cst_184 : f32 to vector<7x128xf32>
    %194 = arith.cmpf ogt, %192, %193 : vector<7x128xf32>
    %cst_185 = arith.constant 2.000000e-01 : f32
    %195 = vector.broadcast %cst_185 : f32 to vector<7x128xf32>
    %196 = arith.mulf %195, %192 : vector<7x128xf32>
    %197 = arith.select %194, %192, %196 : vector<7x128xi1>, vector<7x128xf32>
    %198 = arith.truncf %197 : vector<7x128xf32> to vector<7x128xbf16>
    %c0_186 = arith.constant 0 : index
    %c0_187 = arith.constant 0 : index
    %199 = vector.load %arg3[%c0_186, %c0_187] : memref<1x128xf32, #tpu.memory_space<vmem>>, vector<1x128xf32>
    %200 = vector.broadcast %199 : vector<1x128xf32> to vector<7x128xf32>
    %201 = arith.addf %152, %200 : vector<7x128xf32>
    %cst_188 = arith.constant 0.000000e+00 : f32
    %202 = vector.broadcast %cst_188 : f32 to vector<7x128xf32>
    %203 = arith.cmpf ogt, %201, %202 : vector<7x128xf32>
    %cst_189 = arith.constant 2.000000e-01 : f32
    %204 = vector.broadcast %cst_189 : f32 to vector<7x128xf32>
    %205 = arith.mulf %204, %201 : vector<7x128xf32>
    %206 = arith.select %203, %201, %205 : vector<7x128xi1>, vector<7x128xf32>
    %207 = arith.truncf %206 : vector<7x128xf32> to vector<7x128xbf16>
    %c0_190 = arith.constant 0 : index
    %c0_191 = arith.constant 0 : index
    %208 = vector.load %arg3[%c0_190, %c0_191] : memref<1x128xf32, #tpu.memory_space<vmem>>, vector<1x128xf32>
    %209 = vector.broadcast %208 : vector<1x128xf32> to vector<7x128xf32>
    %210 = arith.addf %157, %209 : vector<7x128xf32>
    %cst_192 = arith.constant 0.000000e+00 : f32
    %211 = vector.broadcast %cst_192 : f32 to vector<7x128xf32>
    %212 = arith.cmpf ogt, %210, %211 : vector<7x128xf32>
    %cst_193 = arith.constant 2.000000e-01 : f32
    %213 = vector.broadcast %cst_193 : f32 to vector<7x128xf32>
    %214 = arith.mulf %213, %210 : vector<7x128xf32>
    %215 = arith.select %212, %210, %214 : vector<7x128xi1>, vector<7x128xf32>
    %216 = arith.truncf %215 : vector<7x128xf32> to vector<7x128xbf16>
    %c0_194 = arith.constant 0 : index
    %c0_195 = arith.constant 0 : index
    %217 = vector.load %arg3[%c0_194, %c0_195] : memref<1x128xf32, #tpu.memory_space<vmem>>, vector<1x128xf32>
    %218 = vector.broadcast %217 : vector<1x128xf32> to vector<7x128xf32>
    %219 = arith.addf %162, %218 : vector<7x128xf32>
    %cst_196 = arith.constant 0.000000e+00 : f32
    %220 = vector.broadcast %cst_196 : f32 to vector<7x128xf32>
    %221 = arith.cmpf ogt, %219, %220 : vector<7x128xf32>
    %cst_197 = arith.constant 2.000000e-01 : f32
    %222 = vector.broadcast %cst_197 : f32 to vector<7x128xf32>
    %223 = arith.mulf %222, %219 : vector<7x128xf32>
    %224 = arith.select %221, %219, %223 : vector<7x128xi1>, vector<7x128xf32>
    %225 = arith.truncf %224 : vector<7x128xf32> to vector<7x128xbf16>
    %c0_198 = arith.constant 0 : index
    %c0_199 = arith.constant 0 : index
    %226 = vector.load %arg6[%c0_198, %c0_199] : memref<8x7xbf16, #tpu.memory_space<vmem>>, vector<8x7xbf16>
    %cst_200 = arith.constant 0.000000e+00 : bf16
    %227 = vector.broadcast %cst_200 : bf16 to vector<8x128xbf16>
    %cst_201 = arith.constant dense<0.000000e+00> : vector<8x128xf32>
    %228 = tpu.matmul %226, %171, %cst_201 {dimension_numbers = #tpu.dot_dimension_numbers<[1], [0], [0], [1], [0, 0, 1, 1], [], []>} : vector<8x7xbf16>, vector<7x128xbf16>, vector<8x128xf32> -> vector<8x128xf32>
    %229 = arith.truncf %228 : vector<8x128xf32> to vector<8x128xbf16>
    %cst_202 = arith.constant dense<0.000000e+00> : vector<8x128xf32>
    %230 = tpu.matmul %226, %180, %cst_202 {dimension_numbers = #tpu.dot_dimension_numbers<[1], [0], [0], [1], [0, 0, 1, 1], [], []>} : vector<8x7xbf16>, vector<7x128xbf16>, vector<8x128xf32> -> vector<8x128xf32>
    %231 = arith.truncf %230 : vector<8x128xf32> to vector<8x128xbf16>
    %cst_203 = arith.constant dense<0.000000e+00> : vector<8x128xf32>
    %232 = tpu.matmul %226, %189, %cst_203 {dimension_numbers = #tpu.dot_dimension_numbers<[1], [0], [0], [1], [0, 0, 1, 1], [], []>} : vector<8x7xbf16>, vector<7x128xbf16>, vector<8x128xf32> -> vector<8x128xf32>
    %233 = arith.truncf %232 : vector<8x128xf32> to vector<8x128xbf16>
    %cst_204 = arith.constant dense<0.000000e+00> : vector<8x128xf32>
    %234 = tpu.matmul %226, %198, %cst_204 {dimension_numbers = #tpu.dot_dimension_numbers<[1], [0], [0], [1], [0, 0, 1, 1], [], []>} : vector<8x7xbf16>, vector<7x128xbf16>, vector<8x128xf32> -> vector<8x128xf32>
    %235 = arith.truncf %234 : vector<8x128xf32> to vector<8x128xbf16>
    %cst_205 = arith.constant dense<0.000000e+00> : vector<8x128xf32>
    %236 = tpu.matmul %226, %207, %cst_205 {dimension_numbers = #tpu.dot_dimension_numbers<[1], [0], [0], [1], [0, 0, 1, 1], [], []>} : vector<8x7xbf16>, vector<7x128xbf16>, vector<8x128xf32> -> vector<8x128xf32>
    %237 = arith.truncf %236 : vector<8x128xf32> to vector<8x128xbf16>
    %cst_206 = arith.constant dense<0.000000e+00> : vector<8x128xf32>
    %238 = tpu.matmul %226, %216, %cst_206 {dimension_numbers = #tpu.dot_dimension_numbers<[1], [0], [0], [1], [0, 0, 1, 1], [], []>} : vector<8x7xbf16>, vector<7x128xbf16>, vector<8x128xf32> -> vector<8x128xf32>
    %239 = arith.truncf %238 : vector<8x128xf32> to vector<8x128xbf16>
    %cst_207 = arith.constant dense<0.000000e+00> : vector<8x128xf32>
    %240 = tpu.matmul %226, %225, %cst_207 {dimension_numbers = #tpu.dot_dimension_numbers<[1], [0], [0], [1], [0, 0, 1, 1], [], []>} : vector<8x7xbf16>, vector<7x128xbf16>, vector<8x128xf32> -> vector<8x128xf32>
    %241 = arith.truncf %240 : vector<8x128xf32> to vector<8x128xbf16>
    %242 = vector.extract_strided_slice %227 {offsets = [0, 0], sizes = [4, 128], strides = [1, 1]} : vector<8x128xbf16> to vector<4x128xbf16>
    %243 = vector.extract_strided_slice %227 {offsets = [4, 0], sizes = [4, 128], strides = [1, 1]} : vector<8x128xbf16> to vector<4x128xbf16>
    %244 = vector.extract_strided_slice %229 {offsets = [0, 0], sizes = [4, 128], strides = [1, 1]} : vector<8x128xbf16> to vector<4x128xbf16>
    %245 = vector.extract_strided_slice %229 {offsets = [4, 0], sizes = [4, 128], strides = [1, 1]} : vector<8x128xbf16> to vector<4x128xbf16>
    %246 = tpu.concatenate %242, %243, %244, %245 in 1 : vector<4x128xbf16>, vector<4x128xbf16>, vector<4x128xbf16>, vector<4x128xbf16> -> vector<4x512xbf16>
    %247 = vector.extract_strided_slice %231 {offsets = [0, 0], sizes = [4, 128], strides = [1, 1]} : vector<8x128xbf16> to vector<4x128xbf16>
    %248 = vector.extract_strided_slice %231 {offsets = [4, 0], sizes = [4, 128], strides = [1, 1]} : vector<8x128xbf16> to vector<4x128xbf16>
    %249 = vector.extract_strided_slice %233 {offsets = [0, 0], sizes = [4, 128], strides = [1, 1]} : vector<8x128xbf16> to vector<4x128xbf16>
    %250 = vector.extract_strided_slice %233 {offsets = [4, 0], sizes = [4, 128], strides = [1, 1]} : vector<8x128xbf16> to vector<4x128xbf16>
    %251 = tpu.concatenate %247, %248, %249, %250 in 1 : vector<4x128xbf16>, vector<4x128xbf16>, vector<4x128xbf16>, vector<4x128xbf16> -> vector<4x512xbf16>
    %252 = vector.extract_strided_slice %235 {offsets = [0, 0], sizes = [4, 128], strides = [1, 1]} : vector<8x128xbf16> to vector<4x128xbf16>
    %253 = vector.extract_strided_slice %235 {offsets = [4, 0], sizes = [4, 128], strides = [1, 1]} : vector<8x128xbf16> to vector<4x128xbf16>
    %254 = vector.extract_strided_slice %237 {offsets = [0, 0], sizes = [4, 128], strides = [1, 1]} : vector<8x128xbf16> to vector<4x128xbf16>
    %255 = vector.extract_strided_slice %237 {offsets = [4, 0], sizes = [4, 128], strides = [1, 1]} : vector<8x128xbf16> to vector<4x128xbf16>
    %256 = tpu.concatenate %252, %253, %254, %255 in 1 : vector<4x128xbf16>, vector<4x128xbf16>, vector<4x128xbf16>, vector<4x128xbf16> -> vector<4x512xbf16>
    %257 = vector.extract_strided_slice %239 {offsets = [0, 0], sizes = [4, 128], strides = [1, 1]} : vector<8x128xbf16> to vector<4x128xbf16>
    %258 = vector.extract_strided_slice %239 {offsets = [4, 0], sizes = [4, 128], strides = [1, 1]} : vector<8x128xbf16> to vector<4x128xbf16>
    %259 = vector.extract_strided_slice %241 {offsets = [0, 0], sizes = [4, 128], strides = [1, 1]} : vector<8x128xbf16> to vector<4x128xbf16>
    %260 = vector.extract_strided_slice %241 {offsets = [4, 0], sizes = [4, 128], strides = [1, 1]} : vector<8x128xbf16> to vector<4x128xbf16>
    %261 = tpu.concatenate %257, %258, %259, %260 in 1 : vector<4x128xbf16>, vector<4x128xbf16>, vector<4x128xbf16>, vector<4x128xbf16> -> vector<4x512xbf16>
    %cst_208 = arith.constant 0.000000e+00 : f32
    %262 = vector.broadcast %cst_208 : f32 to vector<3x256xf32>
    %cst_209 = arith.constant 0.000000e+00 : f32
    %263 = vector.broadcast %cst_209 : f32 to vector<3x256xf32>
    %cst_210 = arith.constant 0.000000e+00 : f32
    %264 = vector.broadcast %cst_210 : f32 to vector<3x256xf32>
    %265 = vector.extract_strided_slice %246 {offsets = [0, 0], sizes = [3, 512], strides = [1, 1]} : vector<4x512xbf16> to vector<3x512xbf16>
    %c0_211 = arith.constant 0 : index
    %c0_212 = arith.constant 0 : index
    %c0_213 = arith.constant 0 : index
    %c0_214 = arith.constant 0 : index
    %266 = vector.load %arg4[%c0_211, %c0_212, %c0_213, %c0_214] : memref<2x2x512x256xbf16, #tpu.memory_space<vmem>>, vector<1x1x512x256xbf16>
    %267 = vector.shape_cast %266 : vector<1x1x512x256xbf16> to vector<512x256xbf16>
    %cst_215 = arith.constant dense<0.000000e+00> : vector<3x256xf32>
    %268 = tpu.matmul %265, %267, %cst_215 {dimension_numbers = #tpu.dot_dimension_numbers<[1], [0], [0], [1], [0, 0, 1, 1], [], []>} : vector<3x512xbf16>, vector<512x256xbf16>, vector<3x256xf32> -> vector<3x256xf32>
    %269 = arith.addf %262, %268 : vector<3x256xf32>
    %270 = vector.extract_strided_slice %251 {offsets = [0, 0], sizes = [3, 512], strides = [1, 1]} : vector<4x512xbf16> to vector<3x512xbf16>
    %c0_216 = arith.constant 0 : index
    %c0_217 = arith.constant 0 : index
    %c0_218 = arith.constant 0 : index
    %c0_219 = arith.constant 0 : index
    %271 = vector.load %arg4[%c0_216, %c0_217, %c0_218, %c0_219] : memref<2x2x512x256xbf16, #tpu.memory_space<vmem>>, vector<1x1x512x256xbf16>
    %272 = vector.shape_cast %271 : vector<1x1x512x256xbf16> to vector<512x256xbf16>
    %cst_220 = arith.constant dense<0.000000e+00> : vector<3x256xf32>
    %273 = tpu.matmul %270, %272, %cst_220 {dimension_numbers = #tpu.dot_dimension_numbers<[1], [0], [0], [1], [0, 0, 1, 1], [], []>} : vector<3x512xbf16>, vector<512x256xbf16>, vector<3x256xf32> -> vector<3x256xf32>
    %274 = arith.addf %263, %273 : vector<3x256xf32>
    %275 = vector.extract_strided_slice %256 {offsets = [0, 0], sizes = [3, 512], strides = [1, 1]} : vector<4x512xbf16> to vector<3x512xbf16>
    %c0_221 = arith.constant 0 : index
    %c0_222 = arith.constant 0 : index
    %c0_223 = arith.constant 0 : index
    %c0_224 = arith.constant 0 : index
    %276 = vector.load %arg4[%c0_221, %c0_222, %c0_223, %c0_224] : memref<2x2x512x256xbf16, #tpu.memory_space<vmem>>, vector<1x1x512x256xbf16>
    %277 = vector.shape_cast %276 : vector<1x1x512x256xbf16> to vector<512x256xbf16>
    %cst_225 = arith.constant dense<0.000000e+00> : vector<3x256xf32>
    %278 = tpu.matmul %275, %277, %cst_225 {dimension_numbers = #tpu.dot_dimension_numbers<[1], [0], [0], [1], [0, 0, 1, 1], [], []>} : vector<3x512xbf16>, vector<512x256xbf16>, vector<3x256xf32> -> vector<3x256xf32>
    %279 = arith.addf %264, %278 : vector<3x256xf32>
    %280 = vector.extract_strided_slice %246 {offsets = [1, 0], sizes = [3, 512], strides = [1, 1]} : vector<4x512xbf16> to vector<3x512xbf16>
    %c0_226 = arith.constant 0 : index
    %c1_227 = arith.constant 1 : index
    %c0_228 = arith.constant 0 : index
    %c0_229 = arith.constant 0 : index
    %281 = vector.load %arg4[%c0_226, %c1_227, %c0_228, %c0_229] : memref<2x2x512x256xbf16, #tpu.memory_space<vmem>>, vector<1x1x512x256xbf16>
    %282 = vector.shape_cast %281 : vector<1x1x512x256xbf16> to vector<512x256xbf16>
    %cst_230 = arith.constant dense<0.000000e+00> : vector<3x256xf32>
    %283 = tpu.matmul %280, %282, %cst_230 {dimension_numbers = #tpu.dot_dimension_numbers<[1], [0], [0], [1], [0, 0, 1, 1], [], []>} : vector<3x512xbf16>, vector<512x256xbf16>, vector<3x256xf32> -> vector<3x256xf32>
    %284 = arith.addf %269, %283 : vector<3x256xf32>
    %285 = vector.extract_strided_slice %251 {offsets = [1, 0], sizes = [3, 512], strides = [1, 1]} : vector<4x512xbf16> to vector<3x512xbf16>
    %c0_231 = arith.constant 0 : index
    %c1_232 = arith.constant 1 : index
    %c0_233 = arith.constant 0 : index
    %c0_234 = arith.constant 0 : index
    %286 = vector.load %arg4[%c0_231, %c1_232, %c0_233, %c0_234] : memref<2x2x512x256xbf16, #tpu.memory_space<vmem>>, vector<1x1x512x256xbf16>
    %287 = vector.shape_cast %286 : vector<1x1x512x256xbf16> to vector<512x256xbf16>
    %cst_235 = arith.constant dense<0.000000e+00> : vector<3x256xf32>
    %288 = tpu.matmul %285, %287, %cst_235 {dimension_numbers = #tpu.dot_dimension_numbers<[1], [0], [0], [1], [0, 0, 1, 1], [], []>} : vector<3x512xbf16>, vector<512x256xbf16>, vector<3x256xf32> -> vector<3x256xf32>
    %289 = arith.addf %274, %288 : vector<3x256xf32>
    %290 = vector.extract_strided_slice %256 {offsets = [1, 0], sizes = [3, 512], strides = [1, 1]} : vector<4x512xbf16> to vector<3x512xbf16>
    %c0_236 = arith.constant 0 : index
    %c1_237 = arith.constant 1 : index
    %c0_238 = arith.constant 0 : index
    %c0_239 = arith.constant 0 : index
    %291 = vector.load %arg4[%c0_236, %c1_237, %c0_238, %c0_239] : memref<2x2x512x256xbf16, #tpu.memory_space<vmem>>, vector<1x1x512x256xbf16>
    %292 = vector.shape_cast %291 : vector<1x1x512x256xbf16> to vector<512x256xbf16>
    %cst_240 = arith.constant dense<0.000000e+00> : vector<3x256xf32>
    %293 = tpu.matmul %290, %292, %cst_240 {dimension_numbers = #tpu.dot_dimension_numbers<[1], [0], [0], [1], [0, 0, 1, 1], [], []>} : vector<3x512xbf16>, vector<512x256xbf16>, vector<3x256xf32> -> vector<3x256xf32>
    %294 = arith.addf %279, %293 : vector<3x256xf32>
    %295 = vector.extract_strided_slice %251 {offsets = [0, 0], sizes = [3, 512], strides = [1, 1]} : vector<4x512xbf16> to vector<3x512xbf16>
    %c1_241 = arith.constant 1 : index
    %c0_242 = arith.constant 0 : index
    %c0_243 = arith.constant 0 : index
    %c0_244 = arith.constant 0 : index
    %296 = vector.load %arg4[%c1_241, %c0_242, %c0_243, %c0_244] : memref<2x2x512x256xbf16, #tpu.memory_space<vmem>>, vector<1x1x512x256xbf16>
    %297 = vector.shape_cast %296 : vector<1x1x512x256xbf16> to vector<512x256xbf16>
    %cst_245 = arith.constant dense<0.000000e+00> : vector<3x256xf32>
    %298 = tpu.matmul %295, %297, %cst_245 {dimension_numbers = #tpu.dot_dimension_numbers<[1], [0], [0], [1], [0, 0, 1, 1], [], []>} : vector<3x512xbf16>, vector<512x256xbf16>, vector<3x256xf32> -> vector<3x256xf32>
    %299 = arith.addf %284, %298 : vector<3x256xf32>
    %300 = vector.extract_strided_slice %256 {offsets = [0, 0], sizes = [3, 512], strides = [1, 1]} : vector<4x512xbf16> to vector<3x512xbf16>
    %c1_246 = arith.constant 1 : index
    %c0_247 = arith.constant 0 : index
    %c0_248 = arith.constant 0 : index
    %c0_249 = arith.constant 0 : index
    %301 = vector.load %arg4[%c1_246, %c0_247, %c0_248, %c0_249] : memref<2x2x512x256xbf16, #tpu.memory_space<vmem>>, vector<1x1x512x256xbf16>
    %302 = vector.shape_cast %301 : vector<1x1x512x256xbf16> to vector<512x256xbf16>
    %cst_250 = arith.constant dense<0.000000e+00> : vector<3x256xf32>
    %303 = tpu.matmul %300, %302, %cst_250 {dimension_numbers = #tpu.dot_dimension_numbers<[1], [0], [0], [1], [0, 0, 1, 1], [], []>} : vector<3x512xbf16>, vector<512x256xbf16>, vector<3x256xf32> -> vector<3x256xf32>
    %304 = arith.addf %289, %303 : vector<3x256xf32>
    %305 = vector.extract_strided_slice %261 {offsets = [0, 0], sizes = [3, 512], strides = [1, 1]} : vector<4x512xbf16> to vector<3x512xbf16>
    %c1_251 = arith.constant 1 : index
    %c0_252 = arith.constant 0 : index
    %c0_253 = arith.constant 0 : index
    %c0_254 = arith.constant 0 : index
    %306 = vector.load %arg4[%c1_251, %c0_252, %c0_253, %c0_254] : memref<2x2x512x256xbf16, #tpu.memory_space<vmem>>, vector<1x1x512x256xbf16>
    %307 = vector.shape_cast %306 : vector<1x1x512x256xbf16> to vector<512x256xbf16>
    %cst_255 = arith.constant dense<0.000000e+00> : vector<3x256xf32>
    %308 = tpu.matmul %305, %307, %cst_255 {dimension_numbers = #tpu.dot_dimension_numbers<[1], [0], [0], [1], [0, 0, 1, 1], [], []>} : vector<3x512xbf16>, vector<512x256xbf16>, vector<3x256xf32> -> vector<3x256xf32>
    %309 = arith.addf %294, %308 : vector<3x256xf32>
    %310 = vector.extract_strided_slice %251 {offsets = [1, 0], sizes = [3, 512], strides = [1, 1]} : vector<4x512xbf16> to vector<3x512xbf16>
    %c1_256 = arith.constant 1 : index
    %c1_257 = arith.constant 1 : index
    %c0_258 = arith.constant 0 : index
    %c0_259 = arith.constant 0 : index
    %311 = vector.load %arg4[%c1_256, %c1_257, %c0_258, %c0_259] : memref<2x2x512x256xbf16, #tpu.memory_space<vmem>>, vector<1x1x512x256xbf16>
    %312 = vector.shape_cast %311 : vector<1x1x512x256xbf16> to vector<512x256xbf16>
    %cst_260 = arith.constant dense<0.000000e+00> : vector<3x256xf32>
    %313 = tpu.matmul %310, %312, %cst_260 {dimension_numbers = #tpu.dot_dimension_numbers<[1], [0], [0], [1], [0, 0, 1, 1], [], []>} : vector<3x512xbf16>, vector<512x256xbf16>, vector<3x256xf32> -> vector<3x256xf32>
    %314 = arith.addf %299, %313 : vector<3x256xf32>
    %315 = vector.extract_strided_slice %256 {offsets = [1, 0], sizes = [3, 512], strides = [1, 1]} : vector<4x512xbf16> to vector<3x512xbf16>
    %c1_261 = arith.constant 1 : index
    %c1_262 = arith.constant 1 : index
    %c0_263 = arith.constant 0 : index
    %c0_264 = arith.constant 0 : index
    %316 = vector.load %arg4[%c1_261, %c1_262, %c0_263, %c0_264] : memref<2x2x512x256xbf16, #tpu.memory_space<vmem>>, vector<1x1x512x256xbf16>
    %317 = vector.shape_cast %316 : vector<1x1x512x256xbf16> to vector<512x256xbf16>
    %cst_265 = arith.constant dense<0.000000e+00> : vector<3x256xf32>
    %318 = tpu.matmul %315, %317, %cst_265 {dimension_numbers = #tpu.dot_dimension_numbers<[1], [0], [0], [1], [0, 0, 1, 1], [], []>} : vector<3x512xbf16>, vector<512x256xbf16>, vector<3x256xf32> -> vector<3x256xf32>
    %319 = arith.addf %304, %318 : vector<3x256xf32>
    %320 = vector.extract_strided_slice %261 {offsets = [1, 0], sizes = [3, 512], strides = [1, 1]} : vector<4x512xbf16> to vector<3x512xbf16>
    %c1_266 = arith.constant 1 : index
    %c1_267 = arith.constant 1 : index
    %c0_268 = arith.constant 0 : index
    %c0_269 = arith.constant 0 : index
    %321 = vector.load %arg4[%c1_266, %c1_267, %c0_268, %c0_269] : memref<2x2x512x256xbf16, #tpu.memory_space<vmem>>, vector<1x1x512x256xbf16>
    %322 = vector.shape_cast %321 : vector<1x1x512x256xbf16> to vector<512x256xbf16>
    %cst_270 = arith.constant dense<0.000000e+00> : vector<3x256xf32>
    %323 = tpu.matmul %320, %322, %cst_270 {dimension_numbers = #tpu.dot_dimension_numbers<[1], [0], [0], [1], [0, 0, 1, 1], [], []>} : vector<3x512xbf16>, vector<512x256xbf16>, vector<3x256xf32> -> vector<3x256xf32>
    %324 = arith.addf %309, %323 : vector<3x256xf32>
    %c0_271 = arith.constant 0 : index
    %c0_272 = arith.constant 0 : index
    %325 = vector.load %arg5[%c0_271, %c0_272] : memref<1x256xf32, #tpu.memory_space<vmem>>, vector<1x256xf32>
    %326 = vector.broadcast %325 : vector<1x256xf32> to vector<3x256xf32>
    %327 = arith.addf %314, %326 : vector<3x256xf32>
    %cst_273 = arith.constant 0.000000e+00 : f32
    %328 = vector.broadcast %cst_273 : f32 to vector<3x256xf32>
    %329 = arith.cmpf ogt, %327, %328 : vector<3x256xf32>
    %cst_274 = arith.constant 2.000000e-01 : f32
    %330 = vector.broadcast %cst_274 : f32 to vector<3x256xf32>
    %331 = arith.mulf %330, %327 : vector<3x256xf32>
    %332 = arith.select %329, %327, %331 : vector<3x256xi1>, vector<3x256xf32>
    %c0_275 = arith.constant 0 : index
    %c0_276 = arith.constant 0 : index
    %333 = vector.load %arg5[%c0_275, %c0_276] : memref<1x256xf32, #tpu.memory_space<vmem>>, vector<1x256xf32>
    %334 = vector.broadcast %333 : vector<1x256xf32> to vector<3x256xf32>
    %335 = arith.addf %319, %334 : vector<3x256xf32>
    %cst_277 = arith.constant 0.000000e+00 : f32
    %336 = vector.broadcast %cst_277 : f32 to vector<3x256xf32>
    %337 = arith.cmpf ogt, %335, %336 : vector<3x256xf32>
    %cst_278 = arith.constant 2.000000e-01 : f32
    %338 = vector.broadcast %cst_278 : f32 to vector<3x256xf32>
    %339 = arith.mulf %338, %335 : vector<3x256xf32>
    %340 = arith.select %337, %335, %339 : vector<3x256xi1>, vector<3x256xf32>
    %c0_279 = arith.constant 0 : index
    %c0_280 = arith.constant 0 : index
    %341 = vector.load %arg5[%c0_279, %c0_280] : memref<1x256xf32, #tpu.memory_space<vmem>>, vector<1x256xf32>
    %342 = vector.broadcast %341 : vector<1x256xf32> to vector<3x256xf32>
    %343 = arith.addf %324, %342 : vector<3x256xf32>
    %cst_281 = arith.constant 0.000000e+00 : f32
    %344 = vector.broadcast %cst_281 : f32 to vector<3x256xf32>
    %345 = arith.cmpf ogt, %343, %344 : vector<3x256xf32>
    %cst_282 = arith.constant 2.000000e-01 : f32
    %346 = vector.broadcast %cst_282 : f32 to vector<3x256xf32>
    %347 = arith.mulf %346, %343 : vector<3x256xf32>
    %348 = arith.select %345, %343, %347 : vector<3x256xi1>, vector<3x256xf32>
    %cst_283 = arith.constant 0.000000e+00 : f32
    %349 = vector.broadcast %cst_283 : f32 to vector<1x256xf32>
    %c0_284 = arith.constant 0 : index
    %c0_285 = arith.constant 0 : index
    %c0_286 = arith.constant 0 : index
    %350 = vector.load %arg7[%c0_284, %c0_285, %c0_286] : memref<3x3x256xf32, #tpu.memory_space<vmem>>, vector<1x3x256xf32>
    %351 = vector.shape_cast %350 : vector<1x3x256xf32> to vector<3x256xf32>
    %352 = arith.mulf %332, %351 : vector<3x256xf32>
    %cst_287 = arith.constant dense<0.000000e+00> : vector<256xf32>
    %353 = vector.multi_reduction <add>, %352, %cst_287 [0] : vector<3x256xf32> to vector<256xf32>
    %354 = vector.shape_cast %353 : vector<256xf32> to vector<1x256xf32>
    %355 = arith.addf %349, %354 : vector<1x256xf32>
    %c1_288 = arith.constant 1 : index
    %c0_289 = arith.constant 0 : index
    %c0_290 = arith.constant 0 : index
    %356 = vector.load %arg7[%c1_288, %c0_289, %c0_290] : memref<3x3x256xf32, #tpu.memory_space<vmem>>, vector<1x3x256xf32>
    %357 = vector.shape_cast %356 : vector<1x3x256xf32> to vector<3x256xf32>
    %358 = arith.mulf %340, %357 : vector<3x256xf32>
    %cst_291 = arith.constant dense<0.000000e+00> : vector<256xf32>
    %359 = vector.multi_reduction <add>, %358, %cst_291 [0] : vector<3x256xf32> to vector<256xf32>
    %360 = vector.shape_cast %359 : vector<256xf32> to vector<1x256xf32>
    %361 = arith.addf %355, %360 : vector<1x256xf32>
    %c2_292 = arith.constant 2 : index
    %c0_293 = arith.constant 0 : index
    %c0_294 = arith.constant 0 : index
    %362 = vector.load %arg7[%c2_292, %c0_293, %c0_294] : memref<3x3x256xf32, #tpu.memory_space<vmem>>, vector<1x3x256xf32>
    %363 = vector.shape_cast %362 : vector<1x3x256xf32> to vector<3x256xf32>
    %364 = arith.mulf %348, %363 : vector<3x256xf32>
    %cst_295 = arith.constant dense<0.000000e+00> : vector<256xf32>
    %365 = vector.multi_reduction <add>, %364, %cst_295 [0] : vector<3x256xf32> to vector<256xf32>
    %366 = vector.shape_cast %365 : vector<256xf32> to vector<1x256xf32>
    %367 = arith.addf %361, %366 : vector<1x256xf32>
    %cst_296 = arith.constant dense<0.000000e+00> : vector<1xf32>
    %368 = vector.multi_reduction <add>, %367, %cst_296 [1] : vector<1x256xf32> to vector<1xf32>
    %369 = vector.shape_cast %368 : vector<1xf32> to vector<1x1xf32>
    %c0_297 = arith.constant 0 : index
    %c0_298 = arith.constant 0 : index
    %370 = vector.load %arg8[%c0_297, %c0_298] : memref<1x1xf32, #tpu.memory_space<vmem>>, vector<1x1xf32>
    %371 = arith.addf %369, %370 : vector<1x1xf32>
    %cst_299 = arith.constant 5.000000e-01 : f32
    %372 = vector.broadcast %cst_299 : f32 to vector<1x1xf32>
    %373 = arith.mulf %372, %371 : vector<1x1xf32>
    %374 = math.tanh %373 : vector<1x1xf32>
    %cst_300 = arith.constant 1.000000e+00 : f32
    %375 = vector.broadcast %cst_300 : f32 to vector<1x1xf32>
    %376 = arith.addf %374, %375 : vector<1x1xf32>
    %cst_301 = arith.constant 5.000000e-01 : f32
    %377 = vector.broadcast %cst_301 : f32 to vector<1x1xf32>
    %378 = arith.mulf %377, %376 : vector<1x1xf32>
    %379 = vector.shape_cast %378 : vector<1x1xf32> to vector<1x1xf32>
    %380 = vector.broadcast %379 : vector<1x1xf32> to vector<8x128xf32>
    %c0_302 = arith.constant 0 : index
    %c0_303 = arith.constant 0 : index
    %c0_304 = arith.constant 0 : index
    %381 = vector.load %arg9[%c0_302, %c0_303, %c0_304] : memref<1x8x128xf32, #tpu.memory_space<vmem>>, vector<1x8x128xf32>
    %382 = vector.shape_cast %381 : vector<1x8x128xf32> to vector<8x128xf32>
    %383 = vector.shape_cast %380 : vector<8x128xf32> to vector<1x8x128xf32>
    tpu.vector_store %arg9[%c0_302, %c0_303, %c0_304], %383 {strides = array<i32>} : memref<1x8x128xf32, #tpu.memory_space<vmem>>, vector<1x8x128xf32>,
    return
  }
  func.func @transform_0(%arg0: i32) -> (i32, i32, i32, i32) {
    %c0_i32 = arith.constant 0 : i32
    %c0_i32_0 = arith.constant 0 : i32
    %c0_i32_1 = arith.constant 0 : i32
    %c0_i32_2 = arith.constant 0 : i32
    return %arg0, %c0_i32, %c0_i32_0, %c0_i32_1 : i32, i32, i32, i32
  }
  func.func @transform_1(%arg0: i32) -> (i32, i32, i32, i32) {
    %c0_i32 = arith.constant 0 : i32
    %c0_i32_0 = arith.constant 0 : i32
    %c0_i32_1 = arith.constant 0 : i32
    %c0_i32_2 = arith.constant 0 : i32
    %c0_i32_3 = arith.constant 0 : i32
    return %c0_i32, %c0_i32_0, %c0_i32_1, %c0_i32_2 : i32, i32, i32, i32
  }
  func.func @transform_2(%arg0: i32) -> (i32, i32) {
    %c0_i32 = arith.constant 0 : i32
    %c0_i32_0 = arith.constant 0 : i32
    %c0_i32_1 = arith.constant 0 : i32
    return %c0_i32, %c0_i32_0 : i32, i32
  }
  func.func @transform_3(%arg0: i32) -> (i32, i32, i32, i32) {
    %c0_i32 = arith.constant 0 : i32
    %c0_i32_0 = arith.constant 0 : i32
    %c0_i32_1 = arith.constant 0 : i32
    %c0_i32_2 = arith.constant 0 : i32
    %c0_i32_3 = arith.constant 0 : i32
    return %c0_i32, %c0_i32_0, %c0_i32_1, %c0_i32_2 : i32, i32, i32, i32
  }
  func.func @transform_4(%arg0: i32) -> (i32, i32) {
    %c0_i32 = arith.constant 0 : i32
    %c0_i32_0 = arith.constant 0 : i32
    %c0_i32_1 = arith.constant 0 : i32
    return %c0_i32, %c0_i32_0 : i32, i32
  }
  func.func @transform_5(%arg0: i32) -> (i32, i32) {
    %c0_i32 = arith.constant 0 : i32
    %c0_i32_0 = arith.constant 0 : i32
    %c0_i32_1 = arith.constant 0 : i32
    return %c0_i32, %c0_i32_0 : i32, i32
  }
  func.func @transform_6(%arg0: i32) -> (i32, i32, i32) {
    %c0_i32 = arith.constant 0 : i32
    %c0_i32_0 = arith.constant 0 : i32
    %c0_i32_1 = arith.constant 0 : i32
    %c0_i32_2 = arith.constant 0 : i32
    return %c0_i32, %c0_i32_0, %c0_i32_1 : i32, i32, i32
  }
  func.func @transform_7(%arg0: i32) -> (i32, i32) {
    %c0_i32 = arith.constant 0 : i32
    %c0_i32_0 = arith.constant 0 : i32
    %c0_i32_1 = arith.constant 0 : i32
    return %c0_i32, %c0_i32_0 : i32, i32
  }
  func.func @transform_8(%arg0: i32) -> (i32, i32, i32) {
    %c0_i32 = arith.constant 0 : i32
    %c0_i32_0 = arith.constant 0 : i32
    %c0_i32_1 = arith.constant 0 : i32
    return %arg0, %c0_i32, %c0_i32_0 : i32, i32, i32
  }
}

</mosaic_0001>

<bundles_post_ra>
// kernel: discriminator_forward.1
= control target key start
LH: loop header
LB: loop body
LE: loop exit
PB: predicated region body
PF: predicated region fallthrough
CT: control target
= control target key end

     0   :  { %s7269_s29 = smov 0   ;;  %s10786_s0 = inlined_call_operand.vmem [shape: bf16[2,8,8,256], index: 0, kind: input, shape index: {}]   ;;  %s10787_s1 = inlined_call_operand.vmem [shape: bf16[2,2,256,128], index: 1, kind: input, shape index: {}]   ;;  %s10788_s2 = inlined_call_operand.vmem [shape: f32[1,128], index: 2, kind: input, shape index: {}]   ;;  %s10789_s3 = inlined_call_operand.vmem [shape: bf16[2,2,512,256], index: 3, kind: input, shape index: {}]   ;;  %s10790_s4 = inlined_call_operand.vmem [shape: f32[1,256], index: 4, kind: input, shape index: {}]   ;;  %s10791_s5 = inlined_call_operand.vmem [shape: bf16[8,7], index: 5, kind: input, shape index: {}]   ;;  %s10792_s6 = inlined_call_operand.vmem [shape: f32[3,3,256], index: 6, kind: input, shape index: {}]   ;;  %s10793_s7 = inlined_call_operand.<no memory space> [shape: f32[1,1], index: 7, kind: input, shape index: {}]   ;;  %s10794_s8 = inlined_call_operand.vmem [shape: f32[2,8,128], index: 8, kind: output, shape index: {}]  }
   0x1   :  { %v13_v0 = vstv %s10793_s7 }
   0x2   :  { %14 = vst [vmem:[#allocation2] sm:$0x1] %v13_v0 }
   0x3 LB: > { %s5366_s30 = sadd.s32 4294967295, %s7215_s29   ;;  %p5370_p0 = scmp.ge.s32.totalorder %s7215_s29, 1  ;;  %s7215_s29 = sphi %s7269_s29, %s20_s29  }
   0x4   : > { %p264_p1 = scmp.lt.s32.totalorder %s7215_s29, 3 }
   0x6   : > { %p265_p2 = pnand %p5370_p0, %p264_p1 }
   0x8   : > { %268 = sbr.rel (%p265_p2) target bundleno = 2059 (0x80b), region = 52 }
   0xf   : > { %v7280_v1 = vld [vmem:[%s10787_s1 + $0xc0] sm:$0xff]   ;;  %v7303_v5 = vld [vmem:[%s10787_s1 + $0xc8] sm:$0xff]   ;;  %v7327_v9 = vld [vmem:[%s10787_s1 + $0xd0] sm:$0xff]   ;;  %p297_p3 = scmp.lt.s32.totalorder %s5366_s30, 1  ;;  %vm7218_vm0 = vmmov 0   ;;  %vm2202_vm1 = vcmask 1042432  }
  0x10   : > { %v7285_v2 = vld [vmem:[%s10787_s1 + $0x40] sm:$0xff]   ;;  %6018 = vmatprep.subr.bf16.mxu0 %v7280_v1  ;;  %v7309_v6 = vld [vmem:[%s10787_s1 + $0x48] sm:$0xff]   ;;  %v7333_v10 = vld [vmem:[%s10787_s1 + $0x50] sm:$0xff]   ;;  %vm2203_vm2 = vcmask 1043456   ;;  %vm2198_vm4 = vcmask 56320  }
  0x11   : > { %v7291_v3 = vld [vmem:[%s10787_s1 + $0x80] sm:$0xff]   ;;  %6040 = vmatprep.subr.bf16.mxu1 %v7285_v2  ;;  %v7315_v7 = vld [vmem:[%s10787_s1 + $0x88] sm:$0xff]   ;;  %v7339_v11 = vld [vmem:[%s10787_s1 + $0x90] sm:$0xff]   ;;  %s11271_s30 = smov (!%p297_p3, %s5366_s30), 1 }
  0x12   : > { %v7297_v4 = vld [vmem:[%s10787_s1] sm:$0xff]   ;;  %6019 = vmatpush3.bf16.msra.mxu0 %v7291_v3  ;;  %v7321_v8 = vld [vmem:[%s10787_s1 + $0x8] sm:$0xff]   ;;  %v7345_v12 = vld [vmem:[%s10787_s1 + $0x10] sm:$0xff]   ;;  %s6017_s20 = sshll.u32 %s11271_s30, 6  ;;  %s5373_s28 = sshll.u32 %s11271_s30, 3 }
  0x13   : > { %6041 = vmatpush3.bf16.msra.mxu1 %v7297_v4  ;;  %6020 = vmatprep.subr.bf16.mxu0 %v7303_v5  ;;  %v7351_v13 = vld [vmem:[%s10787_s1 + $0xd8] sm:$0xff]   ;;  %v7375_v17 = vld [vmem:[%s10787_s1 + $0xe0] sm:$0xff]   ;;  %v7401_v21 = vld [vmem:[%s10787_s1 + $0xe8] sm:$0xff]   ;;  %s7465_s9 = scalar_lea.vmem %s10786_s0, %s6017_s20  ;;  %s305_s11 = scalar_lea.vmem %s10794_s8, %s5373_s28 }
  0x14   : > { %6042 = vmatprep.subr.bf16.mxu1 %v7309_v6  ;;  %v7357_v14 = vld [vmem:[%s10787_s1 + $0x58] sm:$0xff]   ;;  %v7381_v18 = vld [vmem:[%s10787_s1 + $0x60] sm:$0xff]   ;;  %v7407_v22 = vld [vmem:[%s10787_s1 + $0x68] sm:$0xff]  }
  0x15   : > { %v7363_v15 = vld [vmem:[%s10787_s1 + $0x98] sm:$0xff]   ;;  %v7387_v19 = vld [vmem:[%s10787_s1 + $0xa0] sm:$0xff]   ;;  %v7413_v23 = vld [vmem:[%s10787_s1 + $0xa8] sm:$0xff]  }
  0x16   : > { %6021 = vmatpush3.bf16.msra.mxu0 %v7315_v7  ;;  %v7369_v16 = vld [vmem:[%s10787_s1 + $0x18] sm:$0xff]   ;;  %v7395_v20 = vld [vmem:[%s10787_s1 + $0x20] sm:$0xff]   ;;  %v7423_v24 = vld [vmem:[%s10787_s1 + $0x28] sm:$0xff]  }
  0x17   : > { %6043 = vmatpush3.bf16.msra.mxu1 %v7321_v8  ;;  %6022 = vmatprep.subr.bf16.mxu0 %v7327_v9  ;;  %v7429_v25 = vld [vmem:[%s10787_s1 + $0xf0] sm:$0xff]   ;;  %v7454_v29 = vld [vmem:[%s10787_s1 + $0xf8] sm:$0xff]   ;;  %v307_v33 = vld [vmem:[%s7465_s9] sm:$0xff] }
  0x18   : > { %6044 = vmatprep.subr.bf16.mxu1 %v7333_v10  ;;  %v7435_v26 = vld [vmem:[%s10787_s1 + $0x70] sm:$0xff]   ;;  %v7460_v30 = vld [vmem:[%s10787_s1 + $0x78] sm:$0xff]   ;;  %v5374_v34 = vld [vmem:[%s7465_s9 + $0x8] sm:$0xff]  ;;  %v5413_v35 = vcombine.low %v307_v33, %v307_v33  ;;  %v5414_v36 = vcombine.high %v307_v33, %v307_v33 }
  0x19   : > { %v7441_v27 = vld [vmem:[%s10787_s1 + $0xb0] sm:$0xff]   ;;  %v7471_v31 = vld [vmem:[%s10787_s1 + $0xb8] sm:$0xff]   ;;  %v7485_v37 = vcombine.high %v5374_v34, %v5374_v34  ;;  %v7514_v51 = vcombine.low %v5374_v34, %v5374_v34 }
  0x1a   : > { %6023 = vmatpush3.bf16.msra.mxu0 %v7339_v11  ;;  %v7448_v28 = vld [vmem:[%s10787_s1 + $0x30] sm:$0xff]   ;;  %v7477_v32 = vld [vmem:[%s10787_s1 + $0x38] sm:$0xff]   ;;  %v400_v38 = vshrl.u32 %v5414_v36, 16  ;;  %v402_v39 = vshll.u32 %v5414_v36, 16  ;;  %674 = vmatprep.mubr.bf16.mxu1 %v5414_v36  ;;  %v393_v40 = vshrl.u32 %v5413_v35, 16  ;;  %v395_v41 = vshll.u32 %v5413_v35, 16 }
  0x1b   : > { %6045 = vmatpush3.bf16.msra.mxu1 %v7345_v12  ;;  %6024 = vmatprep.subr.bf16.mxu0 %v7351_v13  ;;  %v695_v42 = vshrl.u32 %v7485_v37, 16  ;;  %v697_v43 = vshll.u32 %v7485_v37, 16  ;;  %v5375_v50 = vld [vmem:[%s7465_s9 + $0x10] sm:$0xff]  ;;  %v690_v53 = vshll.u32 %v7514_v51, 16  ;;  %v688_v55 = vshrl.u32 %v7514_v51, 16  ;;  %v5376_v61 = vld [vmem:[%s7465_s9 + $0x18] sm:$0xff] }
  0x1c   : > { %6046 = vmatprep.subr.bf16.mxu1 %v7357_v14  ;;  %v404_v44 = vrot.slane %v402_v39, 1  ;;  %v397_v45 = vrot.slane %v395_v41, 1  ;;  %v7517_v52 = vcombine.high %v5375_v50, %v5375_v50  ;;  %v7563_v62 = vcombine.low %v5375_v50, %v5375_v50  ;;  %v7766_v41 = vld [vmem:[%s10787_s1 + $0x28] sm:$0xff]  }
  0x1d   : > { %v699_v46 = vrot.slane %v697_v43, 1  ;;  %v692_v56 = vrot.slane %v690_v53, 1  ;;  %v7566_v63 = vcombine.high %v5376_v61, %v5376_v61  ;;  %v7809_v53 = vld [vmem:[%s10787_s1 + $0xa8] sm:$0xff]  }
  0x1e   : > { %6025 = vmatpush3.bf16.msra.mxu0 %v7363_v15  ;;  %v405_v47 = vor.u32 %v404_v44, %v400_v38  ;;  %v398_v48 = vor.u32 %v397_v45, %v393_v40  ;;  %v800_v54 = vshll.u32 %v7517_v52, 16  ;;  %v798_v57 = vshrl.u32 %v7517_v52, 16  ;;  %v5378_v40 = vld [vmem:[%s7465_s9 + $0x28] sm:$0xff]  ;;  %v7782_v44 = vld [vmem:[%s10787_s1 + $0xa0] sm:$0xff]  }
  0x1f   : > { %6047 = vmatpush3.bf16.msra.mxu1 %v7369_v16  ;;  %6026 = vmatprep.subr.bf16.mxu0 %v7375_v17  ;;  %v7492_v49 = vor.u32 %v699_v46, %v695_v42  ;;  %v7535_v59 = vor.u32 %v692_v56, %v688_v55  ;;  %v793_v0 = vshll.u32 %v7563_v62, 16  ;;  %v903_v33 = vshll.u32 %v7566_v63, 16  ;;  %v7772_v42 = vld [vmem:[%s10787_s1 + $0x70] sm:$0xff]   ;;  %v7790_v46 = vld [vmem:[%s10787_s1 + $0xe8] sm:$0xff]   ;;  %v7822_v56 = vld [vmem:[%s10787_s1 + $0x38] sm:$0xff]  }
  0x20   : > { %6048 = vmatprep.subr.bf16.mxu1 %v7381_v18  ;;  %536 = vmatprep.mubr.bf16.mxu0 %v405_v47  ;;  %v802_v58 = vrot.slane %v800_v54, 1  ;;  %v791_v34 = vshrl.u32 %v7563_v62, 16  ;;  %v901_v36 = vshrl.u32 %v7566_v63, 16  ;;  %v7785_v45 = vcombine.high %v5378_v40, %v5378_v40  ;;  %v7796_v47 = vld [vmem:[%s10787_s1 + $0x30] sm:$0xff]  }
  0x21   : > { %v905_v38 = vrot.slane %v903_v33, 1  ;;  %v7816_v55 = vld [vmem:[%s10787_s1 + $0xf0] sm:$0xff]  }
  0x22   : > { %6027 = vmatpush3.bf16.msra.mxu0 %v7387_v19  ;;  %v7539_v60 = vor.u32 %v802_v58, %v798_v57  ;;  %v1109_v54 = vshll.u32 %v7785_v45, 16 }
  0x23   : > { %6049 = vmatpush3.bf16.msra.mxu1 %v7395_v20  ;;  %6028 = vmatprep.subr.bf16.mxu0 %v7401_v21 }
  0x24   : > { %6050 = vmatprep.subr.bf16.mxu1 %v7407_v22  ;;  %v1111_v33 = vrot.slane %v1109_v54, 1 }
  0x26   : > { %6029 = vmatpush3.bf16.msra.mxu0 %v7413_v23 }
  0x27   : > { %6051 = vmatpush3.bf16.msra.mxu1 %v7423_v24  ;;  %6030 = vmatprep.subr.bf16.mxu0 %v7429_v25 }
  0x28   : > { %6052 = vmatprep.subr.bf16.mxu1 %v7435_v26 }
  0x2a   : > { %6031 = vmatpush3.bf16.msra.mxu0 %v7441_v27 }
  0x2b   : > { %6053 = vmatpush3.bf16.msra.mxu1 %v7448_v28  ;;  %6032 = vmatprep.subr.bf16.mxu0 %v7454_v29 }
  0x2c   : > { %6054 = vmatprep.subr.bf16.mxu1 %v7460_v30 }
  0x2e   : > { %6033 = vmatpush3.bf16.msra.mxu0 %v7471_v31 }
  0x2f   : > { %6055 = vmatpush3.bf16.msra.mxu1 %v7477_v32  ;;  %6062 = vmatprep.subr.bf16.mxu0 %v7280_v1 }
  0x30   : > { %6084 = vmatprep.subr.bf16.mxu1 %v7285_v2 }
  0x31   : > { %537 = vmatmul.mubr.bf16.vlgmr.msra.gmra.mrb[0].mxu0 %v398_v48  ;;  %v7802_v48 = vld [vmem:[%s10787_s1 + $0x78] sm:$0xff]  }
  0x32   : > { %675 = vmatmul.mubr.bf16.vlgmr.msra.gmra.mrb[0].mxu1 %v5413_v35  ;;  %6063 = vmatpush3.bf16.msra.mxu0 %v7291_v3  ;;  %v795_v35 = vrot.slane %v793_v0, 1  ;;  %v1107_v0 = vshrl.u32 %v7785_v45, 16 }
  0x33   : > { %6085 = vmatpush3.bf16.msra.mxu1 %v7297_v4  ;;  %777 = vmatprep.mubr.bf16.mxu1 %v7485_v37 }
  0x34   : > { %6086 = vmatprep.subr.bf16.mxu1 %v7309_v6  ;;  %735 = vmatprep.mubr.bf16.mxu0 %v7492_v49  ;;  %v7584_v39 = vor.u32 %v795_v35, %v791_v34  ;;  %v7837_v34 = vld [vmem:[%s10787_s1 + $0xf8] sm:$0xff]  }
  0x35   : > { %6064 = vmatprep.subr.bf16.mxu0 %v7303_v5 }
  0x36   : > { %6065 = vmatpush3.bf16.msra.mxu0 %v7315_v7 }
  0x37   : > { %6087 = vmatpush3.bf16.msra.mxu1 %v7321_v8  ;;  %6066 = vmatprep.subr.bf16.mxu0 %v7327_v9 }
  0x38   : > { %6088 = vmatprep.subr.bf16.mxu1 %v7333_v10 }
  0x3a   : > { %6067 = vmatpush3.bf16.msra.mxu0 %v7339_v11 }
  0x3b   : > { %6089 = vmatpush3.bf16.msra.mxu1 %v7345_v12  ;;  %6068 = vmatprep.subr.bf16.mxu0 %v7351_v13 }
  0x3c   : > { %6090 = vmatprep.subr.bf16.mxu1 %v7357_v14 }
  0x3e   : > { %6069 = vmatpush3.bf16.msra.mxu0 %v7363_v15 }
  0x3f   : > { %6091 = vmatpush3.bf16.msra.mxu1 %v7369_v16  ;;  %6070 = vmatprep.subr.bf16.mxu0 %v7375_v17 }
  0x40   : > { %6092 = vmatprep.subr.bf16.mxu1 %v7381_v18 }
  0x42   : > { %6071 = vmatpush3.bf16.msra.mxu0 %v7387_v19 }
  0x43   : > { %6093 = vmatpush3.bf16.msra.mxu1 %v7395_v20  ;;  %6072 = vmatprep.subr.bf16.mxu0 %v7401_v21 }
  0x44   : > { %6094 = vmatprep.subr.bf16.mxu1 %v7407_v22 }
  0x46   : > { %6073 = vmatpush3.bf16.msra.mxu0 %v7413_v23 }
  0x47   : > { %6095 = vmatpush3.bf16.msra.mxu1 %v7423_v24  ;;  %6074 = vmatprep.subr.bf16.mxu0 %v7429_v25 }
  0x48   : > { %6096 = vmatprep.subr.bf16.mxu1 %v7435_v26 }
  0x4a   : > { %6075 = vmatpush3.bf16.msra.mxu0 %v7441_v27 }
  0x4b   : > { %6097 = vmatpush3.bf16.msra.mxu1 %v7448_v28  ;;  %6076 = vmatprep.subr.bf16.mxu0 %v7454_v29 }
  0x4c   : > { %6098 = vmatprep.subr.bf16.mxu1 %v7460_v30 }
  0x4e   : > { %6077 = vmatpush3.bf16.msra.mxu0 %v7471_v31 }
  0x4f   : > { %6099 = vmatpush3.bf16.msra.mxu1 %v7477_v32  ;;  %6106 = vmatprep.subr.bf16.mxu0 %v7280_v1 }
  0x50   : > { %6128 = vmatprep.subr.bf16.mxu1 %v7285_v2 }
  0x51   : > { %736 = vmatmul.mubr.bf16.vlgmr.msra.gmra.mrb[4].mxu0 %v7535_v59 }
  0x52   : > { %778 = vmatmul.mubr.bf16.vlgmr.msra.gmra.mrb[4].mxu1 %v7514_v51  ;;  %6107 = vmatpush3.bf16.msra.mxu0 %v7291_v3 }
  0x53   : > { %6129 = vmatpush3.bf16.msra.mxu1 %v7297_v4  ;;  %880 = vmatprep.mubr.bf16.mxu1 %v7517_v52 }
  0x54   : > { %6130 = vmatprep.subr.bf16.mxu1 %v7309_v6  ;;  %838 = vmatprep.mubr.bf16.mxu0 %v7539_v60 }
  0x55   : > { %6108 = vmatprep.subr.bf16.mxu0 %v7303_v5 }
  0x56   : > { %6109 = vmatpush3.bf16.msra.mxu0 %v7315_v7 }
  0x57   : > { %6131 = vmatpush3.bf16.msra.mxu1 %v7321_v8  ;;  %6110 = vmatprep.subr.bf16.mxu0 %v7327_v9 }
  0x58   : > { %6132 = vmatprep.subr.bf16.mxu1 %v7333_v10 }
  0x5a   : > { %6111 = vmatpush3.bf16.msra.mxu0 %v7339_v11 }
  0x5b   : > { %6133 = vmatpush3.bf16.msra.mxu1 %v7345_v12  ;;  %6112 = vmatprep.subr.bf16.mxu0 %v7351_v13 }
  0x5c   : > { %6134 = vmatprep.subr.bf16.mxu1 %v7357_v14 }
  0x5e   : > { %6113 = vmatpush3.bf16.msra.mxu0 %v7363_v15 }
  0x5f   : > { %6135 = vmatpush3.bf16.msra.mxu1 %v7369_v16  ;;  %6114 = vmatprep.subr.bf16.mxu0 %v7375_v17 }
  0x60   : > { %6136 = vmatprep.subr.bf16.mxu1 %v7381_v18 }
  0x62   : > { %6115 = vmatpush3.bf16.msra.mxu0 %v7387_v19 }
  0x63   : > { %6137 = vmatpush3.bf16.msra.mxu1 %v7395_v20  ;;  %6116 = vmatprep.subr.bf16.mxu0 %v7401_v21 }
  0x64   : > { %6138 = vmatprep.subr.bf16.mxu1 %v7407_v22 }
  0x66   : > { %6117 = vmatpush3.bf16.msra.mxu0 %v7413_v23 }
  0x67   : > { %6139 = vmatpush3.bf16.msra.mxu1 %v7423_v24  ;;  %6118 = vmatprep.subr.bf16.mxu0 %v7429_v25 }
  0x68   : > { %6140 = vmatprep.subr.bf16.mxu1 %v7435_v26 }
  0x6a   : > { %6119 = vmatpush3.bf16.msra.mxu0 %v7441_v27 }
  0x6b   : > { %6141 = vmatpush3.bf16.msra.mxu1 %v7448_v28  ;;  %6120 = vmatprep.subr.bf16.mxu0 %v7454_v29 }
  0x6c   : > { %6142 = vmatprep.subr.bf16.mxu1 %v7460_v30 }
  0x6e   : > { %6121 = vmatpush3.bf16.msra.mxu0 %v7471_v31 }
  0x6f   : > { %6143 = vmatpush3.bf16.msra.mxu1 %v7477_v32  ;;  %6150 = vmatprep.subr.bf16.mxu0 %v7280_v1  ;;  %v7610_v1 = vld [vmem:[%s7465_s9 + $0x20] sm:$0xff] }
  0x70   : > { %6172 = vmatprep.subr.bf16.mxu1 %v7285_v2  ;;  %v7588_v2 = vor.u32 %v905_v38, %v901_v36  ;;  %v7777_v43 = vcombine.low %v7610_v1, %v7610_v1  ;;  %v7849_v36 = vld [vmem:[%s10787_s1 + $0xb8] sm:$0xff]   ;;  %v7852_v38 = vor.u32 %v1111_v33, %v1107_v0 }
  0x71   : > { %839 = vmatmul.mubr.bf16.vlgmr.msra.gmra.mrb[8].mxu0 %v7584_v39 }
  0x72   : > { %881 = vmatmul.mubr.bf16.vlgmr.msra.gmra.mrb[8].mxu1 %v7563_v62  ;;  %6151 = vmatpush3.bf16.msra.mxu0 %v7291_v3  ;;  %v7614_v3 = vcombine.low %v5376_v61, %v5376_v61  ;;  %v999_v50 = vshll.u32 %v7777_v43, 16  ;;  %v997_v57 = vshrl.u32 %v7777_v43, 16  ;;  %v7830_v61 = vld [vmem:[%s10787_s1 + $0xb0] sm:$0xff]  }
  0x73   : > { %6173 = vmatpush3.bf16.msra.mxu1 %v7297_v4  ;;  %983 = vmatprep.mubr.bf16.mxu1 %v7566_v63  ;;  %v7619_v4 = vcombine.high %v7610_v1, %v7610_v1  ;;  %v5379_v1 = vld [vmem:[%s7465_s9 + $0x30] sm:$0xff] }
  0x74   : > { %6174 = vmatprep.subr.bf16.mxu1 %v7309_v6  ;;  %941 = vmatprep.mubr.bf16.mxu0 %v7588_v2  ;;  %v1001_v58 = vrot.slane %v999_v50, 1 }
  0x75   : > { %6152 = vmatprep.subr.bf16.mxu0 %v7303_v5  ;;  %v896_v5 = vshll.u32 %v7614_v3, 16  ;;  %v1006_v6 = vshll.u32 %v7619_v4, 16 }
  0x76   : > { %6153 = vmatpush3.bf16.msra.mxu0 %v7315_v7  ;;  %v894_v7 = vshrl.u32 %v7614_v3, 16  ;;  %v7843_v35 = vor.u32 %v1001_v58, %v997_v57 }
  0x77   : > { %6175 = vmatpush3.bf16.msra.mxu1 %v7321_v8  ;;  %6154 = vmatprep.subr.bf16.mxu0 %v7327_v9  ;;  %v898_v8 = vrot.slane %v896_v5, 1  ;;  %v7633_v9 = vld [vmem:[%s10787_s1 + $0x40] sm:$0xff]   ;;  %v7876_v5 = vcombine.low %v5378_v40, %v5378_v40 }
  0x78   : > { %6176 = vmatprep.subr.bf16.mxu1 %v7333_v10  ;;  %v1004_v10 = vshrl.u32 %v7619_v4, 16 }
  0x7a   : > { %6155 = vmatpush3.bf16.msra.mxu0 %v7339_v11  ;;  %v1008_v11 = vrot.slane %v1006_v6, 1  ;;  %v7879_v6 = vcombine.high %v5379_v1, %v5379_v1 }
  0x7b   : > { %6177 = vmatpush3.bf16.msra.mxu1 %v7345_v12  ;;  %6156 = vmatprep.subr.bf16.mxu0 %v7351_v13  ;;  %v7643_v12 = vld [vmem:[%s10787_s1] sm:$0xff]   ;;  %v7647_v13 = vor.u32 %v898_v8, %v894_v7  ;;  %v1102_v7 = vshll.u32 %v7876_v5, 16 }
  0x7c   : > { %6178 = vmatprep.subr.bf16.mxu1 %v7357_v14  ;;  %v7652_v14 = vld [vmem:[%s10787_s1 + $0x48] sm:$0xff]   ;;  %v1212_v8 = vshll.u32 %v7879_v6, 16  ;;  %v1210_v40 = vshrl.u32 %v7879_v6, 16 }
  0x7e   : > { %6157 = vmatpush3.bf16.msra.mxu0 %v7363_v15  ;;  %v7656_v15 = vor.u32 %v1008_v11, %v1004_v10  ;;  %v1100_v10 = vshrl.u32 %v7876_v5, 16  ;;  %v1104_v11 = vrot.slane %v1102_v7, 1  ;;  %v1214_v50 = vrot.slane %v1212_v8, 1 }
  0x7f   : > { %6179 = vmatpush3.bf16.msra.mxu1 %v7369_v16  ;;  %6158 = vmatprep.subr.bf16.mxu0 %v7375_v17  ;;  %v7661_v16 = vld [vmem:[%s10787_s1 + $0xc0] sm:$0xff]   ;;  %v7667_v17 = vld [vmem:[%s10787_s1 + $0x8] sm:$0xff]  }
  0x80   : > { %6180 = vmatprep.subr.bf16.mxu1 %v7381_v18  ;;  %v7674_v18 = vld [vmem:[%s10787_s1 + $0x50] sm:$0xff]   ;;  %v7897_v54 = vor.u32 %v1104_v11, %v1100_v10 }
  0x82   : > { %6159 = vmatpush3.bf16.msra.mxu0 %v7387_v19  ;;  %v7680_v19 = vld [vmem:[%s10787_s1 + $0x80] sm:$0xff]  }
  0x83   : > { %6181 = vmatpush3.bf16.msra.mxu1 %v7395_v20  ;;  %6160 = vmatprep.subr.bf16.mxu0 %v7401_v21  ;;  %v7687_v20 = vld [vmem:[%s10787_s1 + $0xc8] sm:$0xff]   ;;  %v7693_v21 = vld [vmem:[%s10787_s1 + $0x10] sm:$0xff]  }
  0x84   : > { %6182 = vmatprep.subr.bf16.mxu1 %v7407_v22  ;;  %v7699_v22 = vld [vmem:[%s10787_s1 + $0x58] sm:$0xff]  }
  0x86   : > { %6161 = vmatpush3.bf16.msra.mxu0 %v7413_v23  ;;  %v7705_v23 = vld [vmem:[%s10787_s1 + $0x88] sm:$0xff]  }
  0x87   : > { %6183 = vmatpush3.bf16.msra.mxu1 %v7423_v24  ;;  %6162 = vmatprep.subr.bf16.mxu0 %v7429_v25  ;;  %v7711_v24 = vld [vmem:[%s10787_s1 + $0xd0] sm:$0xff]   ;;  %v7717_v25 = vld [vmem:[%s10787_s1 + $0x18] sm:$0xff]  }
  0x88   : > { %6184 = vmatprep.subr.bf16.mxu1 %v7435_v26  ;;  %v7723_v26 = vld [vmem:[%s10787_s1 + $0x60] sm:$0xff]  }
  0x8a   : > { %6163 = vmatpush3.bf16.msra.mxu0 %v7441_v27  ;;  %v7729_v27 = vld [vmem:[%s10787_s1 + $0x90] sm:$0xff]  }
  0x8b   : > { %6185 = vmatpush3.bf16.msra.mxu1 %v7448_v28  ;;  %6164 = vmatprep.subr.bf16.mxu0 %v7454_v29  ;;  %v7735_v28 = vld [vmem:[%s10787_s1 + $0xd8] sm:$0xff]   ;;  %v7741_v29 = vld [vmem:[%s10787_s1 + $0x20] sm:$0xff]  }
  0x8c   : > { %6186 = vmatprep.subr.bf16.mxu1 %v7460_v30  ;;  %v7747_v30 = vld [vmem:[%s10787_s1 + $0x68] sm:$0xff]  }
  0x8e   : > { %6165 = vmatpush3.bf16.msra.mxu0 %v7471_v31  ;;  %v7753_v31 = vld [vmem:[%s10787_s1 + $0x98] sm:$0xff]  }
  0x8f   : > { %6187 = vmatpush3.bf16.msra.mxu1 %v7477_v32  ;;  %6194 = vmatprep.subr.bf16.mxu0 %v7661_v16  ;;  %v7759_v32 = vld [vmem:[%s10787_s1 + $0xe0] sm:$0xff]  }
  0x90   : > { %6216 = vmatprep.subr.bf16.mxu1 %v7633_v9 }
  0x91   : > { %942 = vmatmul.mubr.bf16.vlgmr.msra.gmra.mrb[12].mxu0 %v7647_v13 }
  0x92   : > { %984 = vmatmul.mubr.bf16.vlgmr.msra.gmra.mrb[12].mxu1 %v7614_v3  ;;  %6195 = vmatpush3.bf16.msra.mxu0 %v7680_v19 }
  0x93   : > { %6217 = vmatpush3.bf16.msra.mxu1 %v7643_v12  ;;  %1086 = vmatprep.mubr.bf16.mxu1 %v7619_v4 }
  0x94   : > { %6218 = vmatprep.subr.bf16.mxu1 %v7652_v14  ;;  %1044 = vmatprep.mubr.bf16.mxu0 %v7656_v15 }
  0x95   : > { %6196 = vmatprep.subr.bf16.mxu0 %v7687_v20 }
  0x96   : > { %6197 = vmatpush3.bf16.msra.mxu0 %v7705_v23 }
  0x97   : > { %6219 = vmatpush3.bf16.msra.mxu1 %v7667_v17  ;;  %6198 = vmatprep.subr.bf16.mxu0 %v7711_v24 }
  0x98   : > { %6220 = vmatprep.subr.bf16.mxu1 %v7674_v18 }
  0x9a   : > { %6199 = vmatpush3.bf16.msra.mxu0 %v7729_v27 }
  0x9b   : > { %6221 = vmatpush3.bf16.msra.mxu1 %v7693_v21  ;;  %6200 = vmatprep.subr.bf16.mxu0 %v7735_v28 }
  0x9c   : > { %6222 = vmatprep.subr.bf16.mxu1 %v7699_v22 }
  0x9e   : > { %6201 = vmatpush3.bf16.msra.mxu0 %v7753_v31 }
  0x9f   : > { %6223 = vmatpush3.bf16.msra.mxu1 %v7717_v25  ;;  %6202 = vmatprep.subr.bf16.mxu0 %v7759_v32 }
  0xa0   : > { %6224 = vmatprep.subr.bf16.mxu1 %v7723_v26 }
  0xa2   : > { %6203 = vmatpush3.bf16.msra.mxu0 %v7782_v44 }
  0xa3   : > { %6225 = vmatpush3.bf16.msra.mxu1 %v7741_v29  ;;  %6204 = vmatprep.subr.bf16.mxu0 %v7790_v46 }
  0xa4   : > { %6226 = vmatprep.subr.bf16.mxu1 %v7747_v30 }
  0xa6   : > { %6205 = vmatpush3.bf16.msra.mxu0 %v7809_v53 }
  0xa7   : > { %6227 = vmatpush3.bf16.msra.mxu1 %v7766_v41  ;;  %6206 = vmatprep.subr.bf16.mxu0 %v7816_v55 }
  0xa8   : > { %6228 = vmatprep.subr.bf16.mxu1 %v7772_v42 }
  0xaa   : > { %6207 = vmatpush3.bf16.msra.mxu0 %v7830_v61 }
  0xab   : > { %6229 = vmatpush3.bf16.msra.mxu1 %v7796_v47  ;;  %6208 = vmatprep.subr.bf16.mxu0 %v7837_v34 }
  0xac   : > { %6230 = vmatprep.subr.bf16.mxu1 %v7802_v48 }
  0xae   : > { %6209 = vmatpush3.bf16.msra.mxu0 %v7849_v36 }
  0xaf   : > { %6231 = vmatpush3.bf16.msra.mxu1 %v7822_v56  ;;  %6238 = vmatprep.subr.bf16.mxu0 %v7661_v16 }
  0xb0   : > { %6260 = vmatprep.subr.bf16.mxu1 %v7633_v9 }
  0xb1   : > { %1045 = vmatmul.mubr.bf16.vlgmr.msra.gmra.mrb[16].mxu0 %v7843_v35 }
  0xb2   : > { %1087 = vmatmul.mubr.bf16.vlgmr.msra.gmra.mrb[16].mxu1 %v7777_v43  ;;  %6239 = vmatpush3.bf16.msra.mxu0 %v7680_v19 }
  0xb3   : > { %6261 = vmatpush3.bf16.msra.mxu1 %v7643_v12  ;;  %1189 = vmatprep.mubr.bf16.mxu1 %v7785_v45 }
  0xb4   : > { %6262 = vmatprep.subr.bf16.mxu1 %v7652_v14  ;;  %1147 = vmatprep.mubr.bf16.mxu0 %v7852_v38 }
  0xb5   : > { %6240 = vmatprep.subr.bf16.mxu0 %v7687_v20 }
  0xb6   : > { %6241 = vmatpush3.bf16.msra.mxu0 %v7705_v23 }
  0xb7   : > { %6263 = vmatpush3.bf16.msra.mxu1 %v7667_v17  ;;  %6242 = vmatprep.subr.bf16.mxu0 %v7711_v24 }
  0xb8   : > { %6264 = vmatprep.subr.bf16.mxu1 %v7674_v18 }
  0xba   : > { %6243 = vmatpush3.bf16.msra.mxu0 %v7729_v27 }
  0xbb   : > { %6265 = vmatpush3.bf16.msra.mxu1 %v7693_v21  ;;  %6244 = vmatprep.subr.bf16.mxu0 %v7735_v28 }
  0xbc   : > { %6266 = vmatprep.subr.bf16.mxu1 %v7699_v22 }
  0xbe   : > { %6245 = vmatpush3.bf16.msra.mxu0 %v7753_v31 }
  0xbf   : > { %6267 = vmatpush3.bf16.msra.mxu1 %v7717_v25  ;;  %6246 = vmatprep.subr.bf16.mxu0 %v7759_v32 }
  0xc0   : > { %6268 = vmatprep.subr.bf16.mxu1 %v7723_v26 }
  0xc2   : > { %6247 = vmatpush3.bf16.msra.mxu0 %v7782_v44 }
  0xc3   : > { %6269 = vmatpush3.bf16.msra.mxu1 %v7741_v29  ;;  %6248 = vmatprep.subr.bf16.mxu0 %v7790_v46 }
  0xc4   : > { %6270 = vmatprep.subr.bf16.mxu1 %v7747_v30 }
  0xc6   : > { %6249 = vmatpush3.bf16.msra.mxu0 %v7809_v53 }
  0xc7   : > { %6271 = vmatpush3.bf16.msra.mxu1 %v7766_v41  ;;  %6250 = vmatprep.subr.bf16.mxu0 %v7816_v55 }
  0xc8   : > { %6272 = vmatprep.subr.bf16.mxu1 %v7772_v42 }
  0xca   : > { %6251 = vmatpush3.bf16.msra.mxu0 %v7830_v61 }
  0xcb   : > { %6273 = vmatpush3.bf16.msra.mxu1 %v7796_v47  ;;  %6252 = vmatprep.subr.bf16.mxu0 %v7837_v34 }
  0xcc   : > { %6274 = vmatprep.subr.bf16.mxu1 %v7802_v48 }
  0xce   : > { %6253 = vmatpush3.bf16.msra.mxu0 %v7849_v36 }
  0xcf   : > { %6275 = vmatpush3.bf16.msra.mxu1 %v7822_v56  ;;  %6282 = vmatprep.subr.bf16.mxu0 %v7661_v16  ;;  %v7934_v16 = vld [vmem:[%s10787_s1 + $0x140] sm:$0xff]  }
  0xd0   : > { %6304 = vmatprep.subr.bf16.mxu1 %v7633_v9  ;;  %v7901_v9 = vor.u32 %v1214_v50, %v1210_v40  ;;  %v8129_v40 = vld [vmem:[%s10787_s1 + $0x1c0] sm:$0xff]  }
  0xd1   : > { %1148 = vmatmul.mubr.bf16.vlgmr.msra.gmra.mrb[20].mxu0 %v7897_v54 }
  0xd2   : > { %1190 = vmatmul.mubr.bf16.vlgmr.msra.gmra.mrb[20].mxu1 %v7876_v5  ;;  %6283 = vmatpush3.bf16.msra.mxu0 %v7680_v19 }
  0xd3   : > { %6305 = vmatpush3.bf16.msra.mxu1 %v7643_v12  ;;  %1292 = vmatprep.mubr.bf16.mxu1 %v7879_v6  ;;  %v7924_v12 = vcombine.low %v5379_v1, %v5379_v1 }
  0xd4   : > { %6306 = vmatprep.subr.bf16.mxu1 %v7652_v14  ;;  %1250 = vmatprep.mubr.bf16.mxu0 %v7901_v9 }
  0xd5   : > { %6284 = vmatprep.subr.bf16.mxu0 %v7687_v20  ;;  %v1205_v14 = vshll.u32 %v7924_v12, 16  ;;  %v7949_v20 = vld [vmem:[%s10787_s1 + $0x148] sm:$0xff]  }
  0xd6   : > { %6285 = vmatpush3.bf16.msra.mxu0 %v7705_v23  ;;  %v7967_v23 = vld [vmem:[%s10787_s1 + $0x150] sm:$0xff]  }
  0xd7   : > { %6307 = vmatpush3.bf16.msra.mxu1 %v7667_v17  ;;  %6286 = vmatprep.subr.bf16.mxu0 %v7711_v24  ;;  %v7942_v17 = vld [vmem:[%s10787_s1 + $0x100] sm:$0xff]   ;;  %v1207_v19 = vrot.slane %v1205_v14, 1  ;;  %v7975_v24 = vld [vmem:[%s10787_s1 + $0x110] sm:$0xff]  }
  0xd8   : > { %6308 = vmatprep.subr.bf16.mxu1 %v7674_v18  ;;  %v1203_v18 = vshrl.u32 %v7924_v12, 16 }
  0xda   : > { %6287 = vmatpush3.bf16.msra.mxu0 %v7729_v27  ;;  %v8011_v27 = vld [vmem:[%s10787_s1 + $0x168] sm:$0xff]  }
  0xdb   : > { %6309 = vmatpush3.bf16.msra.mxu1 %v7693_v21  ;;  %6288 = vmatprep.subr.bf16.mxu0 %v7735_v28  ;;  %v7958_v21 = vld [vmem:[%s10787_s1 + $0x108] sm:$0xff]  }
  0xdc   : > { %6310 = vmatprep.subr.bf16.mxu1 %v7699_v22  ;;  %v7961_v22 = vor.u32 %v1207_v19, %v1203_v18  ;;  %v8019_v28 = vld [vmem:[%s10787_s1 + $0x128] sm:$0xff]  }
  0xde   : > { %6289 = vmatpush3.bf16.msra.mxu0 %v7753_v31 }
  0xdf   : > { %6311 = vmatpush3.bf16.msra.mxu1 %v7717_v25  ;;  %6290 = vmatprep.subr.bf16.mxu0 %v7759_v32  ;;  %v7991_v25 = vld [vmem:[%s10787_s1 + $0x118] sm:$0xff]  }
  0xe0   : > { %6312 = vmatprep.subr.bf16.mxu1 %v7723_v26  ;;  %v7997_v26 = vld [vmem:[%s10787_s1 + $0x160] sm:$0xff]  }
  0xe2   : > { %6291 = vmatpush3.bf16.msra.mxu0 %v7782_v44 }
  0xe3   : > { %6313 = vmatpush3.bf16.msra.mxu1 %v7741_v29  ;;  %6292 = vmatprep.subr.bf16.mxu0 %v7790_v46  ;;  %v8025_v29 = vld [vmem:[%s10787_s1 + $0x170] sm:$0xff]   ;;  %v8039_v46 = vld [vmem:[%s10787_s1 + $0x178] sm:$0xff]  }
  0xe4   : > { %6314 = vmatprep.subr.bf16.mxu1 %v7747_v30 }
  0xe6   : > { %6293 = vmatpush3.bf16.msra.mxu0 %v7809_v53 }
  0xe7   : > { %6315 = vmatpush3.bf16.msra.mxu1 %v7766_v41  ;;  %6294 = vmatprep.subr.bf16.mxu0 %v7816_v55 }
  0xe8   : > { %6316 = vmatprep.subr.bf16.mxu1 %v7772_v42  ;;  %v8033_v42 = vld [vmem:[%s10787_s1 + $0x130] sm:$0xff]  }
  0xea   : > { %6295 = vmatpush3.bf16.msra.mxu0 %v7830_v61 }
  0xeb   : > { %6317 = vmatpush3.bf16.msra.mxu1 %v7796_v47  ;;  %6296 = vmatprep.subr.bf16.mxu0 %v7837_v34 }
  0xec   : > { %6318 = vmatprep.subr.bf16.mxu1 %v7802_v48  ;;  %v8047_v48 = vld [vmem:[%s10787_s1 + $0x138] sm:$0xff]  }
  0xee   : > { %6297 = vmatpush3.bf16.msra.mxu0 %v7849_v36 }
  0xef   : > { %6319 = vmatpush3.bf16.msra.mxu1 %v7822_v56  ;;  %6326 = vmatprep.subr.bf16.mxu0 %v7934_v16 }
  0xf0   : > { %6348 = vmatprep.subr.bf16.mxu1 %v7934_v16 }
  0xf1   : > { %1251 = vmatmul.mubr.bf16.vlgmr.msra.gmra.mrb[24].mxu0 %v7961_v22 }
  0xf2   : > { %1293 = vmatmul.mubr.bf16.vlgmr.msra.gmra.mrb[24].mxu1 %v7924_v12  ;;  %6327 = vmatpush3.bf16.msra.mxu0 %v7942_v17 }
  0xf3   : > { %6349 = vmatpush3.bf16.msra.mxu1 %v7942_v17  ;;  %1502 = vmatprep.mubr.bf16.mxu1 %v7517_v52  ;;  %v7982_v52 = vld [vmem:[%s10787_s1 + $0x158] sm:$0xff]  }
  0xf4   : > { %6350 = vmatprep.subr.bf16.mxu1 %v7949_v20  ;;  %1461 = vmatprep.mubr.bf16.mxu0 %v7485_v37  ;;  %v8005_v37 = vld [vmem:[%s10787_s1 + $0x120] sm:$0xff]  }
  0xf5   : > { %6328 = vmatprep.subr.bf16.mxu0 %v7949_v20 }
  0xf6   : > { %6329 = vmatpush3.bf16.msra.mxu0 %v7958_v21 }
  0xf7   : > { %6351 = vmatpush3.bf16.msra.mxu1 %v7958_v21  ;;  %6330 = vmatprep.subr.bf16.mxu0 %v7967_v23 }
  0xf8   : > { %6352 = vmatprep.subr.bf16.mxu1 %v7967_v23 }
  0xfa   : > { %6331 = vmatpush3.bf16.msra.mxu0 %v7975_v24 }
  0xfb   : > { %6353 = vmatpush3.bf16.msra.mxu1 %v7975_v24  ;;  %6332 = vmatprep.subr.bf16.mxu0 %v7982_v52 }
  0xfc   : > { %6354 = vmatprep.subr.bf16.mxu1 %v7982_v52 }
  0xfe   : > { %6333 = vmatpush3.bf16.msra.mxu0 %v7991_v25 }
  0xff   : > { %6355 = vmatpush3.bf16.msra.mxu1 %v7991_v25  ;;  %6334 = vmatprep.subr.bf16.mxu0 %v7997_v26 }
 0x100   : > { %6356 = vmatprep.subr.bf16.mxu1 %v7997_v26 }
 0x102   : > { %6335 = vmatpush3.bf16.msra.mxu0 %v8005_v37 }
 0x103   : > { %6357 = vmatpush3.bf16.msra.mxu1 %v8005_v37  ;;  %6336 = vmatprep.subr.bf16.mxu0 %v8011_v27 }
 0x104   : > { %6358 = vmatprep.subr.bf16.mxu1 %v8011_v27  ;;  %v6034_v47 = vpop.f32.mrb[0].mxu0 }
 0x105   : > { %v6056_v30 = vpop.f32.mrb[0].mxu1  ;;  %v6035_v53 = vpop.f32.mrb[1].mxu0 }
 0x106   : > { %v6057_v31 = vpop.f32.mrb[1].mxu1  ;;  %v6036_v55 = vadd.f32 %v6035_v53, %v6034_v47  ;;  %6337 = vmatpush3.bf16.msra.mxu0 %v8019_v28  ;;  %v6037_v56 = vpop.f32.mrb[2].mxu0  ;;  %v8183_v47 = vld [vmem:[%s10787_s1 + $0x1d8] sm:$0xff]  }
 0x107   : > { %v6058_v32 = vadd.f32 %v6057_v31, %v6056_v30  ;;  %v6059_v41 = vpop.f32.mrb[2].mxu1  ;;  %6359 = vmatpush3.bf16.msra.mxu1 %v8019_v28  ;;  %6338 = vmatprep.subr.bf16.mxu0 %v8025_v29  ;;  %v6038_v57 = vpop.f32.mrb[3].mxu0  ;;  %v8139_v30 = vld [vmem:[%s10787_s1 + $0x180] sm:$0xff]   ;;  %v8145_v31 = vld [vmem:[%s10787_s1 + $0x1c8] sm:$0xff]   ;;  %v8234_v56 = vld [vmem:[%s10787_s1 + $0x1b0] sm:$0xff]  }
 0x108   : > { %v6060_v44 = vpop.f32.mrb[3].mxu1  ;;  %6360 = vmatprep.subr.bf16.mxu1 %v8025_v29  ;;  %v8157_v41 = vld [vmem:[%s10787_s1 + $0x188] sm:$0xff]  }
 0x109   : > { %v8052_v58 = vadd.f32 %v6058_v32, %v6036_v55  ;;  %v8151_v32 = vld [vmem:[%s7465_s9 + $0x38] sm:$0xff]  ;;  %v8164_v44 = vld [vmem:[%s10787_s1 + $0x1d0] sm:$0xff]  }
 0x10a   : > { %6339 = vmatpush3.bf16.msra.mxu0 %v8033_v42 }
 0x10b   : > { %6361 = vmatpush3.bf16.msra.mxu1 %v8033_v42  ;;  %6340 = vmatprep.subr.bf16.mxu0 %v8039_v46 }
 0x10c   : > { %6362 = vmatprep.subr.bf16.mxu1 %v8039_v46 }
 0x10e   : > { %6341 = vmatpush3.bf16.msra.mxu0 %v8047_v48 }
 0x10f   : > { %6363 = vmatpush3.bf16.msra.mxu1 %v8047_v48  ;;  %6370 = vmatprep.subr.bf16.mxu0 %v7934_v16 }
 0x110   : > { %6392 = vmatprep.subr.bf16.mxu1 %v7934_v16 }
 0x111   : > { %1462 = vmatmul.mubr.bf16.vlgmr.msra.gmra.mrb[28].mxu0 %v7514_v51 }
 0x112   : > { %1503 = vmatmul.mubr.bf16.vlgmr.msra.gmra.mrb[28].mxu1 %v7563_v62  ;;  %6371 = vmatpush3.bf16.msra.mxu0 %v7942_v17 }
 0x113   : > { %6393 = vmatpush3.bf16.msra.mxu1 %v7942_v17  ;;  %1584 = vmatprep.mubr.bf16.mxu1 %v7619_v4 }
 0x114   : > { %6394 = vmatprep.subr.bf16.mxu1 %v7949_v20  ;;  %1543 = vmatprep.mubr.bf16.mxu0 %v7566_v63 }
 0x115   : > { %6372 = vmatprep.subr.bf16.mxu0 %v7949_v20 }
 0x116   : > { %6373 = vmatpush3.bf16.msra.mxu0 %v7958_v21 }
 0x117   : > { %6395 = vmatpush3.bf16.msra.mxu1 %v7958_v21  ;;  %6374 = vmatprep.subr.bf16.mxu0 %v7967_v23 }
 0x118   : > { %6396 = vmatprep.subr.bf16.mxu1 %v7967_v23 }
 0x11a   : > { %6375 = vmatpush3.bf16.msra.mxu0 %v7975_v24 }
 0x11b   : > { %6397 = vmatpush3.bf16.msra.mxu1 %v7975_v24  ;;  %6376 = vmatprep.subr.bf16.mxu0 %v7982_v52 }
 0x11c   : > { %6398 = vmatprep.subr.bf16.mxu1 %v7982_v52 }
 0x11e   : > { %6377 = vmatpush3.bf16.msra.mxu0 %v7991_v25 }
 0x11f   : > { %6399 = vmatpush3.bf16.msra.mxu1 %v7991_v25  ;;  %6378 = vmatprep.subr.bf16.mxu0 %v7997_v26 }
 0x120   : > { %6400 = vmatprep.subr.bf16.mxu1 %v7997_v26 }
 0x122   : > { %6379 = vmatpush3.bf16.msra.mxu0 %v8005_v37 }
 0x123   : > { %6401 = vmatpush3.bf16.msra.mxu1 %v8005_v37  ;;  %6380 = vmatprep.subr.bf16.mxu0 %v8011_v27 }
 0x124   : > { %6402 = vmatprep.subr.bf16.mxu1 %v8011_v27  ;;  %v6078_v0 = vpop.f32.mrb[4].mxu0 }
 0x125   : > { %v6100_v51 = vpop.f32.mrb[4].mxu1  ;;  %v6079_v33 = vpop.f32.mrb[5].mxu0 }
 0x126   : > { %v6101_v62 = vpop.f32.mrb[5].mxu1  ;;  %v6080_v34 = vadd.f32 %v6079_v33, %v6078_v0  ;;  %6381 = vmatpush3.bf16.msra.mxu0 %v8019_v28  ;;  %v6081_v36 = vpop.f32.mrb[6].mxu0 }
 0x127   : > { %v6102_v63 = vadd.f32 %v6101_v62, %v6100_v51  ;;  %v6103_v4 = vpop.f32.mrb[6].mxu1  ;;  %6403 = vmatpush3.bf16.msra.mxu1 %v8019_v28  ;;  %6382 = vmatprep.subr.bf16.mxu0 %v8025_v29  ;;  %v6082_v1 = vpop.f32.mrb[7].mxu0  ;;  %v8248_v51 = vld [vmem:[%s10787_s1 + $0x1b8] sm:$0xff]  }
 0x128   : > { %v6104_v61 = vpop.f32.mrb[7].mxu1  ;;  %6404 = vmatprep.subr.bf16.mxu1 %v8025_v29 }
 0x129   : > { %v8090_v7 = vadd.f32 %v6102_v63, %v6080_v34 }
 0x12a   : > { %6383 = vmatpush3.bf16.msra.mxu0 %v8033_v42 }
 0x12b   : > { %6405 = vmatpush3.bf16.msra.mxu1 %v8033_v42  ;;  %6384 = vmatprep.subr.bf16.mxu0 %v8039_v46 }
 0x12c   : > { %6406 = vmatprep.subr.bf16.mxu1 %v8039_v46 }
 0x12e   : > { %6385 = vmatpush3.bf16.msra.mxu0 %v8047_v48 }
 0x12f   : > { %6407 = vmatpush3.bf16.msra.mxu1 %v8047_v48  ;;  %6414 = vmatprep.subr.bf16.mxu0 %v7934_v16 }
 0x130   : > { %6436 = vmatprep.subr.bf16.mxu1 %v7934_v16 }
 0x131   : > { %1544 = vmatmul.mubr.bf16.vlgmr.msra.gmra.mrb[32].mxu0 %v7614_v3 }
 0x132   : > { %1585 = vmatmul.mubr.bf16.vlgmr.msra.gmra.mrb[32].mxu1 %v7777_v43  ;;  %6415 = vmatpush3.bf16.msra.mxu0 %v7942_v17 }
 0x133   : > { %6437 = vmatpush3.bf16.msra.mxu1 %v7942_v17  ;;  %1666 = vmatprep.mubr.bf16.mxu1 %v7879_v6 }
 0x134   : > { %6438 = vmatprep.subr.bf16.mxu1 %v7949_v20  ;;  %1625 = vmatprep.mubr.bf16.mxu0 %v7785_v45 }
 0x135   : > { %6416 = vmatprep.subr.bf16.mxu0 %v7949_v20 }
 0x136   : > { %6417 = vmatpush3.bf16.msra.mxu0 %v7958_v21 }
 0x137   : > { %6439 = vmatpush3.bf16.msra.mxu1 %v7958_v21  ;;  %6418 = vmatprep.subr.bf16.mxu0 %v7967_v23 }
 0x138   : > { %6440 = vmatprep.subr.bf16.mxu1 %v7967_v23 }
 0x13a   : > { %6419 = vmatpush3.bf16.msra.mxu0 %v7975_v24 }
 0x13b   : > { %6441 = vmatpush3.bf16.msra.mxu1 %v7975_v24  ;;  %6420 = vmatprep.subr.bf16.mxu0 %v7982_v52 }
 0x13c   : > { %6442 = vmatprep.subr.bf16.mxu1 %v7982_v52 }
 0x13e   : > { %6421 = vmatpush3.bf16.msra.mxu0 %v7991_v25 }
 0x13f   : > { %6443 = vmatpush3.bf16.msra.mxu1 %v7991_v25  ;;  %6422 = vmatprep.subr.bf16.mxu0 %v7997_v26 }
 0x140   : > { %6444 = vmatprep.subr.bf16.mxu1 %v7997_v26 }
 0x142   : > { %6423 = vmatpush3.bf16.msra.mxu0 %v8005_v37 }
 0x143   : > { %6445 = vmatpush3.bf16.msra.mxu1 %v8005_v37  ;;  %6424 = vmatprep.subr.bf16.mxu0 %v8011_v27 }
 0x144   : > { %6446 = vmatprep.subr.bf16.mxu1 %v8011_v27  ;;  %v6122_v10 = vpop.f32.mrb[8].mxu0 }
 0x145   : > { %v6144_v3 = vpop.f32.mrb[8].mxu1  ;;  %v6123_v11 = vpop.f32.mrb[9].mxu0 }
 0x146   : > { %v6145_v43 = vpop.f32.mrb[9].mxu1  ;;  %v6124_v50 = vadd.f32 %v6123_v11, %v6122_v10  ;;  %6425 = vmatpush3.bf16.msra.mxu0 %v8019_v28  ;;  %v6125_v14 = vpop.f32.mrb[10].mxu0 }
 0x147   : > { %v6146_v45 = vadd.f32 %v6145_v43, %v6144_v3  ;;  %v6147_v6 = vpop.f32.mrb[10].mxu1  ;;  %6447 = vmatpush3.bf16.msra.mxu1 %v8019_v28  ;;  %6426 = vmatprep.subr.bf16.mxu0 %v8025_v29  ;;  %v6126_v18 = vpop.f32.mrb[11].mxu0 }
 0x148   : > { %v6148_v8 = vpop.f32.mrb[11].mxu1  ;;  %6448 = vmatprep.subr.bf16.mxu1 %v8025_v29 }
 0x149   : > { %v8133_v19 = vadd.f32 %v6146_v45, %v6124_v50 }
 0x14a   : > { %6427 = vmatpush3.bf16.msra.mxu0 %v8033_v42 }
 0x14b   : > { %6449 = vmatpush3.bf16.msra.mxu1 %v8033_v42  ;;  %6428 = vmatprep.subr.bf16.mxu0 %v8039_v46 }
 0x14c   : > { %6450 = vmatprep.subr.bf16.mxu1 %v8039_v46 }
 0x14e   : > { %6429 = vmatpush3.bf16.msra.mxu0 %v8047_v48 }
 0x14f   : > { %6451 = vmatpush3.bf16.msra.mxu1 %v8047_v48  ;;  %6458 = vmatprep.subr.bf16.mxu0 %v7934_v16  ;;  %v8192_v16 = vld [vmem:[%s10787_s1 + $0x198] sm:$0xff]  }
 0x150   : > { %6480 = vmatprep.subr.bf16.mxu1 %v8129_v40 }
 0x151   : > { %1626 = vmatmul.mubr.bf16.vlgmr.msra.gmra.mrb[36].mxu0 %v7876_v5  ;;  %v8198_v5 = vld [vmem:[%s10787_s1 + $0x1e0] sm:$0xff]  }
 0x152   : > { %1667 = vmatmul.mubr.bf16.vlgmr.msra.gmra.mrb[36].mxu1 %v7924_v12  ;;  %v8169_v12 = vcombine.high %v8151_v32, %v8151_v32  ;;  %6459 = vmatpush3.bf16.msra.mxu0 %v7942_v17  ;;  %v8206_v17 = vld [vmem:[%s10787_s1 + $0x1a0] sm:$0xff]  }
 0x153   : > { %6481 = vmatpush3.bf16.msra.mxu1 %v8139_v30  ;;  %1884 = vmatprep.mubr.bf16.mxu1 %v7492_v49  ;;  %v8176_v49 = vld [vmem:[%s10787_s1 + $0x190] sm:$0xff]  }
 0x154   : > { %6482 = vmatprep.subr.bf16.mxu1 %v8145_v31  ;;  %1714 = vmatprep.mubr.bf16.mxu0 %v8169_v12  ;;  %v2108_v36 = vshll.u32 %v8169_v12, 16  ;;  %v2106_v43 = vshrl.u32 %v8169_v12, 16 }
 0x155   : > { %6460 = vmatprep.subr.bf16.mxu0 %v7949_v20  ;;  %v8212_v20 = vld [vmem:[%s10787_s1 + $0x1e8] sm:$0xff]  }
 0x156   : > { %6461 = vmatpush3.bf16.msra.mxu0 %v7958_v21  ;;  %v8220_v21 = vld [vmem:[%s10787_s1 + $0x1a8] sm:$0xff]   ;;  %v2110_v45 = vrot.slane %v2108_v36, 1 }
 0x157   : > { %6483 = vmatpush3.bf16.msra.mxu1 %v8157_v41  ;;  %6462 = vmatprep.subr.bf16.mxu0 %v7967_v23  ;;  %v8226_v23 = vld [vmem:[%s10787_s1 + $0x1f0] sm:$0xff]  }
 0x158   : > { %6484 = vmatprep.subr.bf16.mxu1 %v8164_v44  ;;  %v2111_v14 = vor.u32 %v2110_v45, %v2106_v43  ;;  %v8404_v45 = vld [vmem:[%s10788_s2] ss:$0 sm:$0xff] }
 0x15a   : > { %6463 = vmatpush3.bf16.msra.mxu0 %v7975_v24 }
 0x15b   : > { %6485 = vmatpush3.bf16.msra.mxu1 %v8176_v49  ;;  %6464 = vmatprep.subr.bf16.mxu0 %v7982_v52 }
 0x15c   : > { %6486 = vmatprep.subr.bf16.mxu1 %v8183_v47 }
 0x15e   : > { %6465 = vmatpush3.bf16.msra.mxu0 %v7991_v25  ;;  %v8240_v25 = vld [vmem:[%s10787_s1 + $0x1f8] sm:$0xff]  }
 0x15f   : > { %6487 = vmatpush3.bf16.msra.mxu1 %v8192_v16  ;;  %6466 = vmatprep.subr.bf16.mxu0 %v7997_v26 }
 0x160   : > { %6488 = vmatprep.subr.bf16.mxu1 %v8198_v5 }
 0x162   : > { %6467 = vmatpush3.bf16.msra.mxu0 %v8005_v37 }
 0x163   : > { %6489 = vmatpush3.bf16.msra.mxu1 %v8206_v17  ;;  %6468 = vmatprep.subr.bf16.mxu0 %v8011_v27  ;;  %v8264_v27 = vcombine.low %v8151_v32, %v8151_v32 }
 0x164   : > { %6490 = vmatprep.subr.bf16.mxu1 %v8212_v20  ;;  %v6166_v26 = vpop.f32.mrb[12].mxu0 }
 0x165   : > { %v6188_v53 = vpop.f32.mrb[12].mxu1  ;;  %v6167_v62 = vpop.f32.mrb[13].mxu0 }
 0x166   : > { %v6189_v24 = vpop.f32.mrb[13].mxu1  ;;  %v6168_v63 = vadd.f32 %v6167_v62, %v6166_v26  ;;  %6469 = vmatpush3.bf16.msra.mxu0 %v8019_v28  ;;  %v6169_v4 = vpop.f32.mrb[14].mxu0 }
 0x167   : > { %v6190_v52 = vadd.f32 %v6189_v24, %v6188_v53  ;;  %v6191_v55 = vpop.f32.mrb[14].mxu1  ;;  %6491 = vmatpush3.bf16.msra.mxu1 %v8220_v21  ;;  %6470 = vmatprep.subr.bf16.mxu0 %v8025_v29  ;;  %v6170_v37 = vpop.f32.mrb[15].mxu0 }
 0x168   : > { %v6192_v57 = vpop.f32.mrb[15].mxu1  ;;  %6492 = vmatprep.subr.bf16.mxu1 %v8226_v23 }
 0x169   : > { %v8253_v61 = vadd.f32 %v6190_v52, %v6168_v63 }
 0x16a   : > { %6471 = vmatpush3.bf16.msra.mxu0 %v8033_v42 }
 0x16b   : > { %6493 = vmatpush3.bf16.msra.mxu1 %v8234_v56  ;;  %6472 = vmatprep.subr.bf16.mxu0 %v8039_v46 }
 0x16c   : > { %6494 = vmatprep.subr.bf16.mxu1 %v8240_v25 }
 0x16e   : > { %6473 = vmatpush3.bf16.msra.mxu0 %v8047_v48 }
 0x16f   : > { %6495 = vmatpush3.bf16.msra.mxu1 %v8248_v51  ;;  %6502 = vmatprep.subr.bf16.mxu0 %v8129_v40 }
 0x170   : > { %6524 = vmatprep.subr.bf16.mxu1 %v8129_v40 }
 0x171   : > { %1715 = vmatmul.mubr.bf16.vlgmr.msra.gmra.mrb[40].mxu0 %v8264_v27 }
 0x172   : > { %1885 = vmatmul.mubr.bf16.vlgmr.msra.gmra.mrb[40].mxu1 %v7535_v59  ;;  %6503 = vmatpush3.bf16.msra.mxu0 %v8139_v30 }
 0x173   : > { %6525 = vmatpush3.bf16.msra.mxu1 %v8139_v30  ;;  %1966 = vmatprep.mubr.bf16.mxu1 %v7588_v2 }
 0x174   : > { %6526 = vmatprep.subr.bf16.mxu1 %v8145_v31  ;;  %1925 = vmatprep.mubr.bf16.mxu0 %v7539_v60 }
 0x175   : > { %6504 = vmatprep.subr.bf16.mxu0 %v8145_v31 }
 0x176   : > { %6505 = vmatpush3.bf16.msra.mxu0 %v8157_v41 }
 0x177   : > { %6527 = vmatpush3.bf16.msra.mxu1 %v8157_v41  ;;  %6506 = vmatprep.subr.bf16.mxu0 %v8164_v44 }
 0x178   : > { %6528 = vmatprep.subr.bf16.mxu1 %v8164_v44 }
 0x17a   : > { %6507 = vmatpush3.bf16.msra.mxu0 %v8176_v49 }
 0x17b   : > { %6529 = vmatpush3.bf16.msra.mxu1 %v8176_v49  ;;  %6508 = vmatprep.subr.bf16.mxu0 %v8183_v47 }
 0x17c   : > { %6530 = vmatprep.subr.bf16.mxu1 %v8183_v47 }
 0x17e   : > { %6509 = vmatpush3.bf16.msra.mxu0 %v8192_v16 }
 0x17f   : > { %6531 = vmatpush3.bf16.msra.mxu1 %v8192_v16  ;;  %6510 = vmatprep.subr.bf16.mxu0 %v8198_v5 }
 0x180   : > { %6532 = vmatprep.subr.bf16.mxu1 %v8198_v5 }
 0x182   : > { %6511 = vmatpush3.bf16.msra.mxu0 %v8206_v17 }
 0x183   : > { %6533 = vmatpush3.bf16.msra.mxu1 %v8206_v17  ;;  %6512 = vmatprep.subr.bf16.mxu0 %v8212_v20 }
 0x184   : > { %6534 = vmatprep.subr.bf16.mxu1 %v8212_v20  ;;  %v6210_v42 = vpop.f32.mrb[16].mxu0 }
 0x185   : > { %v6232_v59 = vpop.f32.mrb[16].mxu1  ;;  %v6211_v46 = vpop.f32.mrb[17].mxu0 }
 0x186   : > { %v6233_v60 = vpop.f32.mrb[17].mxu1  ;;  %v6212_v48 = vadd.f32 %v6211_v46, %v6210_v42  ;;  %6513 = vmatpush3.bf16.msra.mxu0 %v8220_v21  ;;  %v6213_v0 = vpop.f32.mrb[18].mxu0 }
 0x187   : > { %v6234_v2 = vadd.f32 %v6233_v60, %v6232_v59  ;;  %v6235_v28 = vpop.f32.mrb[18].mxu1  ;;  %6535 = vmatpush3.bf16.msra.mxu1 %v8220_v21  ;;  %6514 = vmatprep.subr.bf16.mxu0 %v8226_v23  ;;  %v6214_v33 = vpop.f32.mrb[19].mxu0 }
 0x188   : > { %v6236_v29 = vpop.f32.mrb[19].mxu1  ;;  %6536 = vmatprep.subr.bf16.mxu1 %v8226_v23 }
 0x189   : > { %v8295_v34 = vadd.f32 %v6234_v2, %v6212_v48 }
 0x18a   : > { %6515 = vmatpush3.bf16.msra.mxu0 %v8234_v56 }
 0x18b   : > { %6537 = vmatpush3.bf16.msra.mxu1 %v8234_v56  ;;  %6516 = vmatprep.subr.bf16.mxu0 %v8240_v25 }
 0x18c   : > { %6538 = vmatprep.subr.bf16.mxu1 %v8240_v25 }
 0x18e   : > { %6517 = vmatpush3.bf16.msra.mxu0 %v8248_v51 }
 0x18f   : > { %6539 = vmatpush3.bf16.msra.mxu1 %v8248_v51  ;;  %6546 = vmatprep.subr.bf16.mxu0 %v8129_v40 }
 0x190   : > { %6568 = vmatprep.subr.bf16.mxu1 %v8129_v40 }
 0x191   : > { %1926 = vmatmul.mubr.bf16.vlgmr.msra.gmra.mrb[44].mxu0 %v7584_v39 }
 0x192   : > { %1967 = vmatmul.mubr.bf16.vlgmr.msra.gmra.mrb[44].mxu1 %v7647_v13  ;;  %6547 = vmatpush3.bf16.msra.mxu0 %v8139_v30 }
 0x193   : > { %6569 = vmatpush3.bf16.msra.mxu1 %v8139_v30  ;;  %2048 = vmatprep.mubr.bf16.mxu1 %v7852_v38 }
 0x194   : > { %6570 = vmatprep.subr.bf16.mxu1 %v8145_v31  ;;  %2007 = vmatprep.mubr.bf16.mxu0 %v7656_v15 }
 0x195   : > { %6548 = vmatprep.subr.bf16.mxu0 %v8145_v31 }
 0x196   : > { %6549 = vmatpush3.bf16.msra.mxu0 %v8157_v41 }
 0x197   : > { %6571 = vmatpush3.bf16.msra.mxu1 %v8157_v41  ;;  %6550 = vmatprep.subr.bf16.mxu0 %v8164_v44 }
 0x198   : > { %6572 = vmatprep.subr.bf16.mxu1 %v8164_v44 }
 0x19a   : > { %6551 = vmatpush3.bf16.msra.mxu0 %v8176_v49 }
 0x19b   : > { %6573 = vmatpush3.bf16.msra.mxu1 %v8176_v49  ;;  %6552 = vmatprep.subr.bf16.mxu0 %v8183_v47 }
 0x19c   : > { %6574 = vmatprep.subr.bf16.mxu1 %v8183_v47 }
 0x19e   : > { %6553 = vmatpush3.bf16.msra.mxu0 %v8192_v16 }
 0x19f   : > { %6575 = vmatpush3.bf16.msra.mxu1 %v8192_v16  ;;  %6554 = vmatprep.subr.bf16.mxu0 %v8198_v5 }
 0x1a0   : > { %6576 = vmatprep.subr.bf16.mxu1 %v8198_v5 }
 0x1a2   : > { %6555 = vmatpush3.bf16.msra.mxu0 %v8206_v17 }
 0x1a3   : > { %6577 = vmatpush3.bf16.msra.mxu1 %v8206_v17  ;;  %6556 = vmatprep.subr.bf16.mxu0 %v8212_v20 }
 0x1a4   : > { %6578 = vmatprep.subr.bf16.mxu1 %v8212_v20  ;;  %v6254_v3 = vpop.f32.mrb[20].mxu0 }
 0x1a5   : > { %v6276_v39 = vpop.f32.mrb[20].mxu1  ;;  %v6255_v6 = vpop.f32.mrb[21].mxu0 }
 0x1a6   : > { %v6277_v13 = vpop.f32.mrb[21].mxu1  ;;  %v6256_v8 = vadd.f32 %v6255_v6, %v6254_v3  ;;  %6557 = vmatpush3.bf16.msra.mxu0 %v8220_v21  ;;  %v6257_v10 = vpop.f32.mrb[22].mxu0 }
 0x1a7   : > { %v6278_v15 = vadd.f32 %v6277_v13, %v6276_v39  ;;  %v6279_v38 = vpop.f32.mrb[22].mxu1  ;;  %6579 = vmatpush3.bf16.msra.mxu1 %v8220_v21  ;;  %6558 = vmatprep.subr.bf16.mxu0 %v8226_v23  ;;  %v6258_v11 = vpop.f32.mrb[23].mxu0 }
 0x1a8   : > { %v6280_v1 = vpop.f32.mrb[23].mxu1  ;;  %6580 = vmatprep.subr.bf16.mxu1 %v8226_v23 }
 0x1a9   : > { %v8335_v50 = vadd.f32 %v6278_v15, %v6256_v8 }
 0x1aa   : > { %6559 = vmatpush3.bf16.msra.mxu0 %v8234_v56 }
 0x1ab   : > { %6581 = vmatpush3.bf16.msra.mxu1 %v8234_v56  ;;  %6560 = vmatprep.subr.bf16.mxu0 %v8240_v25 }
 0x1ac   : > { %6582 = vmatprep.subr.bf16.mxu1 %v8240_v25 }
 0x1ae   : > { %6561 = vmatpush3.bf16.msra.mxu0 %v8248_v51 }
 0x1af   : > { %6583 = vmatpush3.bf16.msra.mxu1 %v8248_v51  ;;  %6590 = vmatprep.subr.bf16.mxu0 %v8129_v40 }
 0x1b0   : > { %6612 = vmatprep.subr.bf16.mxu1 %v8129_v40 }
 0x1b1   : > { %2008 = vmatmul.mubr.bf16.vlgmr.msra.gmra.mrb[48].mxu0 %v7843_v35 }
 0x1b2   : > { %2049 = vmatmul.mubr.bf16.vlgmr.msra.gmra.mrb[48].mxu1 %v7897_v54  ;;  %6591 = vmatpush3.bf16.msra.mxu0 %v8139_v30 }
 0x1b3   : > { %6613 = vmatpush3.bf16.msra.mxu1 %v8139_v30  ;;  %2146 = vmatprep.mubr.bf16.mxu1 %v2111_v14  ;;  %v7219_v14 = vmov 65535  }
 0x1b4   : > { %6614 = vmatprep.subr.bf16.mxu1 %v8145_v31  ;;  %2089 = vmatprep.mubr.bf16.mxu0 %v7901_v9  ;;  %v2101_v9 = vshll.u32 %v8264_v27, 16 }
 0x1b5   : > { %6592 = vmatprep.subr.bf16.mxu0 %v8145_v31  ;;  %v2099_v31 = vshrl.u32 %v8264_v27, 16 }
 0x1b6   : > { %6593 = vmatpush3.bf16.msra.mxu0 %v8157_v41  ;;  %v2103_v32 = vrot.slane %v2101_v9, 1 }
 0x1b7   : > { %6615 = vmatpush3.bf16.msra.mxu1 %v8157_v41  ;;  %6594 = vmatprep.subr.bf16.mxu0 %v8164_v44 }
 0x1b8   : > { %6616 = vmatprep.subr.bf16.mxu1 %v8164_v44 }
 0x1ba   : > { %6595 = vmatpush3.bf16.msra.mxu0 %v8176_v49 }
 0x1bb   : > { %6617 = vmatpush3.bf16.msra.mxu1 %v8176_v49  ;;  %6596 = vmatprep.subr.bf16.mxu0 %v8183_v47 }
 0x1bc   : > { %6618 = vmatprep.subr.bf16.mxu1 %v8183_v47  ;;  %v2104_v47 = vor.u32 %v2103_v32, %v2099_v31 }
 0x1be   : > { %6597 = vmatpush3.bf16.msra.mxu0 %v8192_v16 }
 0x1bf   : > { %6619 = vmatpush3.bf16.msra.mxu1 %v8192_v16  ;;  %6598 = vmatprep.subr.bf16.mxu0 %v8198_v5 }
 0x1c0   : > { %6620 = vmatprep.subr.bf16.mxu1 %v8198_v5 }
 0x1c2   : > { %6599 = vmatpush3.bf16.msra.mxu0 %v8206_v17 }
 0x1c3   : > { %6621 = vmatpush3.bf16.msra.mxu1 %v8206_v17  ;;  %6600 = vmatprep.subr.bf16.mxu0 %v8212_v20  ;;  %v7217_v17 = vmov 0.0  }
 0x1c4   : > { %6622 = vmatprep.subr.bf16.mxu1 %v8212_v20  ;;  %v6298_v41 = vpop.f32.mrb[24].mxu0 }
 0x1c5   : > { %v6320_v35 = vpop.f32.mrb[24].mxu1  ;;  %v6299_v44 = vpop.f32.mrb[25].mxu0 }
 0x1c6   : > { %v6321_v54 = vpop.f32.mrb[25].mxu1  ;;  %v6300_v12 = vadd.f32 %v6299_v44, %v6298_v41  ;;  %6601 = vmatpush3.bf16.msra.mxu0 %v8220_v21  ;;  %v6301_v49 = vpop.f32.mrb[26].mxu0  ;;  %v8417_v44 = vld [vmem:[%s10791_s5] sm:$0xf] }
 0x1c7   : > { %v6322_v40 = vadd.f32 %v6321_v54, %v6320_v35  ;;  %v6323_v18 = vpop.f32.mrb[26].mxu1  ;;  %6623 = vmatpush3.bf16.msra.mxu1 %v8220_v21  ;;  %6602 = vmatprep.subr.bf16.mxu0 %v8226_v23  ;;  %v6302_v16 = vpop.f32.mrb[27].mxu0 }
 0x1c8   : > { %v6324_v30 = vpop.f32.mrb[27].mxu1  ;;  %6624 = vmatprep.subr.bf16.mxu1 %v8226_v23 }
 0x1c9   : > { %v8374_v5 = vadd.f32 %v6322_v40, %v6300_v12 }
 0x1ca   : > { %6603 = vmatpush3.bf16.msra.mxu0 %v8234_v56 }
 0x1cb   : > { %6625 = vmatpush3.bf16.msra.mxu1 %v8234_v56  ;;  %6604 = vmatprep.subr.bf16.mxu0 %v8240_v25 }
 0x1cc   : > { %6626 = vmatprep.subr.bf16.mxu1 %v8240_v25 }
 0x1ce   : > { %6605 = vmatpush3.bf16.msra.mxu0 %v8248_v51 }
 0x1cf   : > { %6627 = vmatpush3.bf16.msra.mxu1 %v8248_v51  ;;  %6648 = vmatprep.subr.bf16.mxu0 %v7217_v17 }
 0x1d0   : > { %6654 = vmatprep.subr.bf16.mxu1 %v7217_v17 }
 0x1d1   : > { %2090 = vmatmul.mubr.bf16.vlgmr.msra.gmra.mrb[52].mxu0 %v7961_v22 }
 0x1d2   : > { %2147 = vmatmul.mubr.bf16.vlgmr.msra.gmra.mrb[52].mxu1 %v2104_v47  ;;  %6650 = vmatprep.mubr.msk.bf16.mxu0 %vm7218_vm0, %v7217_v17 }
 0x1d3   : > { %6656 = vmatprep.mubr.msk.bf16.mxu1 %vm7218_vm0, %v7217_v17 }
 0x1e4   : > { %v6342_v55 = vpop.f32.mrb[28].mxu0 }
 0x1e5   : > { %v6364_v20 = vpop.f32.mrb[28].mxu1  ;;  %v6343_v56 = vpop.f32.mrb[29].mxu0 }
 0x1e6   : > { %v6365_v21 = vpop.f32.mrb[29].mxu1  ;;  %v6344_v57 = vadd.f32 %v6343_v56, %v6342_v55  ;;  %v6345_v25 = vpop.f32.mrb[30].mxu0 }
 0x1e7   : > { %v6366_v23 = vadd.f32 %v6365_v21, %v6364_v20  ;;  %v6367_v53 = vpop.f32.mrb[30].mxu1  ;;  %v6346_v26 = vpop.f32.mrb[31].mxu0 }
 0x1e8   : > { %v6368_v24 = vpop.f32.mrb[31].mxu1  ;;  %v1469_v51 = vadd.f32 %v6344_v57, %v8052_v58 }
 0x1e9   : > { %v8388_v52 = vadd.f32 %v6366_v23, %v8090_v7 }
 0x204   : > { %v6386_v59 = vpop.f32.mrb[32].mxu0 }
 0x205   : > { %v6408_v62 = vpop.f32.mrb[32].mxu1  ;;  %v6387_v60 = vpop.f32.mrb[33].mxu0 }
 0x206   : > { %v6409_v22 = vpop.f32.mrb[33].mxu1  ;;  %v6388_v2 = vadd.f32 %v6387_v60, %v6386_v59  ;;  %v6389_v7 = vpop.f32.mrb[34].mxu0 }
 0x207   : > { %v6410_v63 = vadd.f32 %v6409_v22, %v6408_v62  ;;  %v6411_v4 = vpop.f32.mrb[34].mxu1  ;;  %v6390_v28 = vpop.f32.mrb[35].mxu0 }
 0x208   : > { %v6412_v37 = vpop.f32.mrb[35].mxu1  ;;  %v1551_v29 = vadd.f32 %v6388_v2, %v8133_v19 }
 0x209   : > { %v8392_v27 = vadd.f32 %v6410_v63, %v8253_v61 }
 0x224   : > { %v6430_v39 = vpop.f32.mrb[36].mxu0 }
 0x225   : > { %v6452_v42 = vpop.f32.mrb[36].mxu1  ;;  %v6431_v13 = vpop.f32.mrb[37].mxu0 }
 0x226   : > { %v6453_v46 = vpop.f32.mrb[37].mxu1  ;;  %v6432_v15 = vadd.f32 %v6431_v13, %v6430_v39  ;;  %v6433_v61 = vpop.f32.mrb[38].mxu0 }
 0x227   : > { %v6454_v48 = vadd.f32 %v6453_v46, %v6452_v42  ;;  %v6455_v0 = vpop.f32.mrb[38].mxu1  ;;  %v6434_v38 = vpop.f32.mrb[39].mxu0 }
 0x228   : > { %v6456_v58 = vpop.f32.mrb[39].mxu1  ;;  %v8399_v36 = vadd.f32 %v6432_v15, %v8295_v34  ;;  %v2204_v34 = vsel %vm2202_vm1, 4294967295, %v7219_v14 }
 0x229   : > { %v8396_v33 = vadd.f32 %v6454_v48, %v8335_v50  ;;  %v8411_v31 = vsel %vm2203_vm2, %v2204_v34, 0 }
 0x244   : > { %v6474_v10 = vpop.f32.mrb[40].mxu0 }
 0x245   : > { %v6496_v1 = vpop.f32.mrb[40].mxu1  ;;  %v6475_v50 = vpop.f32.mrb[41].mxu0 }
 0x246   : > { %v6497_v3 = vpop.f32.mrb[41].mxu1  ;;  %v6476_v35 = vadd.f32 %v6475_v50, %v6474_v10  ;;  %v6477_v9 = vpop.f32.mrb[42].mxu0 }
 0x247   : > { %v6498_v43 = vadd.f32 %v6497_v3, %v6496_v1  ;;  %v6499_v19 = vpop.f32.mrb[42].mxu1  ;;  %v6478_v40 = vpop.f32.mrb[43].mxu0 }
 0x248   : > { %v6500_v6 = vpop.f32.mrb[43].mxu1  ;;  %v8409_v18 = vadd.f32 %v6476_v35, %v8374_v5 }
 0x249   : > { %v1892_v8 = vadd.f32 %v6498_v43, %v1469_v51 }
 0x24b   : > { %v2162_v11 = vadd.f32 %v8404_v45, %v1892_v8 }
 0x24d   : > { %vm2163_vm3 = vcmp.gt.f32.partialorder %v2162_v11, 0.0  ;;  %v2164_v54 = vmul.f32 0.2, %v2162_v11 }
 0x24f   : > { %v2165_v30 = vsel %vm2163_vm3, %v2162_v11, %v2164_v54 }
 0x250   : > { %v2166_v32 = vpack.c.bf16 %v2165_v30, %v2165_v30 }
 0x252   : > { %v2207_v41 = vand.u32 %v8411_v31, %v2166_v32 }
 0x254   : > { %6649 = vmatpush3.bf16.msra.mxu0 %v2207_v41 }
 0x255   : > { %6660 = vmatprep.subr.bf16.mxu0 %v7217_v17 }
 0x257   : > { %6651 = vmatmul.mubr.msk.bf16.vlgmr.msra.gmra.mrb[56].mxu0 %vm2198_vm4, %v8417_v44 }
 0x258   : > { %6662 = vmatprep.mubr.msk.bf16.mxu0 %vm7218_vm0, %v7217_v17 }
 0x264   : > { %v6518_v21 = vpop.f32.mrb[44].mxu0 }
 0x265   : > { %v6540_v12 = vpop.f32.mrb[44].mxu1  ;;  %v6519_v53 = vpop.f32.mrb[45].mxu0 }
 0x266   : > { %v6541_v49 = vpop.f32.mrb[45].mxu1  ;;  %v6520_v24 = vadd.f32 %v6519_v53, %v6518_v21  ;;  %v6521_v56 = vpop.f32.mrb[46].mxu0 }
 0x267   : > { %v6542_v47 = vadd.f32 %v6541_v49, %v6540_v12  ;;  %v6543_v16 = vpop.f32.mrb[46].mxu1  ;;  %v6522_v57 = vpop.f32.mrb[47].mxu0  ;;  %v8500_v56 = vld [vmem:[%s10789_s3 + $0x200] ss:$8 sps:$4 sm:$0xff]  }
 0x268   : > { %v6544_v5 = vpop.f32.mrb[47].mxu1  ;;  %v1933_v25 = vadd.f32 %v6520_v24, %v8388_v52  ;;  %v10795_v52 = vmov 0   ;;  %v8463_v16 = vld [vmem:[%s10789_s3 + $0x304] ss:$8 sps:$4 sm:$0xff]   ;;  %v8489_v24 = vld [vmem:[%s10789_s3 + $0x310] ss:$8 sps:$4 sm:$0xff]  }
 0x269   : > { %v1974_v20 = vadd.f32 %v6542_v47, %v1551_v29  ;;  %6702 = vset.pattern.permute.xlu0 %v10795_v52  ;;  %v8509_v57 = vld [vmem:[%s10789_s3 + $0x214] ss:$8 sps:$4 sm:$0xff]  }
 0x26a   : > { %v2167_v62 = vadd.f32 %v8404_v45, %v1933_v25  ;;  %v8515_v25 = vld [vmem:[%s10789_s3 + $0x320] ss:$8 sps:$4 sm:$0xff]  }
 0x26b   : > { %v2172_v23 = vadd.f32 %v8404_v45, %v1974_v20  ;;  %v8469_v20 = vld [vmem:[%s10789_s3 + $0x300] ss:$8 sps:$4 sm:$0xff]  }
 0x26c   : > { %vm2168_vm6 = vcmp.gt.f32.partialorder %v2167_v62, 0.0  ;;  %v2169_v63 = vmul.f32 0.2, %v2167_v62 }
 0x26d   : > { %vm2173_vm5 = vcmp.gt.f32.partialorder %v2172_v23, 0.0  ;;  %v2174_v55 = vmul.f32 0.2, %v2172_v23 }
 0x26e   : > { %v2170_v4 = vsel %vm2168_vm6, %v2167_v62, %v2169_v63  ;;  %v8542_v62 = vld [vmem:[%s10789_s3 + $0x330] ss:$8 sps:$4 sm:$0xff]   ;;  %v8554_v63 = vld [vmem:[%s10789_s3 + $0x220] ss:$8 sps:$4 sm:$0xff]  }
 0x26f   : > { %v2175_v26 = vsel %vm2173_vm5, %v2172_v23, %v2174_v55  ;;  %v2171_v37 = vpack.c.bf16 %v2170_v4, %v2170_v4  ;;  %v8480_v23 = vld [vmem:[%s10789_s3 + $0x204] ss:$8 sps:$4 sm:$0xff]   ;;  %10987 = vst [vmem:[#allocation4_spill] sm:$0xff] %v8554_v63  ;;  %v8560_v4 = vld [vmem:[%s10789_s3 + $0x234] ss:$8 sps:$4 sm:$0xff]  }
 0x270   : > { %v2176_v51 = vpack.c.bf16 %v2175_v26, %v2175_v26  ;;  %v8495_v55 = vld [vmem:[%s10789_s3 + $0x324] ss:$8 sps:$4 sm:$0xff]   ;;  %v8523_v26 = vld [vmem:[%s10789_s3 + $0x334] ss:$8 sps:$4 sm:$0xff]   ;;  %10988 = vst [vmem:[#allocation5_spill] sm:$0xff] %v8560_v4 }
 0x271   : > { %v2251_v59 = vand.u32 %v8411_v31, %v2171_v37  ;;  %v8566_v37 = vld [vmem:[%s10789_s3 + $0x340] ss:$8 sps:$4 sm:$0xff]  }
 0x272   : > { %v2295_v22 = vand.u32 %v8411_v31, %v2176_v51  ;;  %v8529_v51 = vld [vmem:[%s10789_s3 + $0x210] ss:$8 sps:$4 sm:$0xff]  }
 0x273   : > { %6655 = vmatpush3.bf16.msra.mxu1 %v2251_v59  ;;  %v8572_v59 = vld [vmem:[%s10789_s3 + $0x354] ss:$8 sps:$4 sm:$0xff]  }
 0x274   : > { %6661 = vmatpush3.bf16.msra.mxu0 %v2295_v22  ;;  %6666 = vmatprep.subr.bf16.mxu1 %v7217_v17  ;;  %v8548_v22 = vld [vmem:[%s10789_s3 + $0x344] ss:$8 sps:$4 sm:$0xff]  }
 0x275   : > { %6672 = vmatprep.subr.bf16.mxu0 %v7217_v17 }
 0x276   : > { %6657 = vmatmul.mubr.msk.bf16.vlgmr.msra.gmra.mrb[56].mxu1 %vm2198_vm4, %v8417_v44 }
 0x277   : > { %6663 = vmatmul.mubr.msk.bf16.vlgmr.msra.gmra.mrb[60].mxu0 %vm2198_vm4, %v8417_v44  ;;  %6668 = vmatprep.mubr.msk.bf16.mxu1 %vm7218_vm0, %v7217_v17 }
 0x278   : > { %6674 = vmatprep.mubr.msk.bf16.mxu0 %vm7218_vm0, %v7217_v17 }
 0x284   : > { %v6562_v46 = vpop.f32.mrb[48].mxu0 }
 0x285   : > { %v6584_v60 = vpop.f32.mrb[48].mxu1  ;;  %v6563_v0 = vpop.f32.mrb[49].mxu0 }
 0x286   : > { %v6585_v2 = vpop.f32.mrb[49].mxu1  ;;  %v6564_v58 = vadd.f32 %v6563_v0, %v6562_v46  ;;  %v6565_v13 = vpop.f32.mrb[50].mxu0  ;;  %v8614_v46 = vld [vmem:[%s10789_s3 + $0x360] ss:$8 sps:$4 sm:$0xff]   ;;  %v8626_v0 = vld [vmem:[%s10789_s3 + $0x250] ss:$8 sps:$4 sm:$0xff]  }
 0x287   : > { %v6586_v7 = vadd.f32 %v6585_v2, %v6584_v60  ;;  %v6587_v28 = vpop.f32.mrb[50].mxu1  ;;  %v6566_v15 = vpop.f32.mrb[51].mxu0  ;;  %v8578_v60 = vld [vmem:[%s10789_s3 + $0x230] ss:$8 sps:$4 sm:$0xff]   ;;  %v8584_v2 = vld [vmem:[%s10789_s3 + $0x244] ss:$8 sps:$4 sm:$0xff]  }
 0x288   : > { %v6588_v29 = vpop.f32.mrb[51].mxu1  ;;  %v2015_v61 = vadd.f32 %v6564_v58, %v8392_v27  ;;  %10989 = vst [vmem:[#allocation6_spill] sm:$0xff] %v8578_v60  ;;  %v8596_v28 = vld [vmem:[%s10789_s3 + $0x364] ss:$8 sps:$4 sm:$0xff]   ;;  %10994 = vst [vmem:[#allocation11_spill] sm:$0xff] %v8614_v46 }
 0x289   : > { %v2056_v42 = vadd.f32 %v6586_v7, %v8399_v36  ;;  %v8590_v7 = vld [vmem:[%s10789_s3 + $0x350] ss:$8 sps:$4 sm:$0xff]   ;;  %10991 = vst [vmem:[#allocation8_spill] sm:$0xff] %v8596_v28  ;;  %v8602_v29 = vld [vmem:[%s10789_s3 + $0x240] ss:$8 sps:$4 sm:$0xff]  }
 0x28a   : > { %v2177_v3 = vadd.f32 %v8404_v45, %v2015_v61  ;;  %10990 = vst [vmem:[#allocation7_spill] sm:$0xff] %v8590_v7  ;;  %10992 = vst [vmem:[#allocation9_spill] sm:$0xff] %v8602_v29  ;;  %v8632_v58 = vld [vmem:[%s10789_s3 + $0x264] ss:$8 sps:$4 sm:$0xff]   ;;  %v8650_v15 = vld [vmem:[%s10789_s3 + $0x260] ss:$8 sps:$4 sm:$0xff]  }
 0x28b   : > { %v2182_v48 = vadd.f32 %v8404_v45, %v2056_v42  ;;  %v8608_v42 = vld [vmem:[%s10789_s3 + $0x254] ss:$8 sps:$4 sm:$0xff]   ;;  %10996 = vst [vmem:[#allocation13_spill] sm:$0xff] %v8632_v58  ;;  %v8644_v13 = vld [vmem:[%s10789_s3 + $0x384] ss:$8 sps:$4 sm:$0xff]  }
 0x28c   : > { %vm2178_vm8 = vcmp.gt.f32.partialorder %v2177_v3, 0.0  ;;  %v2179_v19 = vmul.f32 0.2, %v2177_v3  ;;  %10993 = vst [vmem:[#allocation10_spill] sm:$0xff] %v8608_v42  ;;  %10998 = vst [vmem:[#allocation15_spill] sm:$0xff] %v8644_v13 }
 0x28d   : > { %vm2183_vm7 = vcmp.gt.f32.partialorder %v2182_v48, 0.0  ;;  %v2184_v39 = vmul.f32 0.2, %v2182_v48  ;;  %v8656_v61 = vld [vmem:[%s10789_s3 + $0x274] ss:$8 sps:$4 sm:$0xff]  }
 0x28e   : > { %v2180_v36 = vsel %vm2178_vm8, %v2177_v3, %v2179_v19  ;;  %v8674_v3 = vld [vmem:[%s10789_s3 + $0x270] ss:$8 sps:$4 sm:$0xff]  }
 0x28f   : > { %v2185_v38 = vsel %vm2183_vm7, %v2182_v48, %v2184_v39  ;;  %v2181_v6 = vpack.c.bf16 %v2180_v36, %v2180_v36  ;;  %v8620_v48 = vld [vmem:[%s10789_s3 + $0x374] ss:$8 sps:$4 sm:$0xff]   ;;  %v8638_v39 = vld [vmem:[%s10789_s3 + $0x370] ss:$8 sps:$4 sm:$0xff]   ;;  %v8692_v36 = vld [vmem:[%s10789_s3 + $0x3a4] ss:$8 sps:$4 sm:$0xff]  }
 0x290   : > { %v2186_v1 = vpack.c.bf16 %v2185_v38, %v2185_v38  ;;  %10995 = vst [vmem:[#allocation12_spill] sm:$0xff] %v8620_v48  ;;  %10997 = vst [vmem:[#allocation14_spill] sm:$0xff] %v8638_v39  ;;  %v8662_v38 = vld [vmem:[%s10789_s3 + $0x380] ss:$8 sps:$4 sm:$0xff]   ;;  %v8686_v19 = vld [vmem:[%s10789_s3 + $0x390] ss:$8 sps:$4 sm:$0xff]  }
 0x291   : > { %v2339_v8 = vand.u32 %v8411_v31, %v2181_v6  ;;  %10999 = vst [vmem:[#allocation16_spill] sm:$0xff] %v8662_v38  ;;  %11001 = vst [vmem:[#allocation18_spill] sm:$0xff] %v8686_v19  ;;  %v8698_v6 = vld [vmem:[%s10789_s3 + $0x280] ss:$8 sps:$4 sm:$0xff]  }
 0x292   : > { %v2383_v43 = vand.u32 %v8411_v31, %v2186_v1  ;;  %v8668_v1 = vld [vmem:[%s10789_s3 + $0x394] ss:$8 sps:$4 sm:$0xff]   ;;  %11002 = vst [vmem:[#allocation19_spill] sm:$0xff] %v8692_v36 }
 0x293   : > { %6667 = vmatpush3.bf16.msra.mxu1 %v2339_v8  ;;  %11000 = vst [vmem:[#allocation17_spill] sm:$0xff] %v8668_v1  ;;  %v8704_v8 = vld [vmem:[%s10789_s3 + $0x294] ss:$8 sps:$4 sm:$0xff]  }
 0x294   : > { %6673 = vmatpush3.bf16.msra.mxu0 %v2383_v43  ;;  %6678 = vmatprep.subr.bf16.mxu1 %v7217_v17  ;;  %v8680_v43 = vld [vmem:[%s10789_s3 + $0x284] ss:$8 sps:$4 sm:$0xff]  }
 0x295   : > { %6684 = vmatprep.subr.bf16.mxu0 %v7217_v17 }
 0x296   : > { %6669 = vmatmul.mubr.msk.bf16.vlgmr.msra.gmra.mrb[60].mxu1 %vm2198_vm4, %v8417_v44 }
 0x297   : > { %6675 = vmatmul.mubr.msk.bf16.vlgmr.msra.gmra.mrb[64].mxu0 %vm2198_vm4, %v8417_v44  ;;  %6680 = vmatprep.mubr.msk.bf16.mxu1 %vm7218_vm0, %v7217_v17 }
 0x298   : > { %6686 = vmatprep.mubr.msk.bf16.mxu0 %vm7218_vm0, %v7217_v17 }
 0x2a4   : > { %v6606_v35 = vpop.f32.mrb[52].mxu0 }
 0x2a5   : > { %v6628_v27 = vpop.f32.mrb[52].mxu1  ;;  %v6607_v9 = vpop.f32.mrb[53].mxu0 }
 0x2a6   : > { %v6629_v10 = vpop.f32.mrb[53].mxu1  ;;  %v6608_v40 = vadd.f32 %v6607_v9, %v6606_v35  ;;  %v6609_v32 = vpop.f32.mrb[54].mxu0  ;;  %v8746_v35 = vld [vmem:[%s10789_s3 + $0x2a0] ss:$8 sps:$4 sm:$0xff]  }
 0x2a7   : > { %v6630_v11 = vadd.f32 %v6629_v10, %v6628_v27  ;;  %v6631_v50 = vpop.f32.mrb[54].mxu1  ;;  %v6610_v41 = vpop.f32.mrb[55].mxu0  ;;  %v8710_v27 = vld [vmem:[%s10789_s3 + $0x3a0] ss:$8 sps:$4 sm:$0xff]   ;;  %v8716_v10 = vld [vmem:[%s10789_s3 + $0x3b4] ss:$8 sps:$4 sm:$0xff]  }
 0x2a8   : > { %v6632_v14 = vpop.f32.mrb[55].mxu1  ;;  %v2097_v12 = vadd.f32 %v6608_v40, %v8396_v33  ;;  %11003 = vst [vmem:[#allocation20_spill] sm:$0xff] %v8710_v27  ;;  %11004 = vst [vmem:[#allocation21_spill] sm:$0xff] %v8716_v10  ;;  %v8728_v50 = vld [vmem:[%s10789_s3 + $0x2a4] ss:$8 sps:$4 sm:$0xff]  }
 0x2a9   : > { %v2154_v34 = vadd.f32 %v6630_v11, %v8409_v18  ;;  %v8722_v11 = vld [vmem:[%s10789_s3 + $0x290] ss:$8 sps:$4 sm:$0xff]   ;;  %11005 = vst [vmem:[#allocation22_spill] sm:$0xff] %v8728_v50  ;;  %11008 = vst [vmem:[#allocation25_spill] sm:$0xff] %v8746_v35  ;;  %v8758_v9 = vld [vmem:[%s10789_s3 + $0x3c0] ss:$8 sps:$4 sm:$0xff]  }
 0x2aa   : > { %v2187_v47 = vadd.f32 %v8404_v45, %v2097_v12  ;;  %v8734_v14 = vld [vmem:[%s10789_s3 + $0x3b0] ss:$8 sps:$4 sm:$0xff]   ;;  %11010 = vst [vmem:[#allocation27_spill] sm:$0xff] %v8758_v9  ;;  %v8764_v40 = vld [vmem:[%s10789_s3 + $0x3d4] ss:$8 sps:$4 sm:$0xff]  }
 0x2ab   : > { %v2192_v54 = vadd.f32 %v8404_v45, %v2154_v34  ;;  %v8475_v45 = vld [vmem:[%s10789_s3 + $0x314] ss:$8 sps:$4 sm:$0xff]   ;;  %11006 = vst [vmem:[#allocation23_spill] sm:$0xff] %v8734_v14  ;;  %v8740_v34 = vld [vmem:[%s10789_s3 + $0x3c4] ss:$8 sps:$4 sm:$0xff]   ;;  %11011 = vst [vmem:[#allocation28_spill] sm:$0xff] %v8764_v40 }
 0x2ac   : > { %vm2188_vm10 = vcmp.gt.f32.partialorder %v2187_v47, 0.0  ;;  %v2189_v5 = vmul.f32 0.2, %v2187_v47  ;;  %11007 = vst [vmem:[#allocation24_spill] sm:$0xff] %v8740_v34  ;;  %v8776_v32 = vld [vmem:[%s10789_s3 + $0x2c4] ss:$8 sps:$4 sm:$0xff]  }
 0x2ad   : > { %vm2193_vm9 = vcmp.gt.f32.partialorder %v2192_v54, 0.0  ;;  %v2194_v30 = vmul.f32 0.2, %v2192_v54  ;;  %11013 = vst [vmem:[#allocation30_spill] sm:$0xff] %v8776_v32  ;;  %v8782_v41 = vld [vmem:[%s10789_s3 + $0x3d0] ss:$8 sps:$4 sm:$0xff]  }
 0x2ae   : > { %v2190_v33 = vsel %vm2188_vm10, %v2187_v47, %v2189_v5  ;;  %11014 = vst [vmem:[#allocation31_spill] sm:$0xff] %v8782_v41  ;;  %v8788_v12 = vld [vmem:[%s10789_s3 + $0x3e4] ss:$8 sps:$4 sm:$0xff]   ;;  %v8806_v47 = vld [vmem:[%s10789_s3 + $0x3e0] ss:$8 sps:$4 sm:$0xff]  }
 0x2af   : > { %v2195_v49 = vsel %vm2193_vm9, %v2192_v54, %v2194_v30  ;;  %v2191_v21 = vpack.c.bf16 %v2190_v33, %v2190_v33  ;;  %v8752_v54 = vld [vmem:[%s10789_s3 + $0x2b4] ss:$8 sps:$4 sm:$0xff]   ;;  %v8770_v30 = vld [vmem:[%s10789_s3 + $0x2b0] ss:$8 sps:$4 sm:$0xff]   ;;  %11015 = vst [vmem:[#allocation32_spill] sm:$0xff] %v8788_v12  ;;  %11018 = vst [vmem:[#allocation35_spill] sm:$0xff] %v8806_v47 }
 0x2b0   : > { %v2196_v17 = vpack.c.bf16 %v2195_v49, %v2195_v49  ;;  %11009 = vst [vmem:[#allocation26_spill] sm:$0xff] %v8752_v54  ;;  %11012 = vst [vmem:[#allocation29_spill] sm:$0xff] %v8770_v30  ;;  %v8794_v49 = vld [vmem:[%s10789_s3 + $0x2c0] ss:$8 sps:$4 sm:$0xff]   ;;  %v8818_v5 = vld [vmem:[%s10789_s3 + $0x2d0] ss:$8 sps:$4 sm:$0xff]  }
 0x2b1   : > { %v2427_v53 = vand.u32 %v8411_v31, %v2191_v21  ;;  %11016 = vst [vmem:[#allocation33_spill] sm:$0xff] %v8794_v49  ;;  %v8824_v33 = vld [vmem:[%s10789_s3 + $0x2e4] ss:$8 sps:$4 sm:$0xff]   ;;  %v8830_v21 = vld [vmem:[%s10789_s3 + $0x3f0] ss:$8 sps:$4 sm:$0xff]  }
 0x2b2   : > { %v2471_v18 = vand.u32 %v8411_v31, %v2196_v17  ;;  %v8503_v31 = vrot.slane %v10795_v52, 1  ;;  %v8800_v17 = vld [vmem:[%s10789_s3 + $0x2d4] ss:$8 sps:$4 sm:$0xff]   ;;  %11020 = vst [vmem:[#allocation37_spill] sm:$0xff] %v8830_v21  ;;  %v8842_v52 = vld [vmem:[%s10789_s3 + $0x2e0] ss:$8 sps:$4 sm:$0xff]  }
 0x2b3   : > { %6679 = vmatpush3.bf16.msra.mxu1 %v2427_v53  ;;  %11017 = vst [vmem:[#allocation34_spill] sm:$0xff] %v8800_v17  ;;  %v8836_v53 = vld [vmem:[%s10789_s3 + $0x104] ss:$8 sps:$4 sm:$0xff]  }
 0x2b4   : > { %6685 = vmatpush3.bf16.msra.mxu0 %v2471_v18  ;;  %3008 = vmatprep.subr.bf16.mxu1 %v8480_v23  ;;  %v8812_v18 = vld [vmem:[%s10789_s3 + $0x3f4] ss:$8 sps:$4 sm:$0xff]   ;;  %11021 = vst [vmem:[#allocation38_spill] sm:$0xff] %v8836_v53 }
 0x2b5   : > { %3049 = vmatprep.subr.bf16.mxu0 %v8463_v16  ;;  %11019 = vst [vmem:[#allocation36_spill] sm:$0xff] %v8812_v18 }
 0x2b6   : > { %6681 = vmatmul.mubr.msk.bf16.vlgmr.msra.gmra.mrb[64].mxu1 %vm2198_vm4, %v8417_v44 }
 0x2b7   : > { %6687 = vmatmul.mubr.msk.bf16.vlgmr.msra.gmra.mrb[68].mxu0 %vm2198_vm4, %v8417_v44  ;;  %3009 = vmatpush1.bf16.msra.mxu1 %v8500_v56  ;;  %v8536_v44 = vld [vmem:[%s10789_s3 + $0x224] ss:$8 sps:$4 sm:$0xff]  }
 0x2b8   : > { %3050 = vmatpush1.bf16.msra.mxu0 %v8469_v20  ;;  %3040 = vmatprep.mubr.bf16.mxu1 %v8503_v31  ;;  %10986 = vst [vmem:[#allocation3_spill] sm:$0xff] %v8536_v44 }
 0x2b9   : > { %3051 = vmatprep.subr.bf16.mxu0 %v8475_v45  ;;  %3010 = vmatprep.subr.bf16.mxu1 %v8509_v57 }
 0x2bb   : > { %3011 = vmatpush1.bf16.msra.mxu1 %v8529_v51 }
 0x2bc   : > { %3052 = vmatpush1.bf16.msra.mxu0 %v8489_v24  ;;  %3012 = vmatprep.subr.bf16.mxu1 %v8536_v44 }
 0x2bd   : > { %3053 = vmatprep.subr.bf16.mxu0 %v8495_v55 }
 0x2bf   : > { %3013 = vmatpush1.bf16.msra.mxu1 %v8554_v63 }
 0x2c0   : > { %3054 = vmatpush1.bf16.msra.mxu0 %v8515_v25  ;;  %3014 = vmatprep.subr.bf16.mxu1 %v8560_v4 }
 0x2c1   : > { %3055 = vmatprep.subr.bf16.mxu0 %v8523_v26 }
 0x2c3   : > { %3015 = vmatpush1.bf16.msra.mxu1 %v8578_v60 }
 0x2c4   : > { %3056 = vmatpush1.bf16.msra.mxu0 %v8542_v62  ;;  %3016 = vmatprep.subr.bf16.mxu1 %v8584_v2 }
 0x2c5   : > { %3057 = vmatprep.subr.bf16.mxu0 %v8548_v22 }
 0x2c7   : > { %3017 = vmatpush1.bf16.msra.mxu1 %v8602_v29 }
 0x2c8   : > { %3058 = vmatpush1.bf16.msra.mxu0 %v8566_v37  ;;  %3018 = vmatprep.subr.bf16.mxu1 %v8608_v42 }
 0x2c9   : > { %3059 = vmatprep.subr.bf16.mxu0 %v8572_v59 }
 0x2cb   : > { %3019 = vmatpush1.bf16.msra.mxu1 %v8626_v0 }
 0x2cc   : > { %3060 = vmatpush1.bf16.msra.mxu0 %v8590_v7  ;;  %3020 = vmatprep.subr.bf16.mxu1 %v8632_v58 }
 0x2cd   : > { %3061 = vmatprep.subr.bf16.mxu0 %v8596_v28 }
 0x2cf   : > { %3021 = vmatpush1.bf16.msra.mxu1 %v8650_v15 }
 0x2d0   : > { %3062 = vmatpush1.bf16.msra.mxu0 %v8614_v46  ;;  %3022 = vmatprep.subr.bf16.mxu1 %v8656_v61 }
 0x2d1   : > { %3063 = vmatprep.subr.bf16.mxu0 %v8620_v48 }
 0x2d3   : > { %3023 = vmatpush1.bf16.msra.mxu1 %v8674_v3 }
 0x2d4   : > { %3064 = vmatpush1.bf16.msra.mxu0 %v8638_v39  ;;  %3024 = vmatprep.subr.bf16.mxu1 %v8680_v43  ;;  %v8954_v39 = vld [vmem:[%s10789_s3 + $0x70] ss:$8 sps:$4 sm:$0xff]  }
 0x2d5   : > { %3065 = vmatprep.subr.bf16.mxu0 %v8644_v13  ;;  %v8948_v13 = vld [vmem:[%s10789_s3 + $0x74] ss:$8 sps:$4 sm:$0xff]   ;;  %11031 = vst [vmem:[#allocation47_spill] sm:$0xff] %v8954_v39 }
 0x2d6   : > { %11030 = vst [vmem:[#allocation46_spill] sm:$0xff] %v8948_v13 }
 0x2d7   : > { %3025 = vmatpush1.bf16.msra.mxu1 %v8698_v6 }
 0x2d8   : > { %3066 = vmatpush1.bf16.msra.mxu0 %v8662_v38  ;;  %3026 = vmatprep.subr.bf16.mxu1 %v8704_v8  ;;  %v8942_v38 = vld [vmem:[%s10789_s3 + $0x60] ss:$8 sps:$4 sm:$0xff]  }
 0x2d9   : > { %3067 = vmatprep.subr.bf16.mxu0 %v8668_v1  ;;  %v8936_v1 = vld [vmem:[%s10789_s3 + $0x64] ss:$8 sps:$4 sm:$0xff]   ;;  %11029 = vst [vmem:[#allocation45_spill] sm:$0xff] %v8942_v38 }
 0x2da   : > { %11028 = vst [vmem:[#allocation44_spill] sm:$0xff] %v8936_v1 }
 0x2db   : > { %3027 = vmatpush1.bf16.msra.mxu1 %v8722_v11 }
 0x2dc   : > { %3068 = vmatpush1.bf16.msra.mxu0 %v8686_v19  ;;  %3028 = vmatprep.subr.bf16.mxu1 %v8728_v50  ;;  %v8930_v19 = vld [vmem:[%s10789_s3 + $0x50] ss:$8 sps:$4 sm:$0xff]  }
 0x2dd   : > { %3069 = vmatprep.subr.bf16.mxu0 %v8692_v36  ;;  %v8924_v36 = vld [vmem:[%s10789_s3 + $0x54] ss:$8 sps:$4 sm:$0xff]   ;;  %11027 = vst [vmem:[#allocation43_spill] sm:$0xff] %v8930_v19 }
 0x2de   : > { %11026 = vst [vmem:[#allocation42_spill] sm:$0xff] %v8924_v36 }
 0x2df   : > { %3029 = vmatpush1.bf16.msra.mxu1 %v8746_v35 }
 0x2e0   : > { %3070 = vmatpush1.bf16.msra.mxu0 %v8710_v27  ;;  %3030 = vmatprep.subr.bf16.mxu1 %v8752_v54  ;;  %v8918_v27 = vld [vmem:[%s10789_s3 + $0x40] ss:$8 sps:$4 sm:$0xff]  }
 0x2e1   : > { %3071 = vmatprep.subr.bf16.mxu0 %v8716_v10  ;;  %v8912_v10 = vld [vmem:[%s10789_s3 + $0x44] ss:$8 sps:$4 sm:$0xff]   ;;  %11025 = vst [vmem:[#allocation41_spill] sm:$0xff] %v8918_v27 }
 0x2e2   : > { %11024 = vst [vmem:[#allocation40_spill] sm:$0xff] %v8912_v10 }
 0x2e3   : > { %3031 = vmatpush1.bf16.msra.mxu1 %v8770_v30 }
 0x2e4   : > { %3072 = vmatpush1.bf16.msra.mxu0 %v8734_v14  ;;  %3032 = vmatprep.subr.bf16.mxu1 %v8776_v32  ;;  %v8906_v14 = vld [vmem:[%s10789_s3 + $0x30] ss:$8 sps:$4 sm:$0xff]  }
 0x2e5   : > { %3073 = vmatprep.subr.bf16.mxu0 %v8740_v34  ;;  %v8900_v34 = vld [vmem:[%s10789_s3 + $0x34] ss:$8 sps:$4 sm:$0xff]   ;;  %11023 = vst [vmem:[#allocation39_spill] sm:$0xff] %v8906_v14 }
 0x2e7   : > { %3033 = vmatpush1.bf16.msra.mxu1 %v8794_v49 }
 0x2e8   : > { %3074 = vmatpush1.bf16.msra.mxu0 %v8758_v9  ;;  %3034 = vmatprep.subr.bf16.mxu1 %v8800_v17  ;;  %v8888_v9 = vld [vmem:[%s10789_s3 + $0x24] ss:$8 sps:$4 sm:$0xff]  }
 0x2e9   : > { %3075 = vmatprep.subr.bf16.mxu0 %v8764_v40  ;;  %v11022_v40 = vmov 0  }
 0x2eb   : > { %3035 = vmatpush1.bf16.msra.mxu1 %v8818_v5 }
 0x2ec   : > { %3076 = vmatpush1.bf16.msra.mxu0 %v8782_v41  ;;  %3036 = vmatprep.subr.bf16.mxu1 %v8824_v33  ;;  %v8881_v41 = vld [vmem:[%s10789_s3 + $0x10] ss:$8 sps:$4 sm:$0xff]  }
 0x2ed   : > { %3077 = vmatprep.subr.bf16.mxu0 %v8788_v12  ;;  %v8862_v12 = vld [vmem:[%s10789_s3 + $0x4] ss:$8 sps:$4 sm:$0xff]  }
 0x2ef   : > { %3037 = vmatpush1.bf16.msra.mxu1 %v8842_v52 }
 0x2f0   : > { %3078 = vmatpush1.bf16.msra.mxu0 %v8806_v47  ;;  %v8848_v47 = vld [vmem:[%s10789_s3 + $0x2f4] ss:$8 sps:$4 sm:$0xff]  }
 0x2f1   : > { %3079 = vmatprep.subr.bf16.mxu0 %v8812_v18  ;;  %v8856_v18 = vld [vmem:[%s10789_s3 + $0x2f0] ss:$8 sps:$4 sm:$0xff]   ;;  %3038 = vmatprep.subr.bf16.mxu1 %v8848_v47 }
 0x2f3   : > { %3039 = vmatpush1.bf16.msra.mxu1 %v8856_v18 }
 0x2f4   : > { %3080 = vmatpush1.bf16.msra.mxu0 %v8830_v21  ;;  %3410 = vmatprep.subr.bf16.mxu1 %v8862_v12  ;;  %v8874_v21 = vld [vmem:[%s10789_s3 + $0x14] ss:$8 sps:$4 sm:$0xff]  }
 0x2f5   : > { %3451 = vmatprep.subr.bf16.mxu0 %v8836_v53  ;;  %v8868_v53 = vld [vmem:[%s10789_s3] ss:$8 sps:$4 sm:$0xff]  }
 0x2f6   : > { %3041 = vmatmul.mubr.bf16.vlgmr.msra.gmra.mrb[68].mxu1 %v8503_v31  ;;  %v8894_v31 = vld [vmem:[%s10789_s3 + $0x20] ss:$8 sps:$4 sm:$0xff]  }
 0x2f7   : > { %3411 = vmatpush1.bf16.msra.mxu1 %v8868_v53  ;;  %3442 = vmatprep.mubr.bf16.mxu1 %v11022_v40 }
 0x2f8   : > { %3412 = vmatprep.subr.bf16.mxu1 %v8874_v21 }
 0x2fb   : > { %3413 = vmatpush1.bf16.msra.mxu1 %v8881_v41 }
 0x2fc   : > { %3414 = vmatprep.subr.bf16.mxu1 %v8888_v9 }
 0x2ff   : > { %3415 = vmatpush1.bf16.msra.mxu1 %v8894_v31 }
 0x300   : > { %3416 = vmatprep.subr.bf16.mxu1 %v8900_v34 }
 0x303   : > { %3417 = vmatpush1.bf16.msra.mxu1 %v8906_v14 }
 0x304   : > { %3418 = vmatprep.subr.bf16.mxu1 %v8912_v10 }
 0x307   : > { %3419 = vmatpush1.bf16.msra.mxu1 %v8918_v27 }
 0x308   : > { %3420 = vmatprep.subr.bf16.mxu1 %v8924_v36 }
 0x30b   : > { %3421 = vmatpush1.bf16.msra.mxu1 %v8930_v19  ;;  %v8960_v19 = vld [vmem:[%s10789_s3 + $0x84] ss:$8 sps:$4 sm:$0xff]  }
 0x30c   : > { %3422 = vmatprep.subr.bf16.mxu1 %v8936_v1  ;;  %11032 = vst [vmem:[#allocation48_spill] sm:$0xff] %v8960_v19  ;;  %v8966_v1 = vld [vmem:[%s10789_s3 + $0x80] ss:$8 sps:$4 sm:$0xff]  }
 0x30d   : > { %11033 = vst [vmem:[#allocation49_spill] sm:$0xff] %v8966_v1 }
 0x30f   : > { %3423 = vmatpush1.bf16.msra.mxu1 %v8942_v38  ;;  %v8972_v38 = vld [vmem:[%s10789_s3 + $0x94] ss:$8 sps:$4 sm:$0xff]  }
 0x310   : > { %3424 = vmatprep.subr.bf16.mxu1 %v8948_v13  ;;  %11034 = vst [vmem:[#allocation50_spill] sm:$0xff] %v8972_v38  ;;  %v8978_v13 = vld [vmem:[%s10789_s3 + $0x90] ss:$8 sps:$4 sm:$0xff]  }
 0x311   : > { %11035 = vst [vmem:[#allocation51_spill] sm:$0xff] %v8978_v13 }
 0x313   : > { %3425 = vmatpush1.bf16.msra.mxu1 %v8954_v39  ;;  %v8984_v39 = vld [vmem:[%s10789_s3 + $0xa4] ss:$8 sps:$4 sm:$0xff]  }
 0x314   : > { %3426 = vmatprep.subr.bf16.mxu1 %v8960_v19  ;;  %11036 = vst [vmem:[#allocation52_spill] sm:$0xff] %v8984_v39  ;;  %v8990_v19 = vld [vmem:[%s10789_s3 + $0xa0] ss:$8 sps:$4 sm:$0xff]  }
 0x315   : > { %11037 = vst [vmem:[#allocation53_spill] sm:$0xff] %v8990_v19 }
 0x317   : > { %3427 = vmatpush1.bf16.msra.mxu1 %v8966_v1  ;;  %v8996_v1 = vld [vmem:[%s10789_s3 + $0xb4] ss:$8 sps:$4 sm:$0xff]  }
 0x318   : > { %3428 = vmatprep.subr.bf16.mxu1 %v8972_v38  ;;  %11038 = vst [vmem:[#allocation54_spill] sm:$0xff] %v8996_v1  ;;  %v9002_v38 = vld [vmem:[%s10789_s3 + $0xb0] ss:$8 sps:$4 sm:$0xff]  }
 0x319   : > { %11039 = vst [vmem:[#allocation55_spill] sm:$0xff] %v9002_v38 }
 0x31b   : > { %3429 = vmatpush1.bf16.msra.mxu1 %v8978_v13  ;;  %v9008_v13 = vld [vmem:[%s10789_s3 + $0xc4] ss:$8 sps:$4 sm:$0xff]  }
 0x31c   : > { %3430 = vmatprep.subr.bf16.mxu1 %v8984_v39  ;;  %11040 = vst [vmem:[#allocation56_spill] sm:$0xff] %v9008_v13  ;;  %v9014_v39 = vld [vmem:[%s10789_s3 + $0xc0] ss:$8 sps:$4 sm:$0xff]  }
 0x31d   : > { %11041 = vst [vmem:[#allocation57_spill] sm:$0xff] %v9014_v39 }
 0x31f   : > { %3431 = vmatpush1.bf16.msra.mxu1 %v8990_v19 }
 0x320   : > { %3432 = vmatprep.subr.bf16.mxu1 %v8996_v1  ;;  %v9022_v1 = vld [vmem:[%s10789_s3 + $0xd4] ss:$8 sps:$4 sm:$0xff]  }
 0x321   : > { %11042 = vst [vmem:[#allocation58_spill] sm:$0xff] %v9022_v1 }
 0x323   : > { %3433 = vmatpush1.bf16.msra.mxu1 %v9002_v38 }
 0x324   : > { %3434 = vmatprep.subr.bf16.mxu1 %v9008_v13  ;;  %v9030_v13 = vld [vmem:[%s10789_s3 + $0xd0] ss:$8 sps:$4 sm:$0xff]  }
 0x325   : > { %11043 = vst [vmem:[#allocation59_spill] sm:$0xff] %v9030_v13 }
 0x327   : > { %3435 = vmatpush1.bf16.msra.mxu1 %v9014_v39  ;;  %v9043_v39 = vld [vmem:[%s10789_s3 + $0xe0] ss:$8 sps:$4 sm:$0xff]  }
 0x328   : > { %3436 = vmatprep.subr.bf16.mxu1 %v9022_v1  ;;  %v9049_v1 = vld [vmem:[%s10789_s3 + $0xf4] ss:$8 sps:$4 sm:$0xff]  }
 0x32a   : > { %v2243_v19 = vpop.f32.mrb[56].mxu0 }
 0x32b   : > { %v9017_v48 = vpack.c.bf16 %v2243_v19, %v2243_v19  ;;  %v6652_v46 = vpop.f32.mrb[57].mxu0  ;;  %v9036_v19 = vld [vmem:[%s10789_s3 + $0xe4] ss:$8 sps:$4 sm:$0xff]   ;;  %3437 = vmatpush1.bf16.msra.mxu1 %v9030_v13  ;;  %v9059_v13 = vld [vmem:[%s10789_s3 + $0x114] ss:$8 sps:$4 sm:$0xff]  }
 0x32c   : > { %v2246_v36 = vpop.f32.mrb[58].mxu0  ;;  %11044 = vst [vmem:[#allocation60_spill] sm:$0xff] %v9036_v19  ;;  %3438 = vmatprep.subr.bf16.mxu1 %v9036_v19  ;;  %v9065_v19 = vld [vmem:[%s10789_s3 + $0xf0] ss:$8 sps:$4 sm:$0xff]  }
 0x32d   : > { %v2515_v27 = vrot.slane %v9017_v48, 2  ;;  %v2674_v38 = vshll.u32 %v9017_v48, 16  ;;  %v6653_v28 = vpop.f32.mrb[59].mxu0 }
 0x32e   : > { %v2672_v28 = vshrl.u32 %v9017_v48, 16 }
 0x32f   : > { %v2681_v46 = vshll.u32 %v2515_v27, 16  ;;  %v2676_v36 = vrot.slane %v2674_v38, 1  ;;  %v2679_v7 = vshrl.u32 %v2515_v27, 16  ;;  %v9054_v38 = vld [vmem:[%s10789_s3 + $0x100] ss:$8 sps:$4 sm:$0xff]   ;;  %3439 = vmatpush1.bf16.msra.mxu1 %v9043_v39 }
 0x330   : > { %3440 = vmatprep.subr.bf16.mxu1 %v9049_v1 }
 0x331   : > { %v2683_v10 = vrot.slane %v2681_v46, 1  ;;  %v2677_v46 = vor.u32 %v2676_v36, %v2672_v28  ;;  %v9101_v36 = vld [vmem:[%s10789_s3 + $0x130] ss:$8 sps:$4 sm:$0xff]   ;;  %v9107_v28 = vld [vmem:[%s10789_s3 + $0x144] ss:$8 sps:$4 sm:$0xff]  }
 0x332   : > { %11045 = vst [vmem:[#allocation61_spill] sm:$0xff] %v9101_v36  ;;  %11046 = vst [vmem:[#allocation62_spill] sm:$0xff] %v9107_v28 }
 0x333   : > { %v2684_v14 = vor.u32 %v2683_v10, %v2679_v7  ;;  %v9072_v7 = vld [vmem:[%s10789_s3 + $0x110] ss:$8 sps:$4 sm:$0xff]   ;;  %v9078_v10 = vld [vmem:[%s10789_s3 + $0x124] ss:$8 sps:$4 sm:$0xff]   ;;  %3441 = vmatpush1.bf16.msra.mxu1 %v9065_v19 }
 0x334   : > { %3524 = vmatprep.subr.bf16.mxu1 %v8480_v23 }
 0x335   : > { %3081 = vmatprep.mubr.bf16.mxu0 %v2684_v14  ;;  %v9086_v14 = vld [vmem:[%s10789_s3 + $0x120] ss:$8 sps:$4 sm:$0xff]  }
 0x336   : > { %3082 = vmatmul.mubr.bf16.vlgmr.msra.gmra.mrb[72].mxu0 %v2677_v46  ;;  %3443 = vmatmul.mubr.bf16.vlgmr.msra.gmra.mrb[72].mxu1 %v11022_v40  ;;  %v9115_v40 = vld [vmem:[%s10789_s3 + $0x140] ss:$8 sps:$4 sm:$0xff]   ;;  %v9121_v46 = vld [vmem:[%s10789_s3 + $0x154] ss:$8 sps:$4 sm:$0xff]  }
 0x337   : > { %3452 = vmatpush1.bf16.msra.mxu0 %v9054_v38  ;;  %3483 = vmatprep.mubr.bf16.mxu0 %v2515_v27  ;;  %v9092_v27 = vld [vmem:[%s10789_s3 + $0x134] ss:$8 sps:$4 sm:$0xff]   ;;  %11047 = vst [vmem:[#allocation63_spill] sm:$0xff] %v9115_v40  ;;  %11048 = vst [vmem:[#allocation64_spill] sm:$0xff] %v9121_v46 }
 0x338   : > { %3453 = vmatprep.subr.bf16.mxu0 %v9059_v13  ;;  %3525 = vmatpush1.bf16.msra.mxu1 %v8500_v56 }
 0x339   : > { %3526 = vmatprep.subr.bf16.mxu1 %v8509_v57 }
 0x33b   : > { %3454 = vmatpush1.bf16.msra.mxu0 %v9072_v7 }
 0x33c   : > { %3455 = vmatprep.subr.bf16.mxu0 %v9078_v10  ;;  %3527 = vmatpush1.bf16.msra.mxu1 %v8529_v51 }
 0x33d   : > { %3528 = vmatprep.subr.bf16.mxu1 %v8536_v44 }
 0x33f   : > { %3456 = vmatpush1.bf16.msra.mxu0 %v9086_v14 }
 0x340   : > { %3457 = vmatprep.subr.bf16.mxu0 %v9092_v27  ;;  %3529 = vmatpush1.bf16.msra.mxu1 %v8554_v63 }
 0x341   : > { %3530 = vmatprep.subr.bf16.mxu1 %v8560_v4 }
 0x343   : > { %3458 = vmatpush1.bf16.msra.mxu0 %v9101_v36  ;;  %v9129_v36 = vld [vmem:[%s10789_s3 + $0x150] ss:$8 sps:$4 sm:$0xff]  }
 0x344   : > { %3459 = vmatprep.subr.bf16.mxu0 %v9107_v28  ;;  %11049 = vst [vmem:[#allocation65_spill] sm:$0xff] %v9129_v36  ;;  %v9135_v28 = vld [vmem:[%s10789_s3 + $0x164] ss:$8 sps:$4 sm:$0xff]   ;;  %3531 = vmatpush1.bf16.msra.mxu1 %v8578_v60 }
 0x345   : > { %11050 = vst [vmem:[#allocation66_spill] sm:$0xff] %v9135_v28  ;;  %3532 = vmatprep.subr.bf16.mxu1 %v8584_v2 }
 0x347   : > { %3460 = vmatpush1.bf16.msra.mxu0 %v9115_v40  ;;  %v9143_v40 = vld [vmem:[%s10789_s3 + $0x160] ss:$8 sps:$4 sm:$0xff]  }
 0x348   : > { %3461 = vmatprep.subr.bf16.mxu0 %v9121_v46  ;;  %11051 = vst [vmem:[#allocation67_spill] sm:$0xff] %v9143_v40  ;;  %v9149_v46 = vld [vmem:[%s10789_s3 + $0x174] ss:$8 sps:$4 sm:$0xff]   ;;  %3533 = vmatpush1.bf16.msra.mxu1 %v8602_v29 }
 0x349   : > { %11052 = vst [vmem:[#allocation68_spill] sm:$0xff] %v9149_v46  ;;  %3534 = vmatprep.subr.bf16.mxu1 %v8608_v42 }
 0x34a   : > { %v2331_v44 = vpop.f32.mrb[60].mxu0 }
 0x34b   : > { %3462 = vmatpush1.bf16.msra.mxu0 %v9129_v36  ;;  %v6664_v4 = vpop.f32.mrb[61].mxu0  ;;  %v9157_v36 = vld [vmem:[%s10789_s3 + $0x170] ss:$8 sps:$4 sm:$0xff]  }
 0x34c   : > { %3463 = vmatprep.subr.bf16.mxu0 %v9135_v28  ;;  %v2334_v63 = vpop.f32.mrb[62].mxu0  ;;  %11053 = vst [vmem:[#allocation69_spill] sm:$0xff] %v9157_v36  ;;  %v9163_v4 = vld [vmem:[%s10789_s3 + $0x184] ss:$8 sps:$4 sm:$0xff]   ;;  %3535 = vmatpush1.bf16.msra.mxu1 %v8626_v0 }
 0x34d   : > { %v6665_v60 = vpop.f32.mrb[63].mxu0  ;;  %11054 = vst [vmem:[#allocation70_spill] sm:$0xff] %v9163_v4  ;;  %v2287_v63 = vpop.f32.mrb[56].mxu1  ;;  %3536 = vmatprep.subr.bf16.mxu1 %v8632_v58 }
 0x34e   : > { %v9165_v60 = vpack.c.bf16 %v2287_v63, %v2287_v63  ;;  %v6658_v29 = vpop.f32.mrb[57].mxu1 }
 0x34f   : > { %3464 = vmatpush1.bf16.msra.mxu0 %v9143_v40  ;;  %v2290_v42 = vpop.f32.mrb[58].mxu1  ;;  %v9182_v29 = vld [vmem:[%s10789_s3 + $0x194] ss:$8 sps:$4 sm:$0xff]  }
 0x350   : > { %3465 = vmatprep.subr.bf16.mxu0 %v9149_v46  ;;  %11055 = vst [vmem:[#allocation71_spill] sm:$0xff] %v9165_v60  ;;  %v9173_v46 = vld [vmem:[%s10789_s3 + $0x180] ss:$8 sps:$4 sm:$0xff]   ;;  %v9176_v40 = vrot.slane %v9165_v60, 2  ;;  %v6659_v28 = vpop.f32.mrb[59].mxu1  ;;  %3537 = vmatpush1.bf16.msra.mxu1 %v8650_v15 }
 0x351   : > { %11056 = vst [vmem:[#allocation72_spill] sm:$0xff] %v9173_v46  ;;  %3538 = vmatprep.subr.bf16.mxu1 %v8656_v61  ;;  %v9192_v28 = vld [vmem:[%s10789_s3 + $0x190] ss:$8 sps:$4 sm:$0xff]  }
 0x352   : > { %11057 = vst [vmem:[#allocation73_spill] sm:$0xff] %v9176_v40  ;;  %v3500_v42 = vshrl.u32 %v9176_v40, 16  ;;  %v3502_v63 = vshll.u32 %v9176_v40, 16 }
 0x353   : > { %3466 = vmatpush1.bf16.msra.mxu0 %v9157_v36  ;;  %v9198_v36 = vld [vmem:[%s10789_s3 + $0x1a4] ss:$8 sps:$4 sm:$0xff]  }
 0x354   : > { %3467 = vmatprep.subr.bf16.mxu0 %v9163_v4  ;;  %v3504_v4 = vrot.slane %v3502_v63, 1  ;;  %3539 = vmatpush1.bf16.msra.mxu1 %v8674_v3  ;;  %v9214_v63 = vld [vmem:[%s10789_s3 + $0x1b4] ss:$8 sps:$4 sm:$0xff]  }
 0x355   : > { %3540 = vmatprep.subr.bf16.mxu1 %v8680_v43  ;;  %11060 = vst [vmem:[#allocation76_spill] sm:$0xff] %v9214_v63 }
 0x356   : > { %v9200_v58 = vor.u32 %v3504_v4, %v3500_v42  ;;  %v9223_v4 = vld [vmem:[%s10789_s3 + $0x1b0] ss:$8 sps:$4 sm:$0xff]   ;;  %v9229_v42 = vld [vmem:[%s10789_s3 + $0x1c4] ss:$8 sps:$4 sm:$0xff]  }
 0x357   : > { %3468 = vmatpush1.bf16.msra.mxu0 %v9173_v46  ;;  %v9208_v46 = vld [vmem:[%s10789_s3 + $0x1a0] ss:$8 sps:$4 sm:$0xff]   ;;  %11061 = vst [vmem:[#allocation77_spill] sm:$0xff] %v9223_v4  ;;  %11062 = vst [vmem:[#allocation78_spill] sm:$0xff] %v9229_v42 }
 0x358   : > { %3469 = vmatprep.subr.bf16.mxu0 %v9182_v29  ;;  %11058 = vst [vmem:[#allocation74_spill] sm:$0xff] %v9200_v58  ;;  %11059 = vst [vmem:[#allocation75_spill] sm:$0xff] %v9208_v46  ;;  %3556 = vmatprep.mubr.bf16.mxu1 %v9200_v58  ;;  %v9237_v58 = vld [vmem:[%s10789_s3 + $0x1c0] ss:$8 sps:$4 sm:$0xff]  }
 0x359   : > { %3541 = vmatpush1.bf16.msra.mxu1 %v8698_v6  ;;  %11063 = vst [vmem:[#allocation79_spill] sm:$0xff] %v9237_v58 }
 0x35a   : > { %3542 = vmatprep.subr.bf16.mxu1 %v8704_v8 }
 0x35b   : > { %3470 = vmatpush1.bf16.msra.mxu0 %v9192_v28 }
 0x35c   : > { %3471 = vmatprep.subr.bf16.mxu0 %v9198_v36 }
 0x35d   : > { %3543 = vmatpush1.bf16.msra.mxu1 %v8722_v11 }
 0x35e   : > { %3544 = vmatprep.subr.bf16.mxu1 %v8728_v50 }
 0x35f   : > { %3472 = vmatpush1.bf16.msra.mxu0 %v9208_v46  ;;  %v9245_v46 = vpack.c.bf16 %v2331_v44, %v2331_v44 }
 0x360   : > { %3473 = vmatprep.subr.bf16.mxu0 %v9214_v63  ;;  %v9243_v63 = vld [vmem:[%s10789_s3 + $0x1d4] ss:$8 sps:$4 sm:$0xff]  }
 0x361   : > { %11064 = vst [vmem:[#allocation80_spill] sm:$0xff] %v9243_v63  ;;  %3545 = vmatpush1.bf16.msra.mxu1 %v8746_v35  ;;  %v9262_v44 = vrot.slane %v9245_v46, 2  ;;  %v9278_v35 = vld [vmem:[%s10789_s3 + $0x1f4] ss:$8 sps:$4 sm:$0xff]  }
 0x362   : > { %3546 = vmatprep.subr.bf16.mxu1 %v8752_v54  ;;  %11070 = vst [vmem:[#allocation86_spill] sm:$0xff] %v9278_v35 }
 0x363   : > { %3474 = vmatpush1.bf16.msra.mxu0 %v9223_v4  ;;  %v9253_v4 = vld [vmem:[%s10789_s3 + $0x1d0] ss:$8 sps:$4 sm:$0xff]   ;;  %11067 = vst [vmem:[#allocation83_spill] sm:$0xff] %v9262_v44 }
 0x364   : > { %3475 = vmatprep.subr.bf16.mxu0 %v9229_v42  ;;  %11065 = vst [vmem:[#allocation81_spill] sm:$0xff] %v9253_v4  ;;  %v9259_v42 = vld [vmem:[%s10789_s3 + $0x1e4] ss:$8 sps:$4 sm:$0xff]  }
 0x365   : > { %11066 = vst [vmem:[#allocation82_spill] sm:$0xff] %v9259_v42  ;;  %3547 = vmatpush1.bf16.msra.mxu1 %v8770_v30  ;;  %v3516_v30 = vshll.u32 %v9262_v44, 16 }
 0x366   : > { %3548 = vmatprep.subr.bf16.mxu1 %v8776_v32 }
 0x367   : > { %3476 = vmatpush1.bf16.msra.mxu0 %v9237_v58 }
 0x368   : > { %3477 = vmatprep.subr.bf16.mxu0 %v9243_v63  ;;  %v9272_v63 = vld [vmem:[%s10789_s3 + $0x1e0] ss:$8 sps:$4 sm:$0xff]  }
 0x369   : > { %11069 = vst [vmem:[#allocation85_spill] sm:$0xff] %v9272_v63  ;;  %3549 = vmatpush1.bf16.msra.mxu1 %v8794_v49  ;;  %v9291_v32 = vpop.f32.mrb[60].mxu1 }
 0x36a   : > { %v9265_v54 = vpop.f32.mrb[64].mxu0  ;;  %3550 = vmatprep.subr.bf16.mxu1 %v8800_v17 }
 0x36b   : > { %11068 = vst [vmem:[#allocation84_spill] sm:$0xff] %v9265_v54  ;;  %3478 = vmatpush1.bf16.msra.mxu0 %v9253_v4  ;;  %v6676_v58 = vpop.f32.mrb[65].mxu0  ;;  %v3518_v4 = vrot.slane %v3516_v30, 1 }
 0x36c   : > { %3479 = vmatprep.subr.bf16.mxu0 %v9259_v42  ;;  %v2422_v54 = vpop.f32.mrb[66].mxu0  ;;  %v9287_v58 = vld [vmem:[%s10789_s3 + $0x1f0] ss:$8 sps:$4 sm:$0xff]   ;;  %v3514_v42 = vshrl.u32 %v9262_v44, 16 }
 0x36d   : > { %v6677_v50 = vpop.f32.mrb[67].mxu0  ;;  %v6670_v54 = vpop.f32.mrb[61].mxu1  ;;  %3551 = vmatpush1.bf16.msra.mxu1 %v8818_v5 }
 0x36e   : > { %v3495_v50 = vshll.u32 %v9165_v60, 16  ;;  %v2378_v17 = vpop.f32.mrb[62].mxu1  ;;  %3552 = vmatprep.subr.bf16.mxu1 %v8824_v33  ;;  %v9298_v49 = vor.u32 %v3518_v4, %v3514_v42  ;;  %v11078_v4 = vld [vmem:[#allocation41_spill] sm:$0xff]  ;;  %v11079_v42 = vld [vmem:[#allocation42_spill] sm:$0xff]  ;;  %v11081_v54 = vld [vmem:[#allocation12_spill] sm:$0xff] }
 0x36f   : > { %3480 = vmatpush1.bf16.msra.mxu0 %v9272_v63  ;;  %v6671_v63 = vpop.f32.mrb[63].mxu1 }
 0x370   : > { %3481 = vmatprep.subr.bf16.mxu0 %v9278_v35  ;;  %11071 = vst [vmem:[#allocation87_spill] sm:$0xff] %v9298_v49  ;;  %v3493_v35 = vshrl.u32 %v9165_v60, 16  ;;  %v3497_v30 = vrot.slane %v3495_v50, 1  ;;  %v11080_v50 = vld [vmem:[#allocation11_spill] sm:$0xff] }
 0x371   : > { %3553 = vmatpush1.bf16.msra.mxu1 %v8842_v52 }
 0x372   : > { %3554 = vmatprep.subr.bf16.mxu1 %v8848_v47  ;;  %v9307_v17 = vor.u32 %v3497_v30, %v3493_v35 }
 0x373   : > { %3482 = vmatpush1.bf16.msra.mxu0 %v9287_v58 }
 0x374   : > { %3565 = vmatprep.subr.bf16.mxu0 %v8463_v16  ;;  %11072 = vst [vmem:[#allocation88_spill] sm:$0xff] %v9307_v17  ;;  %v11073_v16 = vld [vmem:[#allocation39_spill] sm:$0xff] }
 0x375   : > { %3555 = vmatpush1.bf16.msra.mxu1 %v8856_v18 }
 0x376   : > { %3484 = vmatmul.mubr.bf16.vlgmr.msra.gmra.mrb[76].mxu0 %v9017_v48  ;;  %3606 = vmatprep.subr.bf16.mxu1 %v8862_v12  ;;  %v11077_v48 = vld [vmem:[#allocation8_spill] sm:$0xff] }
 0x377   : > { %3566 = vmatpush1.bf16.msra.mxu0 %v8469_v20  ;;  %3597 = vmatprep.mubr.bf16.mxu0 %v9298_v49  ;;  %v11083_v49 = vld [vmem:[#allocation43_spill] sm:$0xff] }
 0x378   : > { %3567 = vmatprep.subr.bf16.mxu0 %v8475_v45  ;;  %3557 = vmatmul.mubr.bf16.vlgmr.msra.gmra.mrb[76].mxu1 %v9307_v17  ;;  %v11075_v45 = vld [vmem:[#allocation40_spill] sm:$0xff] }
 0x379   : > { %3607 = vmatpush1.bf16.msra.mxu1 %v8868_v53  ;;  %3638 = vmatprep.mubr.bf16.mxu1 %v9176_v40  ;;  %v11084_v40 = vld [vmem:[#allocation44_spill] sm:$0xff] }
 0x37a   : > { %3608 = vmatprep.subr.bf16.mxu1 %v8874_v21 }
 0x37b   : > { %3568 = vmatpush1.bf16.msra.mxu0 %v8489_v24  ;;  %v11076_v24 = vld [vmem:[#allocation7_spill] sm:$0xff] }
 0x37c   : > { %3569 = vmatprep.subr.bf16.mxu0 %v8495_v55 }
 0x37d   : > { %3609 = vmatpush1.bf16.msra.mxu1 %v8881_v41 }
 0x37e   : > { %3610 = vmatprep.subr.bf16.mxu1 %v8888_v9 }
 0x37f   : > { %3570 = vmatpush1.bf16.msra.mxu0 %v8515_v25 }
 0x380   : > { %3571 = vmatprep.subr.bf16.mxu0 %v8523_v26 }
 0x381   : > { %3611 = vmatpush1.bf16.msra.mxu1 %v8894_v31 }
 0x382   : > { %3612 = vmatprep.subr.bf16.mxu1 %v8900_v34 }
 0x383   : > { %3572 = vmatpush1.bf16.msra.mxu0 %v8542_v62 }
 0x384   : > { %3573 = vmatprep.subr.bf16.mxu0 %v8548_v22 }
 0x385   : > { %3613 = vmatpush1.bf16.msra.mxu1 %v11073_v16 }
 0x386   : > { %3614 = vmatprep.subr.bf16.mxu1 %v11075_v45 }
 0x387   : > { %3574 = vmatpush1.bf16.msra.mxu0 %v8566_v37 }
 0x388   : > { %3575 = vmatprep.subr.bf16.mxu0 %v8572_v59 }
 0x389   : > { %3615 = vmatpush1.bf16.msra.mxu1 %v11078_v4  ;;  %v9337_v30 = vpop.f32.mrb[64].mxu1  ;;  %v11087_v4 = vld [vmem:[#allocation45_spill] sm:$0xff] }
 0x38a   : > { %v9328_v20 = vpop.f32.mrb[68].mxu0  ;;  %3616 = vmatprep.subr.bf16.mxu1 %v11079_v42  ;;  %11082 = vst [vmem:[#allocation40_spill] sm:$0xff] %v9337_v30  ;;  %v6682_v17 = vpop.f32.mrb[65].mxu1  ;;  %v11088_v42 = vld [vmem:[#allocation46_spill] sm:$0xff]  ;;  %v11091_v30 = vld [vmem:[#allocation47_spill] sm:$0xff] }
 0x38b   : > { %11074 = vst [vmem:[#allocation39_spill] sm:$0xff] %v9328_v20  ;;  %3576 = vmatpush1.bf16.msra.mxu0 %v11076_v24  ;;  %v6688_v55 = vpop.f32.mrb[69].mxu0  ;;  %v2466_v20 = vpop.f32.mrb[66].mxu1  ;;  %v11092_v17 = vld [vmem:[#allocation48_spill] sm:$0xff] }
 0x38c   : > { %3577 = vmatprep.subr.bf16.mxu0 %v11077_v48  ;;  %v2510_v35 = vpop.f32.mrb[70].mxu0  ;;  %v11085_v55 = vld [vmem:[#allocation14_spill] sm:$0xff] }
 0x38d   : > { %v6689_v63 = vpop.f32.mrb[71].mxu0  ;;  %3617 = vmatpush1.bf16.msra.mxu1 %v11083_v49  ;;  %v6683_v35 = vpop.f32.mrb[67].mxu1  ;;  %v11093_v20 = vld [vmem:[#allocation18_spill] sm:$0xff]  ;;  %v11117_v49 = vld [vmem:[#allocation37_spill] sm:$0xff] }
 0x38e   : > { %3618 = vmatprep.subr.bf16.mxu1 %v11084_v40  ;;  %v11086_v63 = vld [vmem:[#allocation15_spill] sm:$0xff]  ;;  %v11096_v35 = vld [vmem:[#allocation50_spill] sm:$0xff] }
 0x38f   : > { %3578 = vmatpush1.bf16.msra.mxu0 %v11080_v50  ;;  %v11089_v50 = vld [vmem:[#allocation16_spill] sm:$0xff]  ;;  %v11094_v40 = vld [vmem:[#allocation19_spill] sm:$0xff]  ;;  %v11119_v48 = vld [vmem:[#allocation38_spill] sm:$0xff] }
 0x390   : > { %3579 = vmatprep.subr.bf16.mxu0 %v11081_v54  ;;  %v11090_v54 = vld [vmem:[#allocation17_spill] sm:$0xff] }
 0x391   : > { %3619 = vmatpush1.bf16.msra.mxu1 %v11087_v4  ;;  %v11098_v4 = vld [vmem:[#allocation21_spill] sm:$0xff] }
 0x392   : > { %3620 = vmatprep.subr.bf16.mxu1 %v11088_v42  ;;  %v11099_v42 = vld [vmem:[#allocation51_spill] sm:$0xff] }
 0x393   : > { %3580 = vmatpush1.bf16.msra.mxu0 %v11085_v55  ;;  %v11095_v55 = vld [vmem:[#allocation49_spill] sm:$0xff] }
 0x394   : > { %3581 = vmatprep.subr.bf16.mxu0 %v11086_v63  ;;  %v11097_v63 = vld [vmem:[#allocation20_spill] sm:$0xff] }
 0x395   : > { %3621 = vmatpush1.bf16.msra.mxu1 %v11091_v30  ;;  %v11102_v30 = vld [vmem:[#allocation24_spill] sm:$0xff] }
 0x396   : > { %3622 = vmatprep.subr.bf16.mxu1 %v11092_v17  ;;  %v11103_v17 = vld [vmem:[#allocation53_spill] sm:$0xff] }
 0x397   : > { %3582 = vmatpush1.bf16.msra.mxu0 %v11089_v50  ;;  %v11100_v50 = vld [vmem:[#allocation52_spill] sm:$0xff] }
 0x398   : > { %3583 = vmatprep.subr.bf16.mxu0 %v11090_v54  ;;  %v11101_v54 = vld [vmem:[#allocation23_spill] sm:$0xff] }
 0x399   : > { %3623 = vmatpush1.bf16.msra.mxu1 %v11095_v55  ;;  %v11106_v55 = vld [vmem:[#allocation28_spill] sm:$0xff] }
 0x39a   : > { %3624 = vmatprep.subr.bf16.mxu1 %v11096_v35  ;;  %v11107_v35 = vld [vmem:[#allocation55_spill] sm:$0xff] }
 0x39b   : > { %3584 = vmatpush1.bf16.msra.mxu0 %v11093_v20  ;;  %v11104_v20 = vld [vmem:[#allocation54_spill] sm:$0xff] }
 0x39c   : > { %3585 = vmatprep.subr.bf16.mxu0 %v11094_v40  ;;  %v11105_v40 = vld [vmem:[#allocation27_spill] sm:$0xff] }
 0x39d   : > { %3625 = vmatpush1.bf16.msra.mxu1 %v11099_v42  ;;  %v11108_v42 = vld [vmem:[#allocation56_spill] sm:$0xff] }
 0x39e   : > { %3626 = vmatprep.subr.bf16.mxu1 %v11100_v50  ;;  %v11109_v50 = vld [vmem:[#allocation31_spill] sm:$0xff] }
 0x39f   : > { %3586 = vmatpush1.bf16.msra.mxu0 %v11097_v63  ;;  %v11115_v63 = vld [vmem:[#allocation59_spill] sm:$0xff] }
 0x3a0   : > { %3587 = vmatprep.subr.bf16.mxu0 %v11098_v4  ;;  %v9366_v4 = vpack.c.bf16 %v9291_v32, %v9291_v32  ;;  %v3507_v32 = vshrl.u32 %v9245_v46, 16 }
 0x3a1   : > { %3627 = vmatpush1.bf16.msra.mxu1 %v11103_v17  ;;  %v3509_v17 = vshll.u32 %v9245_v46, 16 }
 0x3a2   : > { %3628 = vmatprep.subr.bf16.mxu1 %v11104_v20  ;;  %v11114_v20 = vld [vmem:[#allocation36_spill] sm:$0xff] }
 0x3a3   : > { %3588 = vmatpush1.bf16.msra.mxu0 %v11101_v54  ;;  %v11110_v54 = vld [vmem:[#allocation32_spill] sm:$0xff] }
 0x3a4   : > { %3589 = vmatprep.subr.bf16.mxu0 %v11102_v30  ;;  %v11111_v30 = vld [vmem:[#allocation57_spill] sm:$0xff] }
 0x3a5   : > { %3629 = vmatpush1.bf16.msra.mxu1 %v11107_v35  ;;  %v11113_v35 = vld [vmem:[#allocation35_spill] sm:$0xff] }
 0x3a6   : > { %3630 = vmatprep.subr.bf16.mxu1 %v11108_v42  ;;  %v3511_v42 = vrot.slane %v3509_v17, 1  ;;  %v11123_v17 = vld [vmem:[#allocation62_spill] sm:$0xff] }
 0x3a7   : > { %3590 = vmatpush1.bf16.msra.mxu0 %v11105_v40  ;;  %v9374_v40 = vrot.slane %v9366_v4, 2 }
 0x3a8   : > { %3591 = vmatprep.subr.bf16.mxu0 %v11106_v55  ;;  %v11112_v55 = vld [vmem:[#allocation58_spill] sm:$0xff] }
 0x3a9   : > { %3631 = vmatpush1.bf16.msra.mxu1 %v11111_v30  ;;  %v9384_v30 = vor.u32 %v3511_v42, %v3507_v32  ;;  %v11127_v32 = vld [vmem:[#allocation64_spill] sm:$0xff] }
 0x3aa   : > { %3632 = vmatprep.subr.bf16.mxu1 %v11112_v55 }
 0x3ab   : > { %3592 = vmatpush1.bf16.msra.mxu0 %v11109_v50  ;;  %v11116_v50 = vld [vmem:[#allocation60_spill] sm:$0xff]  ;;  %11118 = vst [vmem:[#allocation7_spill] sm:$0xff] %v9384_v30 }
 0x3ac   : > { %3593 = vmatprep.subr.bf16.mxu0 %v11110_v54  ;;  %v3698_v54 = vshll.u32 %v9374_v40, 16 }
 0x3ad   : > { %3633 = vmatpush1.bf16.msra.mxu1 %v11115_v63 }
 0x3ae   : > { %3634 = vmatprep.subr.bf16.mxu1 %v11116_v50 }
 0x3af   : > { %3594 = vmatpush1.bf16.msra.mxu0 %v11113_v35  ;;  %v3700_v35 = vrot.slane %v3698_v54, 1  ;;  %v11121_v54 = vld [vmem:[#allocation3_spill] sm:$0xff] }
 0x3b0   : > { %3595 = vmatprep.subr.bf16.mxu0 %v11114_v20  ;;  %v3696_v20 = vshrl.u32 %v9374_v40, 16 }
 0x3b1   : > { %3635 = vmatpush1.bf16.msra.mxu1 %v9043_v39 }
 0x3b2   : > { %3636 = vmatprep.subr.bf16.mxu1 %v9049_v1  ;;  %v9395_v42 = vor.u32 %v3700_v35, %v3696_v20  ;;  %v11124_v20 = vld [vmem:[#allocation4_spill] sm:$0xff]  ;;  %v11125_v35 = vld [vmem:[#allocation5_spill] sm:$0xff] }
 0x3b3   : > { %3596 = vmatpush1.bf16.msra.mxu0 %v11117_v49 }
 0x3b4   : > { %3647 = vmatprep.subr.bf16.mxu0 %v11119_v48  ;;  %11120 = vst [vmem:[#allocation58_spill] sm:$0xff] %v9395_v42 }
 0x3b5   : > { %3637 = vmatpush1.bf16.msra.mxu1 %v9065_v19 }
 0x3b6   : > { %3598 = vmatmul.mubr.bf16.vlgmr.msra.gmra.mrb[80].mxu0 %v9384_v30  ;;  %3720 = vmatprep.subr.bf16.mxu1 %v8480_v23  ;;  %v11122_v23 = vld [vmem:[#allocation61_spill] sm:$0xff] }
 0x3b7   : > { %3648 = vmatpush1.bf16.msra.mxu0 %v9054_v38  ;;  %3679 = vmatprep.mubr.bf16.mxu0 %v9262_v44  ;;  %v11129_v30 = vld [vmem:[#allocation65_spill] sm:$0xff] }
 0x3b8   : > { %3649 = vmatprep.subr.bf16.mxu0 %v9059_v13  ;;  %3639 = vmatmul.mubr.bf16.vlgmr.msra.gmra.mrb[80].mxu1 %v9165_v60  ;;  %v11133_v60 = vld [vmem:[#allocation67_spill] sm:$0xff] }
 0x3b9   : > { %3721 = vmatpush1.bf16.msra.mxu1 %v8500_v56  ;;  %3752 = vmatprep.mubr.bf16.mxu1 %v9395_v42  ;;  %v11126_v56 = vld [vmem:[#allocation63_spill] sm:$0xff]  ;;  %v11132_v42 = vld [vmem:[#allocation10_spill] sm:$0xff] }
 0x3ba   : > { %3722 = vmatprep.subr.bf16.mxu1 %v8509_v57  ;;  %v11128_v57 = vld [vmem:[#allocation6_spill] sm:$0xff] }
 0x3bb   : > { %3650 = vmatpush1.bf16.msra.mxu0 %v9072_v7 }
 0x3bc   : > { %3651 = vmatprep.subr.bf16.mxu0 %v9078_v10 }
 0x3bd   : > { %3723 = vmatpush1.bf16.msra.mxu1 %v8529_v51  ;;  %v11130_v51 = vld [vmem:[#allocation66_spill] sm:$0xff] }
 0x3be   : > { %3724 = vmatprep.subr.bf16.mxu1 %v11121_v54  ;;  %v11131_v54 = vld [vmem:[#allocation9_spill] sm:$0xff] }
 0x3bf   : > { %3652 = vmatpush1.bf16.msra.mxu0 %v9086_v14 }
 0x3c0   : > { %3653 = vmatprep.subr.bf16.mxu0 %v9092_v27 }
 0x3c1   : > { %3725 = vmatpush1.bf16.msra.mxu1 %v11124_v20  ;;  %v11134_v20 = vld [vmem:[#allocation68_spill] sm:$0xff] }
 0x3c2   : > { %3726 = vmatprep.subr.bf16.mxu1 %v11125_v35 }
 0x3c3   : > { %3654 = vmatpush1.bf16.msra.mxu0 %v11122_v23 }
 0x3c4   : > { %3655 = vmatprep.subr.bf16.mxu0 %v11123_v17 }
 0x3c5   : > { %3727 = vmatpush1.bf16.msra.mxu1 %v11128_v57 }
 0x3c6   : > { %3728 = vmatprep.subr.bf16.mxu1 %v8584_v2  ;;  %v11135_v2 = vld [vmem:[#allocation13_spill] sm:$0xff] }
 0x3c7   : > { %3656 = vmatpush1.bf16.msra.mxu0 %v11126_v56 }
 0x3c8   : > { %3657 = vmatprep.subr.bf16.mxu0 %v11127_v32  ;;  %v11137_v32 = vld [vmem:[#allocation70_spill] sm:$0xff] }
 0x3c9   : > { %3729 = vmatpush1.bf16.msra.mxu1 %v11131_v54  ;;  %v9422_v35 = vpop.f32.mrb[68].mxu1 }
 0x3ca   : > { %3730 = vmatprep.subr.bf16.mxu1 %v11132_v42  ;;  %v9424_v44 = vpop.f32.mrb[69].mxu1  ;;  %v11138_v42 = vld [vmem:[#allocation72_spill] sm:$0xff] }
 0x3cb   : > { %3658 = vmatpush1.bf16.msra.mxu0 %v11129_v30  ;;  %v3046_v57 = vpop.f32.mrb[70].mxu1  ;;  %v11136_v30 = vld [vmem:[#allocation69_spill] sm:$0xff] }
 0x3cc   : > { %3659 = vmatprep.subr.bf16.mxu0 %v11130_v51  ;;  %v3047_v51 = vpop.f32.mrb[71].mxu1  ;;  %v11146_v57 = vld [vmem:[#allocation25_spill] sm:$0xff] }
 0x3cd   : > { %3731 = vmatpush1.bf16.msra.mxu1 %v8626_v0  ;;  %v11139_v0 = vld [vmem:[#allocation75_spill] sm:$0xff]  ;;  %v11142_v51 = vld [vmem:[#allocation77_spill] sm:$0xff] }
 0x3ce   : > { %3732 = vmatprep.subr.bf16.mxu1 %v11135_v2  ;;  %v11149_v2 = vld [vmem:[#allocation80_spill] sm:$0xff] }
 0x3cf   : > { %3660 = vmatpush1.bf16.msra.mxu0 %v11133_v60 }
 0x3d0   : > { %3661 = vmatprep.subr.bf16.mxu0 %v11134_v20 }
 0x3d1   : > { %3733 = vmatpush1.bf16.msra.mxu1 %v8650_v15  ;;  %v11140_v15 = vld [vmem:[#allocation76_spill] sm:$0xff] }
 0x3d2   : > { %3734 = vmatprep.subr.bf16.mxu1 %v8656_v61  ;;  %v11141_v61 = vld [vmem:[#allocation22_spill] sm:$0xff] }
 0x3d3   : > { %3662 = vmatpush1.bf16.msra.mxu0 %v11136_v30 }
 0x3d4   : > { %3663 = vmatprep.subr.bf16.mxu0 %v11137_v32 }
 0x3d5   : > { %3735 = vmatpush1.bf16.msra.mxu1 %v8674_v3  ;;  %v11143_v3 = vld [vmem:[#allocation78_spill] sm:$0xff] }
 0x3d6   : > { %3736 = vmatprep.subr.bf16.mxu1 %v8680_v43  ;;  %v11144_v43 = vld [vmem:[#allocation84_spill] sm:$0xff] }
 0x3d7   : > { %3664 = vmatpush1.bf16.msra.mxu0 %v11138_v42  ;;  %v9448_v54 = vpack.c.bf16 %v11144_v43, %v11144_v43  ;;  %v11154_v43 = vld [vmem:[#allocation33_spill] sm:$0xff] }
 0x3d8   : > { %3665 = vmatprep.subr.bf16.mxu0 %v9182_v29 }
 0x3d9   : > { %3737 = vmatpush1.bf16.msra.mxu1 %v8698_v6  ;;  %11145 = vst [vmem:[#allocation59_spill] sm:$0xff] %v9448_v54  ;;  %v11147_v6 = vld [vmem:[#allocation26_spill] sm:$0xff] }
 0x3da   : > { %3738 = vmatprep.subr.bf16.mxu1 %v8704_v8  ;;  %v11148_v8 = vld [vmem:[#allocation79_spill] sm:$0xff] }
 0x3db   : > { %3666 = vmatpush1.bf16.msra.mxu0 %v9192_v28 }
 0x3dc   : > { %3667 = vmatprep.subr.bf16.mxu0 %v9198_v36 }
 0x3dd   : > { %3739 = vmatpush1.bf16.msra.mxu1 %v8722_v11  ;;  %v9455_v11 = vrot.slane %v9448_v54, 2 }
 0x3de   : > { %3740 = vmatprep.subr.bf16.mxu1 %v11141_v61  ;;  %v11150_v61 = vld [vmem:[#allocation29_spill] sm:$0xff] }
 0x3df   : > { %3668 = vmatpush1.bf16.msra.mxu0 %v11139_v0 }
 0x3e0   : > { %3669 = vmatprep.subr.bf16.mxu0 %v11140_v15  ;;  %v11153_v15 = vld [vmem:[#allocation82_spill] sm:$0xff] }
 0x3e1   : > { %3741 = vmatpush1.bf16.msra.mxu1 %v11146_v57  ;;  %v3712_v57 = vshll.u32 %v9455_v11, 16 }
 0x3e2   : > { %3742 = vmatprep.subr.bf16.mxu1 %v11147_v6  ;;  %v11155_v6 = vld [vmem:[#allocation34_spill] sm:$0xff] }
 0x3e3   : > { %3670 = vmatpush1.bf16.msra.mxu0 %v11142_v51  ;;  %v11151_v51 = vld [vmem:[#allocation30_spill] sm:$0xff]  ;;  %v3714_v0 = vrot.slane %v3712_v57, 1 }
 0x3e4   : > { %3671 = vmatprep.subr.bf16.mxu0 %v11143_v3  ;;  %v11152_v3 = vld [vmem:[#allocation81_spill] sm:$0xff] }
 0x3e5   : > { %3743 = vmatpush1.bf16.msra.mxu1 %v11150_v61  ;;  %v3710_v61 = vshrl.u32 %v9455_v11, 16 }
 0x3e6   : > { %3744 = vmatprep.subr.bf16.mxu1 %v11151_v51  ;;  %v3691_v51 = vshll.u32 %v9366_v4, 16 }
 0x3e7   : > { %3672 = vmatpush1.bf16.msra.mxu0 %v11148_v8  ;;  %v11156_v8 = vld [vmem:[#allocation85_spill] sm:$0xff] }
 0x3e8   : > { %3673 = vmatprep.subr.bf16.mxu0 %v11149_v2  ;;  %v11157_v2 = vld [vmem:[#allocation86_spill] sm:$0xff]  ;;  %v3693_v57 = vrot.slane %v3691_v51, 1 }
 0x3e9   : > { %3745 = vmatpush1.bf16.msra.mxu1 %v11154_v43  ;;  %v7204_v43 = vld [vmem:[%s10789_s3 + $0x304] ss:$8 sps:$4 sm:$0xff]  }
 0x3ea   : > { %3746 = vmatprep.subr.bf16.mxu1 %v11155_v6  ;;  %v9476_v6 = vor.u32 %v3714_v0, %v3710_v61  ;;  %v7208_v61 = vld [vmem:[%s10789_s3 + $0x324] ss:$8 sps:$4 sm:$0xff]  }
 0x3eb   : > { %3674 = vmatpush1.bf16.msra.mxu0 %v11152_v3 }
 0x3ec   : > { %3675 = vmatprep.subr.bf16.mxu0 %v11153_v15  ;;  %11158 = vst [vmem:[#allocation60_spill] sm:$0xff] %v9476_v6 }
 0x3ed   : > { %3747 = vmatpush1.bf16.msra.mxu1 %v8818_v5  ;;  %v7205_v5 = vld [vmem:[%s10789_s3 + $0x300] ss:$8 sps:$4 sm:$0xff]  }
 0x3ee   : > { %3748 = vmatprep.subr.bf16.mxu1 %v8824_v33  ;;  %v3689_v33 = vshrl.u32 %v9366_v4, 16 }
 0x3ef   : > { %3676 = vmatpush1.bf16.msra.mxu0 %v11156_v8 }
 0x3f0   : > { %3677 = vmatprep.subr.bf16.mxu0 %v11157_v2  ;;  %v9488_v0 = vor.u32 %v3693_v57, %v3689_v33  ;;  %v11170_v33 = vld [vmem:[#allocation46_spill] sm:$0xff]  ;;  %v11171_v57 = vld [vmem:[#allocation16_spill] sm:$0xff] }
 0x3f1   : > { %3749 = vmatpush1.bf16.msra.mxu1 %v8842_v52  ;;  %v7206_v52 = vld [vmem:[%s10789_s3 + $0x314] ss:$8 sps:$4 sm:$0xff]  }
 0x3f2   : > { %3750 = vmatprep.subr.bf16.mxu1 %v8848_v47  ;;  %11159 = vst [vmem:[#allocation37_spill] sm:$0xff] %v9488_v0  ;;  %v7207_v47 = vld [vmem:[%s10789_s3 + $0x310] ss:$8 sps:$4 sm:$0xff]  }
 0x3f3   : > { %3678 = vmatpush1.bf16.msra.mxu0 %v9287_v58 }
 0x3f4   : > { %3761 = vmatprep.subr.bf16.mxu0 %v7204_v43  ;;  %v11168_v43 = vld [vmem:[#allocation15_spill] sm:$0xff] }
 0x3f5   : > { %3751 = vmatpush1.bf16.msra.mxu1 %v8856_v18 }
 0x3f6   : > { %3680 = vmatmul.mubr.bf16.vlgmr.msra.gmra.mrb[84].mxu0 %v9245_v46  ;;  %3802 = vmatprep.subr.bf16.mxu1 %v8862_v12 }
 0x3f7   : > { %3762 = vmatpush1.bf16.msra.mxu0 %v7205_v5  ;;  %3793 = vmatprep.mubr.bf16.mxu0 %v9476_v6  ;;  %v11169_v5 = vld [vmem:[#allocation45_spill] sm:$0xff]  ;;  %v9988_v6 = vld [vmem:[%s10789_s3 + $0x5c0] ss:$8 sps:$4 sm:$0xff]  }
 0x3f8   : > { %3763 = vmatprep.subr.bf16.mxu0 %v7206_v52  ;;  %3753 = vmatmul.mubr.bf16.vlgmr.msra.gmra.mrb[84].mxu1 %v9488_v0  ;;  %v11172_v52 = vld [vmem:[#allocation17_spill] sm:$0xff]  ;;  %v9980_v0 = vld [vmem:[%s10789_s3 + $0x5c4] ss:$8 sps:$4 sm:$0xff]   ;;  %11214 = vst [vmem:[#allocation63_spill] sm:$0xff] %v9988_v6 }
 0x3f9   : > { %3803 = vmatpush1.bf16.msra.mxu1 %v8868_v53  ;;  %3834 = vmatprep.mubr.bf16.mxu1 %v9374_v40  ;;  %11213 = vst [vmem:[#allocation5_spill] sm:$0xff] %v9980_v0 }
 0x3fa   : > { %3804 = vmatprep.subr.bf16.mxu1 %v8874_v21  ;;  %v11164_v21 = vld [vmem:[#allocation12_spill] sm:$0xff] }
 0x3fb   : > { %3764 = vmatpush1.bf16.msra.mxu0 %v7207_v47  ;;  %v11173_v47 = vld [vmem:[#allocation47_spill] sm:$0xff] }
 0x3fc   : > { %3765 = vmatprep.subr.bf16.mxu0 %v7208_v61  ;;  %v11174_v61 = vld [vmem:[#allocation48_spill] sm:$0xff] }
 0x3fd   : > { %3805 = vmatpush1.bf16.msra.mxu1 %v8881_v41  ;;  %v11160_v41 = vld [vmem:[#allocation8_spill] sm:$0xff] }
 0x3fe   : > { %3806 = vmatprep.subr.bf16.mxu1 %v8888_v9 }
 0x3ff   : > { %3766 = vmatpush1.bf16.msra.mxu0 %v8515_v25 }
 0x400   : > { %3767 = vmatprep.subr.bf16.mxu0 %v8523_v26 }
 0x401   : > { %3807 = vmatpush1.bf16.msra.mxu1 %v8894_v31 }
 0x402   : > { %3808 = vmatprep.subr.bf16.mxu1 %v8900_v34  ;;  %v11161_v34 = vld [vmem:[#allocation41_spill] sm:$0xff] }
 0x403   : > { %3768 = vmatpush1.bf16.msra.mxu0 %v8542_v62 }
 0x404   : > { %3769 = vmatprep.subr.bf16.mxu0 %v8548_v22 }
 0x405   : > { %3809 = vmatpush1.bf16.msra.mxu1 %v11073_v16 }
 0x406   : > { %3810 = vmatprep.subr.bf16.mxu1 %v11075_v45 }
 0x407   : > { %3770 = vmatpush1.bf16.msra.mxu0 %v8566_v37  ;;  %v11162_v37 = vld [vmem:[#allocation42_spill] sm:$0xff] }
 0x408   : > { %3771 = vmatprep.subr.bf16.mxu0 %v8572_v59  ;;  %v11163_v59 = vld [vmem:[#allocation11_spill] sm:$0xff] }
 0x409   : > { %v3083_v12 = vpop.f32.mrb[72].mxu0  ;;  %3811 = vmatpush1.bf16.msra.mxu1 %v11161_v34  ;;  %v3444_v18 = vpop.f32.mrb[72].mxu1  ;;  %v11182_v34 = vld [vmem:[#allocation52_spill] sm:$0xff] }
 0x40a   : > { %v3084_v25 = vadd.f32 %v3083_v12, %v9422_v35  ;;  %v3085_v26 = vpop.f32.mrb[73].mxu0  ;;  %3812 = vmatprep.subr.bf16.mxu1 %v11162_v37  ;;  %v3446_v31 = vpop.f32.mrb[73].mxu1  ;;  %v11167_v35 = vld [vmem:[#allocation14_spill] sm:$0xff]  ;;  %v11183_v37 = vld [vmem:[#allocation23_spill] sm:$0xff] }
 0x40b   : > { %v3086_v62 = vadd.f32 %v3085_v26, %v9424_v44  ;;  %3772 = vmatpush1.bf16.msra.mxu0 %v11076_v24  ;;  %v3087_v22 = vpop.f32.mrb[74].mxu0  ;;  %v11165_v44 = vld [vmem:[#allocation43_spill] sm:$0xff]  ;;  %v3448_v45 = vpop.f32.mrb[74].mxu1  ;;  %v11166_v24 = vld [vmem:[#allocation44_spill] sm:$0xff]  ;;  %v11175_v12 = vld [vmem:[#allocation18_spill] sm:$0xff] }
 0x40c   : > { %v3088_v9 = vpop.f32.mrb[75].mxu0  ;;  %3773 = vmatprep.subr.bf16.mxu0 %v11160_v41  ;;  %v9521_v53 = vadd.f32 %v3444_v18, %v3084_v25  ;;  %v3449_v51 = vpop.f32.mrb[75].mxu1  ;;  %v11176_v25 = vld [vmem:[#allocation19_spill] sm:$0xff]  ;;  %v11177_v26 = vld [vmem:[#allocation49_spill] sm:$0xff]  ;;  %v11179_v22 = vld [vmem:[#allocation20_spill] sm:$0xff] }
 0x40d   : > { %v9523_v16 = vadd.f32 %v3446_v31, %v3086_v62  ;;  %3813 = vmatpush1.bf16.msra.mxu1 %v11165_v44  ;;  %v11178_v62 = vld [vmem:[#allocation50_spill] sm:$0xff]  ;;  %v11180_v9 = vld [vmem:[#allocation21_spill] sm:$0xff]  ;;  %v11181_v41 = vld [vmem:[#allocation51_spill] sm:$0xff] }
 0x40e   : > { %3814 = vmatprep.subr.bf16.mxu1 %v11166_v24  ;;  %v11185_v18 = vld [vmem:[#allocation53_spill] sm:$0xff]  ;;  %v11187_v31 = vld [vmem:[#allocation27_spill] sm:$0xff]  ;;  %v11188_v44 = vld [vmem:[#allocation28_spill] sm:$0xff] }
 0x40f   : > { %3774 = vmatpush1.bf16.msra.mxu0 %v11163_v59  ;;  %v11184_v59 = vld [vmem:[#allocation24_spill] sm:$0xff]  ;;  %v11189_v45 = vld [vmem:[#allocation55_spill] sm:$0xff] }
 0x410   : > { %3775 = vmatprep.subr.bf16.mxu0 %v11164_v21  ;;  %v11186_v21 = vld [vmem:[#allocation54_spill] sm:$0xff]  ;;  %v11190_v24 = vld [vmem:[#allocation56_spill] sm:$0xff] }
 0x411   : > { %3815 = vmatpush1.bf16.msra.mxu1 %v11169_v5  ;;  %v11192_v51 = vld [vmem:[#allocation32_spill] sm:$0xff]  ;;  %v11193_v5 = vld [vmem:[#allocation57_spill] sm:$0xff] }
 0x412   : > { %3816 = vmatprep.subr.bf16.mxu1 %v11170_v33  ;;  %v11194_v33 = vld [vmem:[#allocation35_spill] sm:$0xff] }
 0x413   : > { %3776 = vmatpush1.bf16.msra.mxu0 %v11167_v35  ;;  %v11191_v35 = vld [vmem:[#allocation31_spill] sm:$0xff] }
 0x414   : > { %3777 = vmatprep.subr.bf16.mxu0 %v11168_v43  ;;  %v3705_v43 = vshll.u32 %v9448_v54, 16 }
 0x415   : > { %3817 = vmatpush1.bf16.msra.mxu1 %v11173_v47 }
 0x416   : > { %3818 = vmatprep.subr.bf16.mxu1 %v11174_v61  ;;  %v3707_v47 = vrot.slane %v3705_v43, 1  ;;  %v9760_v43 = vld [vmem:[%s10789_s3 + $0x4c0] ss:$8 sps:$4 sm:$0xff]  }
 0x417   : > { %3778 = vmatpush1.bf16.msra.mxu0 %v11171_v57  ;;  %v11195_v57 = vld [vmem:[#allocation36_spill] sm:$0xff] }
 0x418   : > { %3779 = vmatprep.subr.bf16.mxu0 %v11172_v52  ;;  %v3703_v52 = vshrl.u32 %v9448_v54, 16 }
 0x419   : > { %3819 = vmatpush1.bf16.msra.mxu1 %v11177_v26 }
 0x41a   : > { %3820 = vmatprep.subr.bf16.mxu1 %v11178_v62  ;;  %v9562_v61 = vor.u32 %v3707_v47, %v3703_v52  ;;  %v11202_v62 = vld [vmem:[#allocation66_spill] sm:$0xff] }
 0x41b   : > { %3780 = vmatpush1.bf16.msra.mxu0 %v11175_v12  ;;  %v11201_v12 = vld [vmem:[#allocation65_spill] sm:$0xff] }
 0x41c   : > { %3781 = vmatprep.subr.bf16.mxu0 %v11176_v25  ;;  %11196 = vst [vmem:[#allocation38_spill] sm:$0xff] %v9562_v61  ;;  %v9651_v25 = vld [vmem:[%s10789_s3 + $0x454] ss:$8 sps:$4 sm:$0xff]   ;;  %v9825_v47 = vld [vmem:[%s10789_s3 + $0x510] ss:$8 sps:$4 sm:$0xff]  }
 0x41d   : > { %3821 = vmatpush1.bf16.msra.mxu1 %v11181_v41  ;;  %v9676_v41 = vld [vmem:[%s10789_s3 + $0x460] ss:$8 sps:$4 sm:$0xff]   ;;  %v9811_v52 = vld [vmem:[%s10789_s3 + $0x514] ss:$8 sps:$4 sm:$0xff]  }
 0x41e   : > { %3822 = vmatprep.subr.bf16.mxu1 %v11182_v34 }
 0x41f   : > { %3782 = vmatpush1.bf16.msra.mxu0 %v11179_v22 }
 0x420   : > { %3783 = vmatprep.subr.bf16.mxu0 %v11180_v9 }
 0x421   : > { %3823 = vmatpush1.bf16.msra.mxu1 %v11185_v18  ;;  %v11204_v18 = vld [vmem:[#allocation76_spill] sm:$0xff] }
 0x422   : > { %3824 = vmatprep.subr.bf16.mxu1 %v11186_v21  ;;  %v11205_v21 = vld [vmem:[#allocation77_spill] sm:$0xff] }
 0x423   : > { %3784 = vmatpush1.bf16.msra.mxu0 %v11183_v37  ;;  %v9690_v37 = vld [vmem:[%s10789_s3 + $0x470] ss:$8 sps:$4 sm:$0xff]  }
 0x424   : > { %3785 = vmatprep.subr.bf16.mxu0 %v11184_v59  ;;  %v11203_v59 = vld [vmem:[#allocation75_spill] sm:$0xff] }
 0x425   : > { %3825 = vmatpush1.bf16.msra.mxu1 %v11189_v45  ;;  %v9746_v45 = vld [vmem:[%s10789_s3 + $0x4b0] ss:$8 sps:$4 sm:$0xff]  }
 0x426   : > { %3826 = vmatprep.subr.bf16.mxu1 %v11190_v24  ;;  %v11207_v24 = vld [vmem:[#allocation79_spill] sm:$0xff] }
 0x427   : > { %3786 = vmatpush1.bf16.msra.mxu0 %v11187_v31  ;;  %v9739_v31 = vld [vmem:[%s10789_s3 + $0x4b4] ss:$8 sps:$4 sm:$0xff]  }
 0x428   : > { %3787 = vmatprep.subr.bf16.mxu0 %v11188_v44  ;;  %v11206_v44 = vld [vmem:[#allocation78_spill] sm:$0xff] }
 0x429   : > { %3827 = vmatpush1.bf16.msra.mxu1 %v11193_v5  ;;  %v9767_v5 = vld [vmem:[%s10789_s3 + $0x4d4] ss:$8 sps:$4 sm:$0xff]  }
 0x42a   : > { %3828 = vmatprep.subr.bf16.mxu1 %v11112_v55  ;;  %v9572_v55 = vld [vmem:[%s10789_s3 + $0x404] ss:$8 sps:$4 sm:$0xff]   ;;  %11209 = vst [vmem:[#allocation62_spill] sm:$0xff] %v9767_v5 }
 0x42b   : > { %3788 = vmatpush1.bf16.msra.mxu0 %v11191_v35  ;;  %v9753_v35 = vld [vmem:[%s10789_s3 + $0x4c4] ss:$8 sps:$4 sm:$0xff]  }
 0x42c   : > { %3789 = vmatprep.subr.bf16.mxu0 %v11192_v51  ;;  %v11208_v51 = vld [vmem:[#allocation80_spill] sm:$0xff] }
 0x42d   : > { %3829 = vmatpush1.bf16.msra.mxu1 %v11115_v63 }
 0x42e   : > { %3830 = vmatprep.subr.bf16.mxu1 %v11116_v50  ;;  %v9638_v50 = vld [vmem:[%s10789_s3 + $0x440] ss:$8 sps:$4 sm:$0xff]  }
 0x42f   : > { %3790 = vmatpush1.bf16.msra.mxu0 %v11194_v33  ;;  %v9774_v33 = vld [vmem:[%s10789_s3 + $0x4d0] ss:$8 sps:$4 sm:$0xff]  }
 0x430   : > { %3791 = vmatprep.subr.bf16.mxu0 %v11195_v57  ;;  %v9793_v57 = vld [vmem:[%s10789_s3 + $0x4e0] ss:$8 sps:$4 sm:$0xff]  }
 0x431   : > { %3831 = vmatpush1.bf16.msra.mxu1 %v9043_v39  ;;  %v9580_v39 = vld [vmem:[%s10789_s3 + $0x400] ss:$8 sps:$4 sm:$0xff]  }
 0x432   : > { %3832 = vmatprep.subr.bf16.mxu1 %v9049_v1  ;;  %v9587_v1 = vld [vmem:[%s10789_s3 + $0x414] ss:$8 sps:$4 sm:$0xff]  }
 0x433   : > { %3792 = vmatpush1.bf16.msra.mxu0 %v11117_v49  ;;  %v9596_v49 = vld [vmem:[%s10789_s3 + $0x410] ss:$8 sps:$4 sm:$0xff]  }
 0x434   : > { %3843 = vmatprep.subr.bf16.mxu0 %v11119_v48 }
 0x435   : > { %3833 = vmatpush1.bf16.msra.mxu1 %v9065_v19  ;;  %v9603_v19 = vld [vmem:[%s10789_s3 + $0x424] ss:$8 sps:$4 sm:$0xff]  }
 0x436   : > { %3794 = vmatmul.mubr.bf16.vlgmr.msra.gmra.mrb[88].mxu0 %v9562_v61  ;;  %4269 = vmatprep.subr.bf16.mxu1 %v9572_v55 }
 0x437   : > { %3844 = vmatpush1.bf16.msra.mxu0 %v9054_v38  ;;  %3875 = vmatprep.mubr.bf16.mxu0 %v9455_v11  ;;  %v9610_v38 = vld [vmem:[%s10789_s3 + $0x420] ss:$8 sps:$4 sm:$0xff]  }
 0x438   : > { %3845 = vmatprep.subr.bf16.mxu0 %v9059_v13  ;;  %3835 = vmatmul.mubr.bf16.vlgmr.msra.gmra.mrb[88].mxu1 %v9366_v4  ;;  %v11197_v13 = vld [vmem:[#allocation73_spill] sm:$0xff] }
 0x439   : > { %4270 = vmatpush1.bf16.msra.mxu1 %v9580_v39  ;;  %4301 = vmatprep.mubr.bf16.mxu1 %v11197_v13  ;;  %v11210_v13 = vld [vmem:[#allocation83_spill] sm:$0xff] }
 0x43a   : > { %4271 = vmatprep.subr.bf16.mxu1 %v9587_v1 }
 0x43b   : > { %3846 = vmatpush1.bf16.msra.mxu0 %v9072_v7  ;;  %v9617_v7 = vld [vmem:[%s10789_s3 + $0x434] ss:$8 sps:$4 sm:$0xff]  }
 0x43c   : > { %3847 = vmatprep.subr.bf16.mxu0 %v9078_v10  ;;  %v9624_v10 = vld [vmem:[%s10789_s3 + $0x430] ss:$8 sps:$4 sm:$0xff]  }
 0x43d   : > { %4272 = vmatpush1.bf16.msra.mxu1 %v9596_v49 }
 0x43e   : > { %4273 = vmatprep.subr.bf16.mxu1 %v9603_v19 }
 0x43f   : > { %3848 = vmatpush1.bf16.msra.mxu0 %v9086_v14  ;;  %v9631_v14 = vld [vmem:[%s10789_s3 + $0x444] ss:$8 sps:$4 sm:$0xff]  }
 0x440   : > { %3849 = vmatprep.subr.bf16.mxu0 %v9092_v27  ;;  %v11198_v27 = vld [vmem:[#allocation64_spill] sm:$0xff] }
 0x441   : > { %4274 = vmatpush1.bf16.msra.mxu1 %v9610_v38 }
 0x442   : > { %4275 = vmatprep.subr.bf16.mxu1 %v9617_v7 }
 0x443   : > { %3850 = vmatpush1.bf16.msra.mxu0 %v11122_v23 }
 0x444   : > { %3851 = vmatprep.subr.bf16.mxu0 %v11123_v17 }
 0x445   : > { %4276 = vmatpush1.bf16.msra.mxu1 %v9624_v10 }
 0x446   : > { %4277 = vmatprep.subr.bf16.mxu1 %v9631_v14 }
 0x447   : > { %3852 = vmatpush1.bf16.msra.mxu0 %v11126_v56 }
 0x448   : > { %3853 = vmatprep.subr.bf16.mxu0 %v11198_v27  ;;  %v9832_v27 = vld [vmem:[%s10789_s3 + $0x524] ss:$8 sps:$4 sm:$0xff]  }
 0x449   : > { %v3485_v48 = vpop.f32.mrb[76].mxu0  ;;  %4278 = vmatpush1.bf16.msra.mxu1 %v9638_v50 }
 0x44a   : > { %v9641_v63 = vadd.f32 %v3485_v48, %v9521_v53  ;;  %v3487_v23 = vpop.f32.mrb[77].mxu0  ;;  %v9658_v53 = vld [vmem:[%s10789_s3 + $0x450] ss:$8 sps:$4 sm:$0xff]   ;;  %4279 = vmatprep.subr.bf16.mxu1 %v9651_v25  ;;  %v9840_v48 = vld [vmem:[%s10789_s3 + $0x520] ss:$8 sps:$4 sm:$0xff]  }
 0x44b   : > { %v9645_v17 = vadd.f32 %v3487_v23, %v9523_v16  ;;  %v3489_v56 = vpop.f32.mrb[78].mxu0  ;;  %3854 = vmatpush1.bf16.msra.mxu0 %v11201_v12  ;;  %v9665_v16 = vld [vmem:[%s10789_s3 + $0x464] ss:$8 sps:$4 sm:$0xff]   ;;  %v9668_v22 = vpop.f32.mrb[76].mxu1  ;;  %v9846_v23 = vld [vmem:[%s10789_s3 + $0x534] ss:$8 sps:$4 sm:$0xff]  }
 0x44c   : > { %11199 = vst [vmem:[#allocation3_spill] sm:$0xff] %v9641_v63  ;;  %v3490_v26 = vpop.f32.mrb[79].mxu0  ;;  %3855 = vmatprep.subr.bf16.mxu0 %v11202_v62  ;;  %v9670_v9 = vpop.f32.mrb[77].mxu1  ;;  %v11211_v56 = vld [vmem:[#allocation71_spill] sm:$0xff]  ;;  %v9856_v12 = vld [vmem:[%s10789_s3 + $0x530] ss:$8 sps:$4 sm:$0xff]  }
 0x44d   : > { %11200 = vst [vmem:[#allocation61_spill] sm:$0xff] %v9645_v17  ;;  %4280 = vmatpush1.bf16.msra.mxu1 %v9658_v53  ;;  %v3562_v34 = vpop.f32.mrb[78].mxu1  ;;  %v9862_v26 = vld [vmem:[%s10789_s3 + $0x544] ss:$8 sps:$4 sm:$0xff]   ;;  %v9876_v62 = vld [vmem:[%s10789_s3 + $0x554] ss:$8 sps:$4 sm:$0xff]  }
 0x44e   : > { %4281 = vmatprep.subr.bf16.mxu1 %v9665_v16  ;;  %v9884_v34 = vld [vmem:[%s10789_s3 + $0x550] ss:$8 sps:$4 sm:$0xff]   ;;  %v9932_v63 = vld [vmem:[%s10789_s3 + $0x580] ss:$8 sps:$4 sm:$0xff]  }
 0x44f   : > { %3856 = vmatpush1.bf16.msra.mxu0 %v11133_v60  ;;  %v9683_v60 = vld [vmem:[%s10789_s3 + $0x474] ss:$8 sps:$4 sm:$0xff]  }
 0x450   : > { %3857 = vmatprep.subr.bf16.mxu0 %v11134_v20  ;;  %v3563_v20 = vpop.f32.mrb[79].mxu1 }
 0x451   : > { %4282 = vmatpush1.bf16.msra.mxu1 %v9676_v41  ;;  %v9890_v20 = vld [vmem:[%s10789_s3 + $0x564] ss:$8 sps:$4 sm:$0xff]  }
 0x452   : > { %4283 = vmatprep.subr.bf16.mxu1 %v9683_v60 }
 0x453   : > { %3858 = vmatpush1.bf16.msra.mxu0 %v11136_v30  ;;  %v9697_v30 = vld [vmem:[%s10789_s3 + $0x484] ss:$8 sps:$4 sm:$0xff]  }
 0x454   : > { %3859 = vmatprep.subr.bf16.mxu0 %v11137_v32  ;;  %v9704_v32 = vld [vmem:[%s10789_s3 + $0x480] ss:$8 sps:$4 sm:$0xff]  }
 0x455   : > { %4284 = vmatpush1.bf16.msra.mxu1 %v9690_v37 }
 0x456   : > { %4285 = vmatprep.subr.bf16.mxu1 %v9697_v30 }
 0x457   : > { %3860 = vmatpush1.bf16.msra.mxu0 %v11138_v42  ;;  %v9711_v42 = vld [vmem:[%s10789_s3 + $0x494] ss:$8 sps:$4 sm:$0xff]  }
 0x458   : > { %3861 = vmatprep.subr.bf16.mxu0 %v9182_v29  ;;  %v9718_v29 = vld [vmem:[%s10789_s3 + $0x490] ss:$8 sps:$4 sm:$0xff]  }
 0x459   : > { %4286 = vmatpush1.bf16.msra.mxu1 %v9704_v32 }
 0x45a   : > { %4287 = vmatprep.subr.bf16.mxu1 %v9711_v42 }
 0x45b   : > { %3862 = vmatpush1.bf16.msra.mxu0 %v9192_v28  ;;  %v9725_v28 = vld [vmem:[%s10789_s3 + $0x4a4] ss:$8 sps:$4 sm:$0xff]  }
 0x45c   : > { %3863 = vmatprep.subr.bf16.mxu0 %v9198_v36  ;;  %v9732_v36 = vld [vmem:[%s10789_s3 + $0x4a0] ss:$8 sps:$4 sm:$0xff]  }
 0x45d   : > { %4288 = vmatpush1.bf16.msra.mxu1 %v9718_v29 }
 0x45e   : > { %4289 = vmatprep.subr.bf16.mxu1 %v9725_v28 }
 0x45f   : > { %3864 = vmatpush1.bf16.msra.mxu0 %v11203_v59 }
 0x460   : > { %3865 = vmatprep.subr.bf16.mxu0 %v11204_v18 }
 0x461   : > { %4290 = vmatpush1.bf16.msra.mxu1 %v9732_v36 }
 0x462   : > { %4291 = vmatprep.subr.bf16.mxu1 %v9739_v31 }
 0x463   : > { %3866 = vmatpush1.bf16.msra.mxu0 %v11205_v21 }
 0x464   : > { %3867 = vmatprep.subr.bf16.mxu0 %v11206_v44 }
 0x465   : > { %4292 = vmatpush1.bf16.msra.mxu1 %v9746_v45 }
 0x466   : > { %4293 = vmatprep.subr.bf16.mxu1 %v9753_v35 }
 0x467   : > { %3868 = vmatpush1.bf16.msra.mxu0 %v11207_v24 }
 0x468   : > { %3869 = vmatprep.subr.bf16.mxu0 %v11208_v51  ;;  %v9900_v51 = vld [vmem:[%s10789_s3 + $0x560] ss:$8 sps:$4 sm:$0xff]  }
 0x469   : > { %4294 = vmatpush1.bf16.msra.mxu1 %v9760_v43 }
 0x46a   : > { %4295 = vmatprep.subr.bf16.mxu1 %v9767_v5 }
 0x46b   : > { %3870 = vmatpush1.bf16.msra.mxu0 %v11152_v3  ;;  %v9781_v3 = vld [vmem:[%s10789_s3 + $0x4e4] ss:$8 sps:$4 sm:$0xff]  }
 0x46c   : > { %3871 = vmatprep.subr.bf16.mxu0 %v11153_v15  ;;  %v9787_v15 = vld [vmem:[%s10789_s3 + $0x504] ss:$8 sps:$4 sm:$0xff]  }
 0x46d   : > { %4296 = vmatpush1.bf16.msra.mxu1 %v9774_v33 }
 0x46e   : > { %4297 = vmatprep.subr.bf16.mxu1 %v9781_v3 }
 0x46f   : > { %3872 = vmatpush1.bf16.msra.mxu0 %v11156_v8  ;;  %v9800_v8 = vld [vmem:[%s10789_s3 + $0x4f4] ss:$8 sps:$4 sm:$0xff]  }
 0x470   : > { %3873 = vmatprep.subr.bf16.mxu0 %v11157_v2  ;;  %v9805_v2 = vld [vmem:[%s10789_s3 + $0x500] ss:$8 sps:$4 sm:$0xff]  }
 0x471   : > { %4298 = vmatpush1.bf16.msra.mxu1 %v9793_v57 }
 0x472   : > { %4299 = vmatprep.subr.bf16.mxu1 %v9800_v8 }
 0x473   : > { %3874 = vmatpush1.bf16.msra.mxu0 %v9287_v58  ;;  %v9817_v58 = vld [vmem:[%s10789_s3 + $0x4f0] ss:$8 sps:$4 sm:$0xff]  }
 0x474   : > { %4310 = vmatprep.subr.bf16.mxu0 %v9787_v15 }
 0x475   : > { %4300 = vmatpush1.bf16.msra.mxu1 %v9817_v58 }
 0x476   : > { %3876 = vmatmul.mubr.bf16.vlgmr.msra.gmra.mrb[92].mxu0 %v9448_v54  ;;  %4353 = vmatprep.subr.bf16.mxu1 %v9572_v55  ;;  %v9994_v54 = vld [vmem:[%s10789_s3 + $0x5d4] ss:$8 sps:$4 sm:$0xff]  }
 0x477   : > { %4311 = vmatpush1.bf16.msra.mxu0 %v9805_v2  ;;  %4342 = vmatprep.mubr.bf16.mxu0 %v11210_v13  ;;  %11215 = vst [vmem:[#allocation6_spill] sm:$0xff] %v9994_v54 }
 0x478   : > { %4312 = vmatprep.subr.bf16.mxu0 %v9811_v52  ;;  %4302 = vmatmul.mubr.bf16.vlgmr.msra.gmra.mrb[92].mxu1 %v11211_v56 }
 0x479   : > { %4354 = vmatpush1.bf16.msra.mxu1 %v9580_v39  ;;  %4385 = vmatprep.mubr.bf16.mxu1 %v9374_v40  ;;  %v9870_v40 = vld [vmem:[%s10789_s3 + $0x540] ss:$8 sps:$4 sm:$0xff]  }
 0x47a   : > { %4355 = vmatprep.subr.bf16.mxu1 %v9587_v1 }
 0x47b   : > { %4313 = vmatpush1.bf16.msra.mxu0 %v9825_v47 }
 0x47c   : > { %4314 = vmatprep.subr.bf16.mxu0 %v9832_v27 }
 0x47d   : > { %4356 = vmatpush1.bf16.msra.mxu1 %v9596_v49 }
 0x47e   : > { %4357 = vmatprep.subr.bf16.mxu1 %v9603_v19 }
 0x47f   : > { %4315 = vmatpush1.bf16.msra.mxu0 %v9840_v48 }
 0x480   : > { %4316 = vmatprep.subr.bf16.mxu0 %v9846_v23 }
 0x481   : > { %4358 = vmatpush1.bf16.msra.mxu1 %v9610_v38 }
 0x482   : > { %4359 = vmatprep.subr.bf16.mxu1 %v9617_v7 }
 0x483   : > { %4317 = vmatpush1.bf16.msra.mxu0 %v9856_v12 }
 0x484   : > { %4318 = vmatprep.subr.bf16.mxu0 %v9862_v26 }
 0x485   : > { %4360 = vmatpush1.bf16.msra.mxu1 %v9624_v10 }
 0x486   : > { %4361 = vmatprep.subr.bf16.mxu1 %v9631_v14 }
 0x487   : > { %4319 = vmatpush1.bf16.msra.mxu0 %v9870_v40 }
 0x488   : > { %4320 = vmatprep.subr.bf16.mxu0 %v9876_v62 }
 0x489   : > { %v3599_v59 = vpop.f32.mrb[80].mxu0  ;;  %4362 = vmatpush1.bf16.msra.mxu1 %v9638_v50 }
 0x48a   : > { %v3600_v18 = vadd.f32 %v3599_v59, %v9668_v22  ;;  %v3601_v21 = vpop.f32.mrb[81].mxu0  ;;  %v9906_v22 = vld [vmem:[%s10789_s3 + $0x574] ss:$8 sps:$4 sm:$0xff]   ;;  %4363 = vmatprep.subr.bf16.mxu1 %v9651_v25  ;;  %v9920_v59 = vld [vmem:[%s10789_s3 + $0x584] ss:$8 sps:$4 sm:$0xff]  }
 0x48b   : > { %v3602_v44 = vadd.f32 %v3601_v21, %v9670_v9  ;;  %v3603_v24 = vpop.f32.mrb[82].mxu0  ;;  %4321 = vmatpush1.bf16.msra.mxu0 %v9884_v34  ;;  %v9914_v9 = vld [vmem:[%s10789_s3 + $0x570] ss:$8 sps:$4 sm:$0xff]   ;;  %v3640_v56 = vpop.f32.mrb[80].mxu1 }
 0x48c   : > { %v3604_v13 = vpop.f32.mrb[83].mxu0  ;;  %4322 = vmatprep.subr.bf16.mxu0 %v9890_v20  ;;  %v9922_v21 = vadd.f32 %v3640_v56, %v3600_v18  ;;  %v3642_v24 = vpop.f32.mrb[81].mxu1  ;;  %v9938_v18 = vld [vmem:[%s10789_s3 + $0x594] ss:$8 sps:$4 sm:$0xff]  }
 0x48d   : > { %v9924_v13 = vadd.f32 %v3642_v24, %v3602_v44  ;;  %v3644_v61 = vpop.f32.mrb[82].mxu1  ;;  %4364 = vmatpush1.bf16.msra.mxu1 %v9658_v53  ;;  %v9960_v44 = vld [vmem:[%s10789_s3 + $0x5a0] ss:$8 sps:$4 sm:$0xff]   ;;  %v9966_v56 = vld [vmem:[%s10789_s3 + $0x5b4] ss:$8 sps:$4 sm:$0xff]  }
 0x48e   : > { %v3645_v17 = vpop.f32.mrb[83].mxu1  ;;  %4365 = vmatprep.subr.bf16.mxu1 %v9665_v16  ;;  %v9946_v61 = vld [vmem:[%s10789_s3 + $0x590] ss:$8 sps:$4 sm:$0xff]  }
 0x48f   : > { %4323 = vmatpush1.bf16.msra.mxu0 %v9900_v51  ;;  %v9952_v17 = vld [vmem:[%s10789_s3 + $0x5a4] ss:$8 sps:$4 sm:$0xff]   ;;  %v9974_v24 = vld [vmem:[%s10789_s3 + $0x5b0] ss:$8 sps:$4 sm:$0xff]  }
 0x490   : > { %4324 = vmatprep.subr.bf16.mxu0 %v9906_v22  ;;  %11212 = vst [vmem:[#allocation4_spill] sm:$0xff] %v9974_v24 }
 0x491   : > { %4366 = vmatpush1.bf16.msra.mxu1 %v9676_v41 }
 0x492   : > { %4367 = vmatprep.subr.bf16.mxu1 %v9683_v60 }
 0x493   : > { %4325 = vmatpush1.bf16.msra.mxu0 %v9914_v9 }
 0x494   : > { %4326 = vmatprep.subr.bf16.mxu0 %v9920_v59 }
 0x495   : > { %4368 = vmatpush1.bf16.msra.mxu1 %v9690_v37 }
 0x496   : > { %4369 = vmatprep.subr.bf16.mxu1 %v9697_v30 }
 0x497   : > { %4327 = vmatpush1.bf16.msra.mxu0 %v9932_v63 }
 0x498   : > { %4328 = vmatprep.subr.bf16.mxu0 %v9938_v18 }
 0x499   : > { %4370 = vmatpush1.bf16.msra.mxu1 %v9704_v32 }
 0x49a   : > { %4371 = vmatprep.subr.bf16.mxu1 %v9711_v42 }
 0x49b   : > { %4329 = vmatpush1.bf16.msra.mxu0 %v9946_v61 }
 0x49c   : > { %4330 = vmatprep.subr.bf16.mxu0 %v9952_v17 }
 0x49d   : > { %4372 = vmatpush1.bf16.msra.mxu1 %v9718_v29 }
 0x49e   : > { %4373 = vmatprep.subr.bf16.mxu1 %v9725_v28 }
 0x49f   : > { %4331 = vmatpush1.bf16.msra.mxu0 %v9960_v44 }
 0x4a0   : > { %4332 = vmatprep.subr.bf16.mxu0 %v9966_v56 }
 0x4a1   : > { %4374 = vmatpush1.bf16.msra.mxu1 %v9732_v36 }
 0x4a2   : > { %4375 = vmatprep.subr.bf16.mxu1 %v9739_v31 }
 0x4a3   : > { %4333 = vmatpush1.bf16.msra.mxu0 %v9974_v24  ;;  %v10002_v24 = vld [vmem:[%s10789_s3 + $0x5d0] ss:$8 sps:$4 sm:$0xff]  }
 0x4a4   : > { %4334 = vmatprep.subr.bf16.mxu0 %v9980_v0  ;;  %11216 = vst [vmem:[#allocation9_spill] sm:$0xff] %v10002_v24  ;;  %v10008_v0 = vld [vmem:[%s10789_s3 + $0x5e4] ss:$8 sps:$4 sm:$0xff]  }
 0x4a5   : > { %4376 = vmatpush1.bf16.msra.mxu1 %v9746_v45 }
 0x4a6   : > { %4377 = vmatprep.subr.bf16.mxu1 %v9753_v35 }
 0x4a7   : > { %4335 = vmatpush1.bf16.msra.mxu0 %v9988_v6  ;;  %v10016_v6 = vld [vmem:[%s10789_s3 + $0x5e0] ss:$8 sps:$4 sm:$0xff]  }
 0x4a8   : > { %4336 = vmatprep.subr.bf16.mxu0 %v9994_v54  ;;  %11217 = vst [vmem:[#allocation10_spill] sm:$0xff] %v10016_v6  ;;  %v10022_v54 = vld [vmem:[%s10789_s3 + $0x5f4] ss:$8 sps:$4 sm:$0xff]  }
 0x4a9   : > { %4378 = vmatpush1.bf16.msra.mxu1 %v9760_v43 }
 0x4aa   : > { %4379 = vmatprep.subr.bf16.mxu1 %v9767_v5 }
 0x4ab   : > { %4337 = vmatpush1.bf16.msra.mxu0 %v10002_v24  ;;  %v10030_v24 = vld [vmem:[%s10789_s3 + $0x5f0] ss:$8 sps:$4 sm:$0xff]  }
 0x4ac   : > { %4338 = vmatprep.subr.bf16.mxu0 %v10008_v0 }
 0x4ad   : > { %4380 = vmatpush1.bf16.msra.mxu1 %v9774_v33 }
 0x4ae   : > { %4381 = vmatprep.subr.bf16.mxu1 %v9781_v3 }
 0x4af   : > { %4339 = vmatpush1.bf16.msra.mxu0 %v10016_v6  ;;  %v11218_v6 = vld [vmem:[#allocation40_spill] sm:$0xff] }
 0x4b0   : > { %4340 = vmatprep.subr.bf16.mxu0 %v10022_v54  ;;  %v10043_v5 = vpack.c.bf16 %v11218_v6, %v11218_v6 }
 0x4b1   : > { %4382 = vmatpush1.bf16.msra.mxu1 %v9793_v57 }
 0x4b2   : > { %4383 = vmatprep.subr.bf16.mxu1 %v9800_v8  ;;  %11219 = vst [vmem:[#allocation67_spill] sm:$0xff] %v10043_v5 }
 0x4b3   : > { %4341 = vmatpush1.bf16.msra.mxu0 %v10030_v24 }
 0x4b4   : > { %4394 = vmatprep.subr.bf16.mxu0 %v9787_v15 }
 0x4b5   : > { %4384 = vmatpush1.bf16.msra.mxu1 %v9817_v58 }
 0x4b6   : > { %4343 = vmatmul.mubr.bf16.vlgmr.msra.gmra.mrb[96].mxu0 %v9245_v46  ;;  %4437 = vmatprep.subr.bf16.mxu1 %v9572_v55  ;;  %v10051_v46 = vrot.slane %v10043_v5, 2 }
 0x4b7   : > { %4395 = vmatpush1.bf16.msra.mxu0 %v9805_v2  ;;  %4426 = vmatprep.mubr.bf16.mxu0 %v9455_v11 }
 0x4b8   : > { %4396 = vmatprep.subr.bf16.mxu0 %v9811_v52  ;;  %4386 = vmatmul.mubr.bf16.vlgmr.msra.gmra.mrb[96].mxu1 %v9366_v4 }
 0x4b9   : > { %4438 = vmatpush1.bf16.msra.mxu1 %v9580_v39  ;;  %4469 = vmatprep.mubr.bf16.mxu1 %v10051_v46 }
 0x4ba   : > { %4439 = vmatprep.subr.bf16.mxu1 %v9587_v1 }
 0x4bb   : > { %4397 = vmatpush1.bf16.msra.mxu0 %v9825_v47 }
 0x4bc   : > { %4398 = vmatprep.subr.bf16.mxu0 %v9832_v27 }
 0x4bd   : > { %4440 = vmatpush1.bf16.msra.mxu1 %v9596_v49 }
 0x4be   : > { %4441 = vmatprep.subr.bf16.mxu1 %v9603_v19 }
 0x4bf   : > { %4399 = vmatpush1.bf16.msra.mxu0 %v9840_v48 }
 0x4c0   : > { %4400 = vmatprep.subr.bf16.mxu0 %v9846_v23 }
 0x4c1   : > { %4442 = vmatpush1.bf16.msra.mxu1 %v9610_v38 }
 0x4c2   : > { %4443 = vmatprep.subr.bf16.mxu1 %v9617_v7 }
 0x4c3   : > { %4401 = vmatpush1.bf16.msra.mxu0 %v9856_v12 }
 0x4c4   : > { %4402 = vmatprep.subr.bf16.mxu0 %v9862_v26 }
 0x4c5   : > { %4444 = vmatpush1.bf16.msra.mxu1 %v9624_v10  ;;  %v11222_v10 = vld [vmem:[#allocation4_spill] sm:$0xff] }
 0x4c6   : > { %4445 = vmatprep.subr.bf16.mxu1 %v9631_v14  ;;  %v11223_v14 = vld [vmem:[#allocation5_spill] sm:$0xff] }
 0x4c7   : > { %4403 = vmatpush1.bf16.msra.mxu0 %v9870_v40 }
 0x4c8   : > { %4404 = vmatprep.subr.bf16.mxu0 %v9876_v62 }
 0x4c9   : > { %v3681_v4 = vpop.f32.mrb[84].mxu0  ;;  %4446 = vmatpush1.bf16.msra.mxu1 %v9638_v50  ;;  %v11224_v50 = vld [vmem:[#allocation63_spill] sm:$0xff] }
 0x4ca   : > { %v10070_v11 = vadd.f32 %v3681_v4, %v9922_v21  ;;  %v3683_v6 = vpop.f32.mrb[85].mxu0  ;;  %4447 = vmatprep.subr.bf16.mxu1 %v9651_v25  ;;  %v11225_v25 = vld [vmem:[#allocation6_spill] sm:$0xff] }
 0x4cb   : > { %v10074_v55 = vadd.f32 %v3683_v6, %v9924_v13  ;;  %v3685_v39 = vpop.f32.mrb[86].mxu0  ;;  %4405 = vmatpush1.bf16.msra.mxu0 %v9884_v34  ;;  %v10081_v49 = vpop.f32.mrb[84].mxu1  ;;  %v10250_v21 = vld [vmem:[%s10789_s3 + $0x670] ss:$8 sps:$4 sm:$0xff]   ;;  %v10320_v4 = vld [vmem:[%s10789_s3 + $0x6c0] ss:$8 sps:$4 sm:$0xff]  }
 0x4cc   : > { %11220 = vst [vmem:[#allocation68_spill] sm:$0xff] %v10070_v11  ;;  %v3686_v1 = vpop.f32.mrb[87].mxu0  ;;  %4406 = vmatprep.subr.bf16.mxu0 %v9890_v20  ;;  %v10084_v19 = vpop.f32.mrb[85].mxu1  ;;  %v10278_v13 = vld [vmem:[%s10789_s3 + $0x690] ss:$8 sps:$4 sm:$0xff]   ;;  %11234 = vst [vmem:[#allocation72_spill] sm:$0xff] %v10320_v4 }
 0x4cd   : > { %11221 = vst [vmem:[#allocation13_spill] sm:$0xff] %v10074_v55  ;;  %v3758_v38 = vpop.f32.mrb[86].mxu1  ;;  %4448 = vmatpush1.bf16.msra.mxu1 %v9658_v53  ;;  %v11226_v53 = vld [vmem:[#allocation9_spill] sm:$0xff]  ;;  %v10341_v1 = vld [vmem:[%s10789_s3 + $0x6e4] ss:$8 sps:$4 sm:$0xff]  }
 0x4ce   : > { %v3759_v7 = vpop.f32.mrb[87].mxu1  ;;  %4449 = vmatprep.subr.bf16.mxu1 %v9665_v16  ;;  %v11227_v16 = vld [vmem:[#allocation62_spill] sm:$0xff] }
 0x4cf   : > { %4407 = vmatpush1.bf16.msra.mxu0 %v9900_v51  ;;  %v10327_v6 = vld [vmem:[%s10789_s3 + $0x6d4] ss:$8 sps:$4 sm:$0xff]   ;;  %v10334_v39 = vld [vmem:[%s10789_s3 + $0x6d0] ss:$8 sps:$4 sm:$0xff]   ;;  %v10552_v55 = vld [vmem:[%s10789_s3 + $0x7c0] ss:$8 sps:$4 sm:$0xff]  }
 0x4d0   : > { %4408 = vmatprep.subr.bf16.mxu0 %v9906_v22  ;;  %11235 = vst [vmem:[#allocation22_spill] sm:$0xff] %v10327_v6  ;;  %11236 = vst [vmem:[#allocation84_spill] sm:$0xff] %v10334_v39  ;;  %v10371_v38 = vld [vmem:[%s10789_s3 + $0x714] ss:$8 sps:$4 sm:$0xff]   ;;  %v10385_v7 = vld [vmem:[%s10789_s3 + $0x710] ss:$8 sps:$4 sm:$0xff]  }
 0x4d1   : > { %4450 = vmatpush1.bf16.msra.mxu1 %v9676_v41  ;;  %v11228_v41 = vld [vmem:[#allocation10_spill] sm:$0xff]  ;;  %11243 = vst [vmem:[#allocation30_spill] sm:$0xff] %v10552_v55 }
 0x4d2   : > { %4451 = vmatprep.subr.bf16.mxu1 %v9683_v60  ;;  %v11229_v60 = vld [vmem:[#allocation39_spill] sm:$0xff]  ;;  %v10558_v11 = vld [vmem:[%s10789_s3 + $0x7d4] ss:$8 sps:$4 sm:$0xff]  }
 0x4d3   : > { %4409 = vmatpush1.bf16.msra.mxu0 %v9914_v9  ;;  %11244 = vst [vmem:[#allocation81_spill] sm:$0xff] %v10558_v11 }
 0x4d4   : > { %4410 = vmatprep.subr.bf16.mxu0 %v9920_v59 }
 0x4d5   : > { %4452 = vmatpush1.bf16.msra.mxu1 %v9690_v37  ;;  %v10120_v37 = vpack.c.bf16 %v11229_v60, %v11229_v60  ;;  %v10422_v60 = vld [vmem:[%s10789_s3 + $0x744] ss:$8 sps:$4 sm:$0xff]  }
 0x4d6   : > { %4453 = vmatprep.subr.bf16.mxu1 %v9697_v30  ;;  %v11231_v30 = vld [vmem:[#allocation59_spill] sm:$0xff] }
 0x4d7   : > { %4411 = vmatpush1.bf16.msra.mxu0 %v9932_v63  ;;  %11230 = vst [vmem:[#allocation69_spill] sm:$0xff] %v10120_v37 }
 0x4d8   : > { %4412 = vmatprep.subr.bf16.mxu0 %v9938_v18 }
 0x4d9   : > { %4454 = vmatpush1.bf16.msra.mxu1 %v9704_v32  ;;  %v10129_v32 = vrot.slane %v10120_v37, 2 }
 0x4da   : > { %4455 = vmatprep.subr.bf16.mxu1 %v9711_v42  ;;  %v10136_v42 = vld [vmem:[%s10789_s3 + $0x604] ss:$8 sps:$4 sm:$0xff]  }
 0x4db   : > { %4413 = vmatpush1.bf16.msra.mxu0 %v9946_v61  ;;  %11232 = vst [vmem:[#allocation70_spill] sm:$0xff] %v10129_v32 }
 0x4dc   : > { %4414 = vmatprep.subr.bf16.mxu0 %v9952_v17 }
 0x4dd   : > { %4456 = vmatpush1.bf16.msra.mxu1 %v9718_v29  ;;  %v10144_v29 = vld [vmem:[%s10789_s3 + $0x600] ss:$8 sps:$4 sm:$0xff]  }
 0x4de   : > { %4457 = vmatprep.subr.bf16.mxu1 %v9725_v28  ;;  %v10151_v28 = vld [vmem:[%s10789_s3 + $0x614] ss:$8 sps:$4 sm:$0xff]  }
 0x4df   : > { %4415 = vmatpush1.bf16.msra.mxu0 %v9960_v44 }
 0x4e0   : > { %4416 = vmatprep.subr.bf16.mxu0 %v9966_v56 }
 0x4e1   : > { %4458 = vmatpush1.bf16.msra.mxu1 %v9732_v36  ;;  %v11233_v36 = vld [vmem:[#allocation74_spill] sm:$0xff] }
 0x4e2   : > { %4459 = vmatprep.subr.bf16.mxu1 %v9739_v31  ;;  %v10160_v31 = vld [vmem:[%s10789_s3 + $0x610] ss:$8 sps:$4 sm:$0xff]  }
 0x4e3   : > { %4417 = vmatpush1.bf16.msra.mxu0 %v11222_v10 }
 0x4e4   : > { %4418 = vmatprep.subr.bf16.mxu0 %v11223_v14 }
 0x4e5   : > { %4460 = vmatpush1.bf16.msra.mxu1 %v9746_v45  ;;  %v10167_v45 = vld [vmem:[%s10789_s3 + $0x624] ss:$8 sps:$4 sm:$0xff]  }
 0x4e6   : > { %4461 = vmatprep.subr.bf16.mxu1 %v9753_v35  ;;  %v10174_v35 = vld [vmem:[%s10789_s3 + $0x620] ss:$8 sps:$4 sm:$0xff]  }
 0x4e7   : > { %4419 = vmatpush1.bf16.msra.mxu0 %v11224_v50 }
 0x4e8   : > { %4420 = vmatprep.subr.bf16.mxu0 %v11225_v25 }
 0x4e9   : > { %4462 = vmatpush1.bf16.msra.mxu1 %v9760_v43  ;;  %v10181_v43 = vld [vmem:[%s10789_s3 + $0x634] ss:$8 sps:$4 sm:$0xff]  }
 0x4ea   : > { %4463 = vmatprep.subr.bf16.mxu1 %v11227_v16  ;;  %v11240_v16 = vld [vmem:[#allocation58_spill] sm:$0xff] }
 0x4eb   : > { %4421 = vmatpush1.bf16.msra.mxu0 %v11226_v53 }
 0x4ec   : > { %4422 = vmatprep.subr.bf16.mxu0 %v10008_v0 }
 0x4ed   : > { %4464 = vmatpush1.bf16.msra.mxu1 %v9774_v33  ;;  %v10188_v33 = vld [vmem:[%s10789_s3 + $0x630] ss:$8 sps:$4 sm:$0xff]  }
 0x4ee   : > { %4465 = vmatprep.subr.bf16.mxu1 %v9781_v3  ;;  %v10195_v3 = vld [vmem:[%s10789_s3 + $0x644] ss:$8 sps:$4 sm:$0xff]  }
 0x4ef   : > { %4423 = vmatpush1.bf16.msra.mxu0 %v11228_v41 }
 0x4f0   : > { %4424 = vmatprep.subr.bf16.mxu0 %v10022_v54 }
 0x4f1   : > { %4466 = vmatpush1.bf16.msra.mxu1 %v9793_v57  ;;  %v10202_v57 = vld [vmem:[%s10789_s3 + $0x640] ss:$8 sps:$4 sm:$0xff]  }
 0x4f2   : > { %4467 = vmatprep.subr.bf16.mxu1 %v9800_v8 }
 0x4f3   : > { %4425 = vmatpush1.bf16.msra.mxu0 %v10030_v24 }
 0x4f4   : > { %4478 = vmatprep.subr.bf16.mxu0 %v9787_v15 }
 0x4f5   : > { %4468 = vmatpush1.bf16.msra.mxu1 %v9817_v58 }
 0x4f6   : > { %4427 = vmatmul.mubr.bf16.vlgmr.msra.gmra.mrb[100].mxu0 %v11231_v30  ;;  %4906 = vmatprep.subr.bf16.mxu1 %v10136_v42  ;;  %v10430_v30 = vld [vmem:[%s10789_s3 + $0x740] ss:$8 sps:$4 sm:$0xff]  }
 0x4f7   : > { %4479 = vmatpush1.bf16.msra.mxu0 %v9805_v2  ;;  %4510 = vmatprep.mubr.bf16.mxu0 %v10129_v32  ;;  %v10572_v32 = vld [vmem:[%s10789_s3 + $0x7e4] ss:$8 sps:$4 sm:$0xff]  }
 0x4f8   : > { %4480 = vmatprep.subr.bf16.mxu0 %v9811_v52  ;;  %4470 = vmatmul.mubr.bf16.vlgmr.msra.gmra.mrb[100].mxu1 %v10043_v5  ;;  %v10566_v5 = vld [vmem:[%s10789_s3 + $0x7d0] ss:$8 sps:$4 sm:$0xff]  }
 0x4f9   : > { %4907 = vmatpush1.bf16.msra.mxu1 %v10144_v29  ;;  %4938 = vmatprep.mubr.bf16.mxu1 %v11233_v36  ;;  %v10436_v36 = vld [vmem:[%s10789_s3 + $0x754] ss:$8 sps:$4 sm:$0xff]   ;;  %11245 = vst [vmem:[#allocation82_spill] sm:$0xff] %v10566_v5 }
 0x4fa   : > { %4908 = vmatprep.subr.bf16.mxu1 %v10151_v28 }
 0x4fb   : > { %4481 = vmatpush1.bf16.msra.mxu0 %v9825_v47  ;;  %v10211_v47 = vld [vmem:[%s10789_s3 + $0x654] ss:$8 sps:$4 sm:$0xff]  }
 0x4fc   : > { %4482 = vmatprep.subr.bf16.mxu0 %v9832_v27 }
 0x4fd   : > { %4909 = vmatpush1.bf16.msra.mxu1 %v10160_v31 }
 0x4fe   : > { %4910 = vmatprep.subr.bf16.mxu1 %v10167_v45 }
 0x4ff   : > { %4483 = vmatpush1.bf16.msra.mxu0 %v9840_v48  ;;  %v10218_v48 = vld [vmem:[%s10789_s3 + $0x650] ss:$8 sps:$4 sm:$0xff]  }
 0x500   : > { %4484 = vmatprep.subr.bf16.mxu0 %v9846_v23  ;;  %v10225_v23 = vld [vmem:[%s10789_s3 + $0x664] ss:$8 sps:$4 sm:$0xff]  }
 0x501   : > { %4911 = vmatpush1.bf16.msra.mxu1 %v10174_v35 }
 0x502   : > { %4912 = vmatprep.subr.bf16.mxu1 %v10181_v43 }
 0x503   : > { %4485 = vmatpush1.bf16.msra.mxu0 %v9856_v12 }
 0x504   : > { %4486 = vmatprep.subr.bf16.mxu0 %v9862_v26 }
 0x505   : > { %4913 = vmatpush1.bf16.msra.mxu1 %v10188_v33 }
 0x506   : > { %4914 = vmatprep.subr.bf16.mxu1 %v10195_v3 }
 0x507   : > { %4487 = vmatpush1.bf16.msra.mxu0 %v9870_v40 }
 0x508   : > { %4488 = vmatprep.subr.bf16.mxu0 %v9876_v62 }
 0x509   : > { %v3795_v15 = vpop.f32.mrb[88].mxu0  ;;  %4915 = vmatpush1.bf16.msra.mxu1 %v10202_v57 }
 0x50a   : > { %v3796_v8 = vadd.f32 %v3795_v15, %v10081_v49  ;;  %v3797_v2 = vpop.f32.mrb[89].mxu0  ;;  %4916 = vmatprep.subr.bf16.mxu1 %v10211_v47  ;;  %v10353_v49 = vld [vmem:[%s10789_s3 + $0x6e0] ss:$8 sps:$4 sm:$0xff]   ;;  %v10444_v15 = vld [vmem:[%s10789_s3 + $0x750] ss:$8 sps:$4 sm:$0xff]  }
 0x50b   : > { %v3798_v52 = vadd.f32 %v3797_v2, %v10084_v19  ;;  %v3799_v58 = vpop.f32.mrb[90].mxu0  ;;  %4489 = vmatpush1.bf16.msra.mxu0 %v9884_v34  ;;  %v3836_v12 = vpop.f32.mrb[88].mxu1  ;;  %11237 = vst [vmem:[#allocation25_spill] sm:$0xff] %v10353_v49  ;;  %v10365_v19 = vld [vmem:[%s10789_s3 + $0x700] ss:$8 sps:$4 sm:$0xff]  }
 0x50c   : > { %v3800_v27 = vpop.f32.mrb[91].mxu0  ;;  %4490 = vmatprep.subr.bf16.mxu0 %v9890_v20  ;;  %v10228_v26 = vadd.f32 %v3836_v12, %v3796_v8  ;;  %v3838_v40 = vpop.f32.mrb[89].mxu1  ;;  %v10236_v20 = vld [vmem:[%s10789_s3 + $0x660] ss:$8 sps:$4 sm:$0xff]   ;;  %v10450_v8 = vld [vmem:[%s10789_s3 + $0x764] ss:$8 sps:$4 sm:$0xff]  }
 0x50d   : > { %v10230_v62 = vadd.f32 %v3838_v40, %v3798_v52  ;;  %v3840_v34 = vpop.f32.mrb[90].mxu1  ;;  %4917 = vmatpush1.bf16.msra.mxu1 %v10218_v48  ;;  %v10464_v40 = vld [vmem:[%s10789_s3 + $0x760] ss:$8 sps:$4 sm:$0xff]  }
 0x50e   : > { %4918 = vmatprep.subr.bf16.mxu1 %v10225_v23 }
 0x50f   : > { %4491 = vmatpush1.bf16.msra.mxu0 %v9900_v51  ;;  %v3841_v51 = vpop.f32.mrb[91].mxu1 }
 0x510   : > { %4492 = vmatprep.subr.bf16.mxu0 %v9906_v22  ;;  %v10243_v22 = vld [vmem:[%s10789_s3 + $0x674] ss:$8 sps:$4 sm:$0xff]  }
 0x511   : > { %4919 = vmatpush1.bf16.msra.mxu1 %v10236_v20 }
 0x512   : > { %4920 = vmatprep.subr.bf16.mxu1 %v10243_v22 }
 0x513   : > { %4493 = vmatpush1.bf16.msra.mxu0 %v9914_v9  ;;  %v10257_v9 = vld [vmem:[%s10789_s3 + $0x684] ss:$8 sps:$4 sm:$0xff]  }
 0x514   : > { %4494 = vmatprep.subr.bf16.mxu0 %v9920_v59  ;;  %v10264_v59 = vld [vmem:[%s10789_s3 + $0x680] ss:$8 sps:$4 sm:$0xff]  }
 0x515   : > { %4921 = vmatpush1.bf16.msra.mxu1 %v10250_v21 }
 0x516   : > { %4922 = vmatprep.subr.bf16.mxu1 %v10257_v9 }
 0x517   : > { %4495 = vmatpush1.bf16.msra.mxu0 %v9932_v63  ;;  %v10271_v63 = vld [vmem:[%s10789_s3 + $0x694] ss:$8 sps:$4 sm:$0xff]  }
 0x518   : > { %4496 = vmatprep.subr.bf16.mxu0 %v9938_v18  ;;  %v10285_v18 = vld [vmem:[%s10789_s3 + $0x6a4] ss:$8 sps:$4 sm:$0xff]  }
 0x519   : > { %4923 = vmatpush1.bf16.msra.mxu1 %v10264_v59 }
 0x51a   : > { %4924 = vmatprep.subr.bf16.mxu1 %v10271_v63 }
 0x51b   : > { %4497 = vmatpush1.bf16.msra.mxu0 %v9946_v61  ;;  %v10292_v61 = vld [vmem:[%s10789_s3 + $0x6a0] ss:$8 sps:$4 sm:$0xff]  }
 0x51c   : > { %4498 = vmatprep.subr.bf16.mxu0 %v9952_v17  ;;  %v10299_v17 = vld [vmem:[%s10789_s3 + $0x6b4] ss:$8 sps:$4 sm:$0xff]  }
 0x51d   : > { %4925 = vmatpush1.bf16.msra.mxu1 %v10278_v13 }
 0x51e   : > { %4926 = vmatprep.subr.bf16.mxu1 %v10285_v18 }
 0x51f   : > { %4499 = vmatpush1.bf16.msra.mxu0 %v9960_v44  ;;  %v10306_v44 = vld [vmem:[%s10789_s3 + $0x6b0] ss:$8 sps:$4 sm:$0xff]  }
 0x520   : > { %4500 = vmatprep.subr.bf16.mxu0 %v9966_v56  ;;  %v10313_v56 = vld [vmem:[%s10789_s3 + $0x6c4] ss:$8 sps:$4 sm:$0xff]  }
 0x521   : > { %4927 = vmatpush1.bf16.msra.mxu1 %v10292_v61 }
 0x522   : > { %4928 = vmatprep.subr.bf16.mxu1 %v10299_v17 }
 0x523   : > { %4501 = vmatpush1.bf16.msra.mxu0 %v11222_v10  ;;  %v11238_v10 = vld [vmem:[#allocation87_spill] sm:$0xff] }
 0x524   : > { %4502 = vmatprep.subr.bf16.mxu0 %v11223_v14  ;;  %v10392_v14 = vld [vmem:[%s10789_s3 + $0x724] ss:$8 sps:$4 sm:$0xff]  }
 0x525   : > { %4929 = vmatpush1.bf16.msra.mxu1 %v10306_v44 }
 0x526   : > { %4930 = vmatprep.subr.bf16.mxu1 %v10313_v56 }
 0x527   : > { %4503 = vmatpush1.bf16.msra.mxu0 %v11224_v50  ;;  %v10400_v50 = vld [vmem:[%s10789_s3 + $0x720] ss:$8 sps:$4 sm:$0xff]  }
 0x528   : > { %4504 = vmatprep.subr.bf16.mxu0 %v11225_v25  ;;  %v10406_v25 = vld [vmem:[%s10789_s3 + $0x734] ss:$8 sps:$4 sm:$0xff]  }
 0x529   : > { %4931 = vmatpush1.bf16.msra.mxu1 %v10320_v4 }
 0x52a   : > { %4932 = vmatprep.subr.bf16.mxu1 %v10327_v6 }
 0x52b   : > { %4505 = vmatpush1.bf16.msra.mxu0 %v11226_v53  ;;  %v11239_v53 = vld [vmem:[#allocation88_spill] sm:$0xff] }
 0x52c   : > { %4506 = vmatprep.subr.bf16.mxu0 %v10008_v0  ;;  %v10347_v0 = vld [vmem:[%s10789_s3 + $0x704] ss:$8 sps:$4 sm:$0xff]  }
 0x52d   : > { %4933 = vmatpush1.bf16.msra.mxu1 %v10334_v39 }
 0x52e   : > { %4934 = vmatprep.subr.bf16.mxu1 %v10341_v1 }
 0x52f   : > { %4507 = vmatpush1.bf16.msra.mxu0 %v11228_v41  ;;  %v10416_v41 = vld [vmem:[%s10789_s3 + $0x730] ss:$8 sps:$4 sm:$0xff]  }
 0x530   : > { %4508 = vmatprep.subr.bf16.mxu0 %v10022_v54  ;;  %v10360_v54 = vld [vmem:[%s10789_s3 + $0x6f4] ss:$8 sps:$4 sm:$0xff]  }
 0x531   : > { %4935 = vmatpush1.bf16.msra.mxu1 %v10353_v49 }
 0x532   : > { %4936 = vmatprep.subr.bf16.mxu1 %v10360_v54 }
 0x533   : > { %4509 = vmatpush1.bf16.msra.mxu0 %v10030_v24  ;;  %v10377_v24 = vld [vmem:[%s10789_s3 + $0x6f0] ss:$8 sps:$4 sm:$0xff]  }
 0x534   : > { %4947 = vmatprep.subr.bf16.mxu0 %v10347_v0 }
 0x535   : > { %4937 = vmatpush1.bf16.msra.mxu1 %v10377_v24 }
 0x536   : > { %4511 = vmatmul.mubr.bf16.vlgmr.msra.gmra.mrb[104].mxu0 %v10120_v37  ;;  %4990 = vmatprep.subr.bf16.mxu1 %v10136_v42  ;;  %v10544_v37 = vld [vmem:[%s10789_s3 + $0x7c4] ss:$8 sps:$4 sm:$0xff]  }
 0x537   : > { %4948 = vmatpush1.bf16.msra.mxu0 %v10365_v19  ;;  %4979 = vmatprep.mubr.bf16.mxu0 %v11238_v10  ;;  %v10486_v10 = vld [vmem:[%s10789_s3 + $0x784] ss:$8 sps:$4 sm:$0xff]  }
 0x538   : > { %4949 = vmatprep.subr.bf16.mxu0 %v10371_v38  ;;  %4939 = vmatmul.mubr.bf16.vlgmr.msra.gmra.mrb[104].mxu1 %v11239_v53 }
 0x539   : > { %4991 = vmatpush1.bf16.msra.mxu1 %v10144_v29  ;;  %5022 = vmatprep.mubr.bf16.mxu1 %v11240_v16 }
 0x53a   : > { %4992 = vmatprep.subr.bf16.mxu1 %v10151_v28 }
 0x53b   : > { %4950 = vmatpush1.bf16.msra.mxu0 %v10385_v7 }
 0x53c   : > { %4951 = vmatprep.subr.bf16.mxu0 %v10392_v14 }
 0x53d   : > { %4993 = vmatpush1.bf16.msra.mxu1 %v10160_v31 }
 0x53e   : > { %4994 = vmatprep.subr.bf16.mxu1 %v10167_v45 }
 0x53f   : > { %4952 = vmatpush1.bf16.msra.mxu0 %v10400_v50 }
 0x540   : > { %4953 = vmatprep.subr.bf16.mxu0 %v10406_v25 }
 0x541   : > { %4995 = vmatpush1.bf16.msra.mxu1 %v10174_v35 }
 0x542   : > { %4996 = vmatprep.subr.bf16.mxu1 %v10181_v43 }
 0x543   : > { %4954 = vmatpush1.bf16.msra.mxu0 %v10416_v41 }
 0x544   : > { %4955 = vmatprep.subr.bf16.mxu0 %v10422_v60 }
 0x545   : > { %4997 = vmatpush1.bf16.msra.mxu1 %v10188_v33 }
 0x546   : > { %4998 = vmatprep.subr.bf16.mxu1 %v10195_v3 }
 0x547   : > { %4956 = vmatpush1.bf16.msra.mxu0 %v10430_v30 }
 0x548   : > { %4957 = vmatprep.subr.bf16.mxu0 %v10436_v36 }
 0x549   : > { %v3877_v2 = vpop.f32.mrb[92].mxu0  ;;  %4999 = vmatpush1.bf16.msra.mxu1 %v10202_v57 }
 0x54a   : > { %v10454_v52 = vadd.f32 %v3877_v2, %v10228_v26  ;;  %v3879_v58 = vpop.f32.mrb[93].mxu0  ;;  %v10470_v26 = vld [vmem:[%s10789_s3 + $0x774] ss:$8 sps:$4 sm:$0xff]   ;;  %5000 = vmatprep.subr.bf16.mxu1 %v10211_v47 }
 0x54b   : > { %v10458_v27 = vadd.f32 %v3879_v58, %v10230_v62  ;;  %v3881_v12 = vpop.f32.mrb[94].mxu0  ;;  %4958 = vmatpush1.bf16.msra.mxu0 %v10444_v15  ;;  %v10478_v62 = vld [vmem:[%s10789_s3 + $0x770] ss:$8 sps:$4 sm:$0xff]   ;;  %v10480_v51 = vpop.f32.mrb[92].mxu1  ;;  %v10496_v58 = vld [vmem:[%s10789_s3 + $0x780] ss:$8 sps:$4 sm:$0xff]  }
 0x54c   : > { %11241 = vst [vmem:[#allocation26_spill] sm:$0xff] %v10454_v52  ;;  %v3882_v34 = vpop.f32.mrb[95].mxu0  ;;  %4959 = vmatprep.subr.bf16.mxu0 %v10450_v8  ;;  %v10488_v53 = vpop.f32.mrb[93].mxu1  ;;  %v10502_v12 = vld [vmem:[%s10789_s3 + $0x794] ss:$8 sps:$4 sm:$0xff]  }
 0x54d   : > { %11242 = vst [vmem:[#allocation29_spill] sm:$0xff] %v10458_v27  ;;  %v4307_v16 = vpop.f32.mrb[94].mxu1  ;;  %5001 = vmatpush1.bf16.msra.mxu1 %v10218_v48  ;;  %v10510_v34 = vld [vmem:[%s10789_s3 + $0x790] ss:$8 sps:$4 sm:$0xff]   ;;  %v10530_v27 = vld [vmem:[%s10789_s3 + $0x7b4] ss:$8 sps:$4 sm:$0xff]  }
 0x54e   : > { %v4308_v2 = vpop.f32.mrb[95].mxu1  ;;  %5002 = vmatprep.subr.bf16.mxu1 %v10225_v23  ;;  %v10516_v16 = vld [vmem:[%s10789_s3 + $0x7a4] ss:$8 sps:$4 sm:$0xff]   ;;  %v10538_v52 = vld [vmem:[%s10789_s3 + $0x7b0] ss:$8 sps:$4 sm:$0xff]  }
 0x54f   : > { %4960 = vmatpush1.bf16.msra.mxu0 %v10464_v40  ;;  %v10524_v2 = vld [vmem:[%s10789_s3 + $0x7a0] ss:$8 sps:$4 sm:$0xff]  }
 0x550   : > { %4961 = vmatprep.subr.bf16.mxu0 %v10470_v26 }
 0x551   : > { %5003 = vmatpush1.bf16.msra.mxu1 %v10236_v20 }
 0x552   : > { %5004 = vmatprep.subr.bf16.mxu1 %v10243_v22 }
 0x553   : > { %4962 = vmatpush1.bf16.msra.mxu0 %v10478_v62 }
 0x554   : > { %4963 = vmatprep.subr.bf16.mxu0 %v10486_v10 }
 0x555   : > { %5005 = vmatpush1.bf16.msra.mxu1 %v10250_v21 }
 0x556   : > { %5006 = vmatprep.subr.bf16.mxu1 %v10257_v9 }
 0x557   : > { %4964 = vmatpush1.bf16.msra.mxu0 %v10496_v58 }
 0x558   : > { %4965 = vmatprep.subr.bf16.mxu0 %v10502_v12 }
 0x559   : > { %5007 = vmatpush1.bf16.msra.mxu1 %v10264_v59 }
 0x55a   : > { %5008 = vmatprep.subr.bf16.mxu1 %v10271_v63 }
 0x55b   : > { %4966 = vmatpush1.bf16.msra.mxu0 %v10510_v34 }
 0x55c   : > { %4967 = vmatprep.subr.bf16.mxu0 %v10516_v16 }
 0x55d   : > { %5009 = vmatpush1.bf16.msra.mxu1 %v10278_v13 }
 0x55e   : > { %5010 = vmatprep.subr.bf16.mxu1 %v10285_v18 }
 0x55f   : > { %4968 = vmatpush1.bf16.msra.mxu0 %v10524_v2 }
 0x560   : > { %4969 = vmatprep.subr.bf16.mxu0 %v10530_v27 }
 0x561   : > { %5011 = vmatpush1.bf16.msra.mxu1 %v10292_v61 }
 0x562   : > { %5012 = vmatprep.subr.bf16.mxu1 %v10299_v17 }
 0x563   : > { %4970 = vmatpush1.bf16.msra.mxu0 %v10538_v52 }
 0x564   : > { %4971 = vmatprep.subr.bf16.mxu0 %v10544_v37 }
 0x565   : > { %5013 = vmatpush1.bf16.msra.mxu1 %v10306_v44 }
 0x566   : > { %5014 = vmatprep.subr.bf16.mxu1 %v10313_v56 }
 0x567   : > { %4972 = vmatpush1.bf16.msra.mxu0 %v10552_v55  ;;  %v10580_v55 = vld [vmem:[%s10789_s3 + $0x7e0] ss:$8 sps:$4 sm:$0xff]  }
 0x568   : > { %4973 = vmatprep.subr.bf16.mxu0 %v10558_v11  ;;  %11246 = vst [vmem:[#allocation33_spill] sm:$0xff] %v10580_v55  ;;  %v10586_v11 = vld [vmem:[%s10789_s3 + $0x7f4] ss:$8 sps:$4 sm:$0xff]  }
 0x569   : > { %11247 = vst [vmem:[#allocation34_spill] sm:$0xff] %v10586_v11  ;;  %5015 = vmatpush1.bf16.msra.mxu1 %v10320_v4  ;;  %v5084_v4 = vshll.u32 %v10051_v46, 16 }
 0x56a   : > { %5016 = vmatprep.subr.bf16.mxu1 %v10327_v6  ;;  %v11249_v6 = vld [vmem:[#allocation60_spill] sm:$0xff] }
 0x56b   : > { %4974 = vmatpush1.bf16.msra.mxu0 %v10566_v5  ;;  %v10594_v5 = vld [vmem:[%s10789_s3 + $0x7f0] ss:$8 sps:$4 sm:$0xff]  }
 0x56c   : > { %4975 = vmatprep.subr.bf16.mxu0 %v10572_v32 }
 0x56d   : > { %5017 = vmatpush1.bf16.msra.mxu1 %v10334_v39  ;;  %v5082_v39 = vshrl.u32 %v10051_v46, 16 }
 0x56e   : > { %5018 = vmatprep.subr.bf16.mxu1 %v10341_v1 }
 0x56f   : > { %4976 = vmatpush1.bf16.msra.mxu0 %v10580_v55  ;;  %v11248_v55 = vld [vmem:[#allocation7_spill] sm:$0xff] }
 0x570   : > { %4977 = vmatprep.subr.bf16.mxu0 %v10586_v11  ;;  %v5086_v11 = vrot.slane %v5084_v4, 1 }
 0x571   : > { %5019 = vmatpush1.bf16.msra.mxu1 %v10353_v49 }
 0x572   : > { %5020 = vmatprep.subr.bf16.mxu1 %v10360_v54  ;;  %v5087_v49 = vor.u32 %v5086_v11, %v5082_v39 }
 0x573   : > { %4978 = vmatpush1.bf16.msra.mxu0 %v10594_v5 }
 0x574   : > { %5031 = vmatprep.subr.bf16.mxu0 %v10347_v0 }
 0x575   : > { %5021 = vmatpush1.bf16.msra.mxu1 %v10377_v24 }
 0x576   : > { %4980 = vmatmul.mubr.bf16.vlgmr.msra.gmra.mrb[108].mxu0 %v11248_v55  ;;  %5106 = vmatprep.subr.bf16.mxu1 %v10136_v42  ;;  %v11250_v55 = vld [vmem:[#allocation37_spill] sm:$0xff] }
 0x577   : > { %5032 = vmatpush1.bf16.msra.mxu0 %v10365_v19  ;;  %5063 = vmatprep.mubr.bf16.mxu0 %v11249_v6 }
 0x578   : > { %5033 = vmatprep.subr.bf16.mxu0 %v10371_v38  ;;  %5023 = vmatmul.mubr.bf16.vlgmr.msra.gmra.mrb[108].mxu1 %v11250_v55 }
 0x579   : > { %5107 = vmatpush1.bf16.msra.mxu1 %v10144_v29  ;;  %5138 = vmatprep.mubr.bf16.mxu1 %v5087_v49 }
 0x57a   : > { %5108 = vmatprep.subr.bf16.mxu1 %v10151_v28 }
 0x57b   : > { %5034 = vmatpush1.bf16.msra.mxu0 %v10385_v7 }
 0x57c   : > { %5035 = vmatprep.subr.bf16.mxu0 %v10392_v14 }
 0x57d   : > { %5109 = vmatpush1.bf16.msra.mxu1 %v10160_v31  ;;  %v11251_v31 = vld [vmem:[#allocation3_spill] sm:$0xff] }
 0x57e   : > { %5110 = vmatprep.subr.bf16.mxu1 %v10167_v45 }
 0x57f   : > { %5036 = vmatpush1.bf16.msra.mxu0 %v10400_v50 }
 0x580   : > { %5037 = vmatprep.subr.bf16.mxu0 %v10406_v25 }
 0x581   : > { %5111 = vmatpush1.bf16.msra.mxu1 %v10174_v35 }
 0x582   : > { %5112 = vmatprep.subr.bf16.mxu1 %v10181_v43  ;;  %v11252_v43 = vld [vmem:[#allocation61_spill] sm:$0xff] }
 0x583   : > { %5038 = vmatpush1.bf16.msra.mxu0 %v10416_v41 }
 0x584   : > { %5039 = vmatprep.subr.bf16.mxu0 %v10422_v60 }
 0x585   : > { %5113 = vmatpush1.bf16.msra.mxu1 %v10188_v33 }
 0x586   : > { %5114 = vmatprep.subr.bf16.mxu1 %v10195_v3 }
 0x587   : > { %5040 = vmatpush1.bf16.msra.mxu0 %v10430_v30 }
 0x588   : > { %5041 = vmatprep.subr.bf16.mxu0 %v10436_v36 }
 0x589   : > { %v4344_v46 = vpop.f32.mrb[96].mxu0  ;;  %5115 = vmatpush1.bf16.msra.mxu1 %v10202_v57  ;;  %v11253_v57 = vld [vmem:[#allocation30_spill] sm:$0xff] }
 0x58a   : > { %v4345_v11 = vadd.f32 %v4344_v46, %v10480_v51  ;;  %v4346_v42 = vpop.f32.mrb[97].mxu0  ;;  %5116 = vmatprep.subr.bf16.mxu1 %v10211_v47  ;;  %v11254_v47 = vld [vmem:[#allocation81_spill] sm:$0xff] }
 0x58b   : > { %v4347_v29 = vadd.f32 %v4346_v42, %v10488_v53  ;;  %v4348_v28 = vpop.f32.mrb[98].mxu0  ;;  %5042 = vmatpush1.bf16.msra.mxu0 %v10444_v15  ;;  %v10641_v33 = vpop.f32.mrb[96].mxu1 }
 0x58c   : > { %v10632_v45 = vadd.f32 %v4345_v11, %v11251_v31  ;;  %v4349_v35 = vpop.f32.mrb[99].mxu0  ;;  %5043 = vmatprep.subr.bf16.mxu0 %v10450_v8  ;;  %v10644_v3 = vpop.f32.mrb[97].mxu1 }
 0x58d   : > { %v10636_v4 = vadd.f32 %v4347_v29, %v11252_v43  ;;  %v4391_v6 = vpop.f32.mrb[98].mxu1  ;;  %5117 = vmatpush1.bf16.msra.mxu1 %v10218_v48  ;;  %v11255_v48 = vld [vmem:[#allocation82_spill] sm:$0xff] }
 0x58e   : > { %v4392_v39 = vpop.f32.mrb[99].mxu1  ;;  %5118 = vmatprep.subr.bf16.mxu1 %v10225_v23  ;;  %v11256_v23 = vld [vmem:[#allocation72_spill] sm:$0xff] }
 0x58f   : > { %5044 = vmatpush1.bf16.msra.mxu0 %v10464_v40 }
 0x590   : > { %5045 = vmatprep.subr.bf16.mxu0 %v10470_v26 }
 0x591   : > { %5119 = vmatpush1.bf16.msra.mxu1 %v10236_v20  ;;  %v11257_v20 = vld [vmem:[#allocation70_spill] sm:$0xff] }
 0x592   : > { %5120 = vmatprep.subr.bf16.mxu1 %v10243_v22  ;;  %v5098_v22 = vshll.u32 %v11257_v20, 16 }
 0x593   : > { %5046 = vmatpush1.bf16.msra.mxu0 %v10478_v62 }
 0x594   : > { %5047 = vmatprep.subr.bf16.mxu0 %v10486_v10 }
 0x595   : > { %5121 = vmatpush1.bf16.msra.mxu1 %v10250_v21  ;;  %v11258_v21 = vld [vmem:[#allocation22_spill] sm:$0xff] }
 0x596   : > { %5122 = vmatprep.subr.bf16.mxu1 %v10257_v9  ;;  %v11259_v9 = vld [vmem:[#allocation33_spill] sm:$0xff] }
 0x597   : > { %5048 = vmatpush1.bf16.msra.mxu0 %v10496_v58 }
 0x598   : > { %5049 = vmatprep.subr.bf16.mxu0 %v10502_v12 }
 0x599   : > { %5123 = vmatpush1.bf16.msra.mxu1 %v10264_v59  ;;  %v11260_v59 = vld [vmem:[#allocation34_spill] sm:$0xff] }
 0x59a   : > { %5124 = vmatprep.subr.bf16.mxu1 %v10271_v63  ;;  %v11261_v63 = vld [vmem:[#allocation84_spill] sm:$0xff] }
 0x59b   : > { %5050 = vmatpush1.bf16.msra.mxu0 %v10510_v34 }
 0x59c   : > { %5051 = vmatprep.subr.bf16.mxu0 %v10516_v16 }
 0x59d   : > { %5125 = vmatpush1.bf16.msra.mxu1 %v10278_v13  ;;  %v5096_v13 = vshrl.u32 %v11257_v20, 16 }
 0x59e   : > { %5126 = vmatprep.subr.bf16.mxu1 %v10285_v18  ;;  %v5100_v18 = vrot.slane %v5098_v22, 1 }
 0x59f   : > { %5052 = vmatpush1.bf16.msra.mxu0 %v10524_v2 }
 0x5a0   : > { %5053 = vmatprep.subr.bf16.mxu0 %v10530_v27  ;;  %v5101_v49 = vor.u32 %v5100_v18, %v5096_v13  ;;  %v5226_v18 = vld [vmem:[%s10792_s6] sm:$0x77] }
 0x5a1   : > { %5127 = vmatpush1.bf16.msra.mxu1 %v10292_v61  ;;  %v11262_v61 = vld [vmem:[#allocation67_spill] sm:$0xff] }
 0x5a2   : > { %5128 = vmatprep.subr.bf16.mxu1 %v10299_v17  ;;  %v5077_v17 = vshll.u32 %v11262_v61, 16  ;;  %v5075_v51 = vshrl.u32 %v11262_v61, 16 }
 0x5a3   : > { %5054 = vmatpush1.bf16.msra.mxu0 %v10538_v52 }
 0x5a4   : > { %5055 = vmatprep.subr.bf16.mxu0 %v10544_v37  ;;  %v5079_v53 = vrot.slane %v5077_v17, 1 }
 0x5a5   : > { %5129 = vmatpush1.bf16.msra.mxu1 %v10306_v44  ;;  %v11263_v44 = vld [vmem:[#allocation25_spill] sm:$0xff] }
 0x5a6   : > { %5130 = vmatprep.subr.bf16.mxu1 %v10313_v56  ;;  %v11264_v56 = vld [vmem:[#allocation38_spill] sm:$0xff] }
 0x5a7   : > { %5056 = vmatpush1.bf16.msra.mxu0 %v11253_v57 }
 0x5a8   : > { %5057 = vmatprep.subr.bf16.mxu0 %v11254_v47 }
 0x5a9   : > { %5131 = vmatpush1.bf16.msra.mxu1 %v11256_v23  ;;  %v5192_v23 = vlaneseq }
 0x5aa   : > { %5132 = vmatprep.subr.bf16.mxu1 %v11258_v21  ;;  %v5190_v21 = vld [vmem:[%s10790_s4] sm:$0x3] }
 0x5ab   : > { %5058 = vmatpush1.bf16.msra.mxu0 %v11255_v48  ;;  %v10739_v20 = vshrl.u32 %v5192_v23, 7 }
 0x5ac   : > { %5059 = vmatprep.subr.bf16.mxu0 %v10572_v32 }
 0x5ad   : > { %5133 = vmatpush1.bf16.msra.mxu1 %v11261_v63  ;;  %v5194_v22 = vsub.s32 0, %v10739_v20 }
 0x5ae   : > { %5134 = vmatprep.subr.bf16.mxu1 %v10341_v1  ;;  %v5080_v1 = vor.u32 %v5079_v53, %v5075_v51 }
 0x5af   : > { %5060 = vmatpush1.bf16.msra.mxu0 %v11259_v9 }
 0x5b0   : > { %5061 = vmatprep.subr.bf16.mxu0 %v11260_v59 }
 0x5b1   : > { %5135 = vmatpush1.bf16.msra.mxu1 %v11263_v44  ;;  %v5228_v44 = vcombine.high %v5226_v18, %v5226_v18 }
 0x5b2   : > { %5136 = vmatprep.subr.bf16.mxu1 %v10360_v54 }
 0x5b3   : > { %5062 = vmatpush1.bf16.msra.mxu0 %v10594_v5 }
 0x5b4   : > { %5147 = vmatprep.subr.bf16.mxu0 %v10347_v0 }
 0x5b5   : > { %5137 = vmatpush1.bf16.msra.mxu1 %v10377_v24 }
 0x5b6   : > { %5064 = vmatmul.mubr.bf16.vlgmr.msra.gmra.mrb[112].mxu0 %v11264_v56 }
 0x5b7   : > { %5148 = vmatpush1.bf16.msra.mxu0 %v10365_v19  ;;  %5179 = vmatprep.mubr.bf16.mxu0 %v5101_v49 }
 0x5b8   : > { %5149 = vmatprep.subr.bf16.mxu0 %v10371_v38  ;;  %5139 = vmatmul.mubr.bf16.vlgmr.msra.gmra.mrb[112].mxu1 %v5080_v1 }
 0x5bb   : > { %5150 = vmatpush1.bf16.msra.mxu0 %v10385_v7  ;;  %v11265_v7 = vld [vmem:[#allocation68_spill] sm:$0xff] }
 0x5bc   : > { %5151 = vmatprep.subr.bf16.mxu0 %v10392_v14 }
 0x5bf   : > { %5152 = vmatpush1.bf16.msra.mxu0 %v10400_v50 }
 0x5c0   : > { %5153 = vmatprep.subr.bf16.mxu0 %v10406_v25  ;;  %v11266_v25 = vld [vmem:[#allocation13_spill] sm:$0xff] }
 0x5c3   : > { %5154 = vmatpush1.bf16.msra.mxu0 %v10416_v41 }
 0x5c4   : > { %5155 = vmatprep.subr.bf16.mxu0 %v10422_v60 }
 0x5c7   : > { %5156 = vmatpush1.bf16.msra.mxu0 %v10430_v30 }
 0x5c8   : > { %5157 = vmatprep.subr.bf16.mxu0 %v10436_v36 }
 0x5c9   : > { %v4428_v0 = vpop.f32.mrb[100].mxu0 }
 0x5ca   : > { %v4429_v54 = vadd.f32 %v4428_v0, %v10641_v33  ;;  %v4430_v19 = vpop.f32.mrb[101].mxu0 }
 0x5cb   : > { %v4431_v38 = vadd.f32 %v4430_v19, %v10644_v3  ;;  %v4432_v24 = vpop.f32.mrb[102].mxu0  ;;  %5158 = vmatpush1.bf16.msra.mxu0 %v10444_v15  ;;  %v4471_v60 = vpop.f32.mrb[100].mxu1  ;;  %v11267_v15 = vld [vmem:[#allocation69_spill] sm:$0xff] }
 0x5cc   : > { %v10704_v14 = vadd.f32 %v4429_v54, %v11265_v7  ;;  %v4433_v50 = vpop.f32.mrb[103].mxu0  ;;  %5159 = vmatprep.subr.bf16.mxu0 %v10450_v8  ;;  %v4473_v30 = vpop.f32.mrb[101].mxu1  ;;  %v5091_v8 = vshll.u32 %v11267_v15, 16 }
 0x5cd   : > { %v10708_v41 = vadd.f32 %v4431_v38, %v11266_v25  ;;  %v4475_v36 = vpop.f32.mrb[102].mxu1 }
 0x5ce   : > { %v4476_v55 = vpop.f32.mrb[103].mxu1 }
 0x5cf   : > { %5160 = vmatpush1.bf16.msra.mxu0 %v10464_v40  ;;  %v5089_v40 = vshrl.u32 %v11267_v15, 16 }
 0x5d0   : > { %5161 = vmatprep.subr.bf16.mxu0 %v10470_v26  ;;  %v5093_v26 = vrot.slane %v5091_v8, 1 }
 0x5d3   : > { %5162 = vmatpush1.bf16.msra.mxu0 %v10478_v62 }
 0x5d4   : > { %5163 = vmatprep.subr.bf16.mxu0 %v10486_v10 }
 0x5d7   : > { %5164 = vmatpush1.bf16.msra.mxu0 %v10496_v58 }
 0x5d8   : > { %5165 = vmatprep.subr.bf16.mxu0 %v10502_v12  ;;  %v11268_v12 = vld [vmem:[#allocation26_spill] sm:$0xff] }
 0x5db   : > { %5166 = vmatpush1.bf16.msra.mxu0 %v10510_v34 }
 0x5dc   : > { %5167 = vmatprep.subr.bf16.mxu0 %v10516_v16  ;;  %v11269_v16 = vld [vmem:[#allocation29_spill] sm:$0xff] }
 0x5df   : > { %5168 = vmatpush1.bf16.msra.mxu0 %v10524_v2 }
 0x5e0   : > { %5169 = vmatprep.subr.bf16.mxu0 %v10530_v27 }
 0x5e3   : > { %5170 = vmatpush1.bf16.msra.mxu0 %v10538_v52 }
 0x5e4   : > { %5171 = vmatprep.subr.bf16.mxu0 %v10544_v37  ;;  %v5094_v37 = vor.u32 %v5093_v26, %v5089_v40 }
 0x5e7   : > { %5172 = vmatpush1.bf16.msra.mxu0 %v11253_v57 }
 0x5e8   : > { %5173 = vmatprep.subr.bf16.mxu0 %v11254_v47 }
 0x5eb   : > { %5174 = vmatpush1.bf16.msra.mxu0 %v11255_v48 }
 0x5ec   : > { %5175 = vmatprep.subr.bf16.mxu0 %v10572_v32 }
 0x5ef   : > { %5176 = vmatpush1.bf16.msra.mxu0 %v11259_v9  ;;  %v5198_v9 = vsub.s32 1, %v10739_v20 }
 0x5f0   : > { %5177 = vmatprep.subr.bf16.mxu0 %v11260_v59 }
 0x5f3   : > { %5178 = vmatpush1.bf16.msra.mxu0 %v10594_v5 }
 0x5f6   : > { %5180 = vmatmul.mubr.bf16.vlgmr.msra.gmra.mrb[116].mxu0 %v5094_v37 }
 0x609   : > { %v4512_v52 = vpop.f32.mrb[104].mxu0 }
 0x60a   : > { %v4513_v27 = vadd.f32 %v4512_v52, %v4471_v60  ;;  %v4514_v62 = vpop.f32.mrb[105].mxu0  ;;  %v6013_v60 = vld [vmem:[%s10792_s6 + $0x8] sm:$0x77] }
 0x60b   : > { %v4515_v10 = vadd.f32 %v4514_v62, %v4473_v30  ;;  %v4516_v58 = vpop.f32.mrb[106].mxu0  ;;  %v4940_v46 = vpop.f32.mrb[104].mxu1  ;;  %v5251_v40 = vcombine.high %v6013_v60, %v6013_v60 }
 0x60c   : > { %v10732_v34 = vadd.f32 %v4513_v27, %v11268_v12  ;;  %v4517_v32 = vpop.f32.mrb[107].mxu0  ;;  %v4942_v11 = vpop.f32.mrb[105].mxu1 }
 0x60d   : > { %v10735_v2 = vadd.f32 %v4515_v10, %v11269_v16  ;;  %v4944_v42 = vpop.f32.mrb[106].mxu1 }
 0x60e   : > { %v4945_v29 = vpop.f32.mrb[107].mxu1 }
 0x649   : > { %v4981_v28 = vpop.f32.mrb[108].mxu0 }
 0x64a   : > { %v4982_v5 = vadd.f32 %v4981_v28, %v4940_v46  ;;  %v4983_v31 = vpop.f32.mrb[109].mxu0 }
 0x64b   : > { %v4984_v35 = vadd.f32 %v4983_v31, %v4942_v11  ;;  %v4985_v43 = vpop.f32.mrb[110].mxu0  ;;  %v5024_v39 = vpop.f32.mrb[108].mxu1 }
 0x64c   : > { %v4988_v33 = vadd.f32 %v4982_v5, %v10632_v45  ;;  %v4986_v3 = vpop.f32.mrb[111].mxu0  ;;  %v5026_v57 = vpop.f32.mrb[109].mxu1  ;;  %v10748_v45 = vrot.slane %v5190_v21, %v5194_v22 }
 0x64d   : > { %v4989_v6 = vadd.f32 %v4984_v35, %v10636_v4  ;;  %v5028_v47 = vpop.f32.mrb[110].mxu1  ;;  %v10750_v4 = vrot.slane %v5190_v21, %v5198_v9 }
 0x64e   : > { %v5029_v48 = vpop.f32.mrb[111].mxu1  ;;  %v5202_v59 = vadd.f32 %v10748_v45, %v4988_v33 }
 0x64f   : > { %v5203_v63 = vadd.f32 %v10750_v4, %v4989_v6 }
 0x650   : > { %v5206_v13 = vmul.f32 0.2, %v5202_v59  ;;  %vm5204_vm11 = vcmp.gt.f32.partialorder %v5202_v59, 0.0 }
 0x651   : > { %v5207_v61 = vmul.f32 0.2, %v5203_v63  ;;  %vm5205_vm12 = vcmp.gt.f32.partialorder %v5203_v63, 0.0 }
 0x652   : > { %v5208_v17 = vsel %vm5204_vm11, %v5202_v59, %v5206_v13 }
 0x653   : > { %v5209_v56 = vsel %vm5205_vm12, %v5203_v63, %v5207_v61  ;;  %v5230_v49 = vmul.f32 %v5226_v18, %v5208_v17 }
 0x654   : > { %v5231_v51 = vmul.f32 %v5228_v44, %v5209_v56 }
 0x655   : > { %v5232_v1 = vsel %vm2202_vm1, %v5230_v49, 0.0 }
 0x656   : > { %v5239_v19 = vsel %vm2202_vm1, %v5231_v51, 0.0  ;;  %v5233_v25 = vrot.slane %v5232_v1, 4 }
 0x657   : > { %v5240_v36 = vrot.slane %v5239_v19, 4 }
 0x658   : > { %v5234_v37 = vadd.f32 %v5233_v25, %v5232_v1  ;;  %v6014_v1 = vld [vmem:[%s10792_s6 + $0x10] sm:$0x77] }
 0x659   : > { %v5241_v27 = vadd.f32 %v5240_v36, %v5239_v19 }
 0x65a   : > { %v5235_v16 = vrot.slane %v5234_v37, 2 }
 0x65b   : > { %v5242_v46 = vrot.slane %v5241_v27, 2 }
 0x65c   : > { %v5236_v5 = vadd.f32 %v5235_v16, %v5234_v37 }
 0x65d   : > { %v5243_v35 = vadd.f32 %v5242_v46, %v5241_v27 }
 0x65e   : > { %v5237_v6 = vrot.slane %v5236_v5, 1 }
 0x660   : > { %v5238_v21 = vadd.f32 %v5237_v6, %v5236_v5 }
 0x689   : > { %v5065_v53 = vpop.f32.mrb[112].mxu0 }
 0x68a   : > { %v5066_v0 = vadd.f32 %v5065_v53, %v5024_v39  ;;  %v5067_v54 = vpop.f32.mrb[113].mxu0 }
 0x68b   : > { %v5068_v38 = vadd.f32 %v5067_v54, %v5026_v57  ;;  %v5069_v24 = vpop.f32.mrb[114].mxu0  ;;  %v5140_v26 = vpop.f32.mrb[112].mxu1  ;;  %v5244_v57 = vrot.slane %v5243_v35, 1 }
 0x68c   : > { %v5072_v7 = vadd.f32 %v5066_v0, %v10704_v14  ;;  %v5070_v50 = vpop.f32.mrb[115].mxu0  ;;  %v5142_v52 = vpop.f32.mrb[113].mxu1  ;;  %v5274_v24 = vcombine.high %v6014_v1, %v6014_v1 }
 0x68d   : > { %v5073_v30 = vadd.f32 %v5068_v38, %v10708_v41  ;;  %v5144_v10 = vpop.f32.mrb[114].mxu1  ;;  %v5245_v59 = vadd.f32 %v5244_v57, %v5243_v35 }
 0x68e   : > { %v5210_v55 = vadd.f32 %v10748_v45, %v5072_v7  ;;  %v5145_v32 = vpop.f32.mrb[115].mxu1 }
 0x68f   : > { %v5211_v15 = vadd.f32 %v10750_v4, %v5073_v30 }
 0x690   : > { %vm5212_vm13 = vcmp.gt.f32.partialorder %v5210_v55, 0.0  ;;  %v5214_v8 = vmul.f32 0.2, %v5210_v55 }
 0x691   : > { %vm5213_vm14 = vcmp.gt.f32.partialorder %v5211_v15, 0.0  ;;  %v5215_v14 = vmul.f32 0.2, %v5211_v15 }
 0x692   : > { %v5216_v62 = vsel %vm5212_vm13, %v5210_v55, %v5214_v8 }
 0x693   : > { %v5253_v58 = vmul.f32 %v6013_v60, %v5216_v62  ;;  %v5217_v12 = vsel %vm5213_vm14, %v5211_v15, %v5215_v14 }
 0x694   : > { %v5254_v41 = vmul.f32 %v5251_v40, %v5217_v12  ;;  %v5297_v12 = vld [vmem:[#allocation2] sm:$0x1] }
 0x695   : > { %v5255_v11 = vsel %vm2202_vm1, %v5253_v58, 0.0 }
 0x696   : > { %v5256_v42 = vrot.slane %v5255_v11, 4  ;;  %v5262_v29 = vsel %vm2202_vm1, %v5254_v41, 0.0 }
 0x697   : > { %v5263_v28 = vrot.slane %v5262_v29, 4 }
 0x698   : > { %v5257_v31 = vadd.f32 %v5256_v42, %v5255_v11 }
 0x699   : > { %v5264_v43 = vadd.f32 %v5263_v28, %v5262_v29 }
 0x69a   : > { %v5258_v33 = vrot.slane %v5257_v31, 2 }
 0x69b   : > { %v5265_v3 = vrot.slane %v5264_v43, 2 }
 0x69c   : > { %v5259_v39 = vadd.f32 %v5258_v33, %v5257_v31 }
 0x69d   : > { %v5266_v47 = vadd.f32 %v5265_v3, %v5264_v43 }
 0x69e   : > { %v5260_v48 = vrot.slane %v5259_v39, 1 }
 0x69f   : > { %v5267_v23 = vrot.slane %v5266_v47, 1 }
 0x6a0   : > { %v5261_v9 = vadd.f32 %v5260_v48, %v5259_v39 }
 0x6a1   : > { %v5268_v63 = vadd.f32 %v5267_v23, %v5266_v47 }
 0x6a2   : > { %v5269_v13 = vadd.f32 %v5261_v9, %v5238_v21 }
 0x6a3   : > { %v5270_v18 = vadd.f32 %v5268_v63, %v5245_v59 }
 0x6c9   : > { %v5181_v61 = vpop.f32.mrb[116].mxu0 }
 0x6ca   : > { %v5182_v17 = vadd.f32 %v5181_v61, %v5140_v26  ;;  %v5183_v44 = vpop.f32.mrb[117].mxu0 }
 0x6cb   : > { %v5184_v56 = vadd.f32 %v5183_v44, %v5142_v52  ;;  %v5185_v49 = vpop.f32.mrb[118].mxu0 }
 0x6cc   : > { %v5188_v51 = vadd.f32 %v5182_v17, %v10732_v34  ;;  %v5186_v53 = vpop.f32.mrb[119].mxu0 }
 0x6cd   : > { %v5189_v0 = vadd.f32 %v5184_v56, %v10735_v2 }
 0x6ce   : > { %v5218_v54 = vadd.f32 %v10748_v45, %v5188_v51 }
 0x6cf   : > { %v5219_v19 = vadd.f32 %v10750_v4, %v5189_v0 }
 0x6d0   : > { %vm5220_vm15 = vcmp.gt.f32.partialorder %v5218_v54, 0.0  ;;  %v5222_v38 = vmul.f32 0.2, %v5218_v54 }
 0x6d1   : > { %vm5221_vm0 = vcmp.gt.f32.partialorder %v5219_v19, 0.0  ;;  %v5223_v7 = vmul.f32 0.2, %v5219_v19 }
 0x6d2   : > { %v5224_v50 = vsel %vm5220_vm15, %v5218_v54, %v5222_v38 }
 0x6d3   : > { %v5276_v25 = vmul.f32 %v6014_v1, %v5224_v50  ;;  %v5225_v60 = vsel %vm5221_vm0, %v5219_v19, %v5223_v7 }
 0x6d4   : > { %v5277_v34 = vmul.f32 %v5274_v24, %v5225_v60 }
 0x6d5   : > { %v5278_v30 = vsel %vm2202_vm1, %v5276_v25, 0.0 }
 0x6d6   : > { %v5279_v36 = vrot.slane %v5278_v30, 4  ;;  %v5285_v55 = vsel %vm2202_vm1, %v5277_v34, 0.0 }
 0x6d7   : > { %v5286_v15 = vrot.slane %v5285_v55, 4 }
 0x6d8   : > { %v5280_v2 = vadd.f32 %v5279_v36, %v5278_v30 }
 0x6d9   : > { %v5287_v8 = vadd.f32 %v5286_v15, %v5285_v55 }
 0x6da   : > { %v5281_v45 = vrot.slane %v5280_v2, 2 }
 0x6db   : > { %v5288_v40 = vrot.slane %v5287_v8, 2 }
 0x6dc   : > { %v5282_v4 = vadd.f32 %v5281_v45, %v5280_v2 }
 0x6dd   : > { %v5289_v26 = vadd.f32 %v5288_v40, %v5287_v8 }
 0x6de   : > { %v5283_v37 = vrot.slane %v5282_v4, 1 }
 0x6df   : > { %v5290_v14 = vrot.slane %v5289_v26, 1 }
 0x6e0   : > { %v5284_v52 = vadd.f32 %v5283_v37, %v5282_v4 }
 0x6e1   : > { %v5291_v27 = vadd.f32 %v5290_v14, %v5289_v26 }
 0x6e2   : > { %v5292_v62 = vadd.f32 %v5284_v52, %v5269_v13 }
 0x6e3   : > { %v5293_v10 = vadd.f32 %v5291_v27, %v5270_v18 }
 0x6e5   : > { %v5294_v58 = vadd.f32 %v5293_v10, %v5292_v62 }
 0x6e7   : > { %5295 = vadd.xlane.f32.xlu0 %v5294_v58 }
 0x774   : > { %v5296_v32 = vpop.xlane.xlu0 %5295 }
 0x775   : > { %v5298_v41 = vadd.f32 %v5297_v12, %v5296_v32 }
 0x777   : > { %v5299_v16 = vmul.f32 0.5, %v5298_v41 }
 0x779   : > { %7170 = vtanh.f32 %v5299_v16 }
 0x783   : > { %v7171_v46 = vpop.eup %7170 }
 0x784   : > { %v5301_v11 = vadd.f32 1.0, %v7171_v46 }
 0x786   : > { %v5302_v42 = vmul.f32 0.5, %v5301_v11 }
 0x788   : > { %v5307_v29 = vrot.slane %v5302_v42, %v5194_v22 }
 0x78a   : > { %5309 = vperm.xlu0 %6702, %v5307_v29  }
 0x809   : > { %v5310_v28 = vpop.permute.xlu0 %5309 }
 0x80a   : > { %5312 = vst [vmem:[%s305_s11] sm:$0xff] %v5310_v28 }
 0x80b PF: > { %s20_s29 = sadd.s32 1, %s7215_s29  }
 0x80c   : > { %p17_p4 = scmp.ge.s32.totalorder %s20_s29, 4  }
 0x80e   :  { %19 = sbr.rel (!%p17_p4) target bundleno = 3 (0x3), region = 97 }

</bundles_post_ra>
